<compile_context>
chip_gen: v7x
topology: tpu7x:2x2x1
jax: 0.10.0
libtpu: 0.0.40
codegen_flags: <defaults>
</compile_context>

<pallas_src>
import functools

import jax
import jax.numpy as jnp
import numpy as np
from jax.experimental import pallas as pl
from jax.experimental.pallas import tpu as pltpu


def _routing_kernel(x_ref, z_ref, o_ref, *, max_iter, approx_recip):
    # x_ref: (k, dd, TS, 128)     pre-normalized node capsules (storage dtype)
    # z_ref: (k, dd, m, TS, 128)  pre-normalized gathered neighbor capsules
    # Node axis lives on the trailing (sublane, lane) pair; k, dd, m are
    # leading dims, so every reduction below is a cross-vreg VPU add (no XLU
    # cross-lane reduces) and the output store is an unmasked full-lane vst.
    x = x_ref[...].astype(jnp.float32)
    z = z_ref[...].astype(jnp.float32)
    k = x.shape[0]

    def l2norm_dd(v):
        # per-capsule L2 normalize over delta_d (leading dim); EUP rsqrt.
        s = jnp.sum(v * v, axis=1, keepdims=True)
        return v * jax.lax.rsqrt(jnp.maximum(s, 1e-24))

    # iteration 0: softmax(0) == 1/k everywhere -> plain mean over neighbors.
    u0 = (1.0 / k) * jnp.sum(z, axis=2) + x                    # (k, dd, TS, 128)

    def body(_, u):
        # Reference normalizes u at the end of every non-final iteration;
        # equivalently normalize the carried u at the start of each subsequent
        # iteration and return the final u unnormalized.
        un = l2norm_dd(u)
        # routing logits: per-neighbor/per-capsule dot over dd (leading dim).
        p = jnp.sum(z * un[:, :, None], axis=1)                # (k, m, TS, 128)
        # softmax over capsules (axis=0). Capsules are unit-norm => |p| <= 1,
        # so exp stays in [0.37, 2.72] and the max-subtraction is unnecessary.
        p = jnp.exp(p)
        p = p * pl.reciprocal(jnp.sum(p, axis=0, keepdims=True),
                              approx=approx_recip)
        # weighted sum over neighbors (middle dim) + residual x.
        return jnp.sum(z * p[:, None], axis=2) + x             # (k, dd, TS, 128)

    u = jax.lax.fori_loop(1, max_iter, body, u0) if max_iter > 1 else u0
    o_ref[...] = u.astype(o_ref.dtype)


def _vmem_capacity_bytes(default=64 * 1024 * 1024):
    # Generation-aware VMEM query; default assumes v7x's 64 MiB (safe floor).
    try:
        return int(pltpu.get_tpu_info().vmem_capacity_bytes)
    except Exception:
        return default


class RoutingLayer:
    """Pallas port of the PyTorch RoutingLayer (no learned parameters)."""

    def __init__(self, dim, num_caps, storage_dtype=jnp.float32,
                 approx_recip=False):
        assert dim % num_caps == 0
        self.d, self.k = dim, num_caps
        # bf16 storage halves HBM traffic of the dominant z tensor (recommended
        # in production on v6e/v7x; cast back to f32 at kernel entry keeps v5e
        # happy too) but breaks the 1e-5 reference check, so it is off by
        # default. Same for the EUP approximate reciprocal.
        self.storage_dtype = storage_dtype
        self.approx_recip = approx_recip

    def __call__(self, x, neighbors, max_iter):
        n, d = x.shape
        k = self.k
        dd = d // k
        m = neighbors.shape[0] // n

        # --- wrapper glue: normalize once so gathered z rows are unit-norm ---
        xc = x.reshape(n, k, dd).astype(jnp.float32)
        ssq = jnp.sum(xc * xc, axis=-1, keepdims=True)
        xn = xc * jax.lax.rsqrt(jnp.maximum(ssq, 1e-24))       # (n, k, dd)

        # --- node-tile sizing (node axis on the trailing (ts, 128) pair) -----
        TL = 128
        itemsize = jnp.dtype(self.storage_dtype).itemsize
        ts_align = 8 if itemsize >= 4 else 16        # bf16 min sublane tile 16
        vmem_cap = _vmem_capacity_bytes()
        budget = int(vmem_cap * 0.35)
        # rough per-node working set: double-buffered x/z/out blocks + f32
        # loop temps inside the kernel.
        per_node = itemsize * d * (2 * m + 4) + 4 * (d * (m + 3) + 2 * m * k)
        ts = max(ts_align, (budget // (per_node * TL)) // ts_align * ts_align)
        # clamp to the problem size (tiny graphs should not run a huge tile)
        min_rows = -(-n // TL)
        min_rows = ((min_rows + ts_align - 1) // ts_align) * ts_align
        if ts >= min_rows:
            ts = min_rows
            # prefer >= 2 grid steps so v7x's second TensorCore gets work
            if ts >= 2 * ts_align and (ts // 2) % ts_align == 0:
                ts //= 2
        n_rows = ((min_rows + ts - 1) // ts) * ts
        n_pad = n_rows * TL

        # TODO(synk): for very large m*d where even the minimum tile exceeds
        #             VMEM, tile m over an "arbitrary" reduction grid axis with
        #             a VMEM accumulator instead of this single-pass layout.

        # neighbor table; padded nodes point at the zero column (index n)
        nb = neighbors.reshape(n, m).astype(jnp.int32)
        nb_pad = jnp.pad(nb, ((0, n_pad - n), (0, 0)), constant_values=n)

        # x in lane-dense (k, dd, node) layout, node split into (rows, 128)
        x_t = jnp.transpose(xn, (1, 2, 0))                     # (k, dd, n)
        x_blk = jnp.pad(x_t, ((0, 0), (0, 0), (0, n_pad - n)))
        x_blk = x_blk.reshape(k, dd, n_rows, TL).astype(self.storage_dtype)

        # Neighbor gather directly in the kernel layout: gather columns of a
        # (k, dd, n+1) table (column n == zeros), so z needs NO transpose pass.
        # TODO(synk): move this gather fully in-kernel (scalar-prefetched nb
        #             table in SMEM + VMEM-resident x / DMA gather) to drop the
        #             remaining wrapper-side z materialization in HBM (~2x).
        x_aug = jnp.pad(x_t, ((0, 0), (0, 0), (0, 1)))         # (k, dd, n+1)
        idx = jnp.transpose(nb_pad, (1, 0)).reshape(-1)        # (m * n_pad,)
        z_blk = jnp.take(x_aug, idx, axis=-1)                  # (k, dd, m*n_pad)
        z_blk = z_blk.reshape(k, dd, m, n_rows, TL).astype(self.storage_dtype)

        # --- VMEM limit: block footprint + temps, with physical headroom -----
        io_bytes = itemsize * ts * TL * d * (2 + 2 * m) + 4 * ts * TL * d * 2
        tmp_bytes = 4 * ts * TL * (3 * d + m * d + 2 * m * k)
        vmem_limit = int(min(int(vmem_cap * 0.85),
                             max(io_bytes + tmp_bytes + (4 << 20), 32 << 20)))

        kernel = functools.partial(_routing_kernel, max_iter=int(max_iter),
                                   approx_recip=self.approx_recip)
        out_blk = pl.pallas_call(
            kernel,
            out_shape=jax.ShapeDtypeStruct((k, dd, n_rows, TL), jnp.float32),
            grid=(n_rows // ts,),
            in_specs=[
                pl.BlockSpec((k, dd, ts, TL), lambda i: (0, 0, i, 0)),
                pl.BlockSpec((k, dd, m, ts, TL), lambda i: (0, 0, 0, i, 0)),
            ],
            out_specs=pl.BlockSpec((k, dd, ts, TL), lambda i: (0, 0, i, 0)),
            compiler_params=pltpu.CompilerParams(
                dimension_semantics=("parallel",),
                vmem_limit_bytes=vmem_limit,
            ),
        )(x_blk, z_blk)

        out = jnp.transpose(out_blk.reshape(k, dd, n_pad), (2, 0, 1))[:n]
        return out.reshape(n, d).astype(x.dtype)


def _routing_ref(x, neighbors, max_iter, k):
    """Pure-JAX reference mirroring the PyTorch forward exactly."""
    n, d = x.shape
    dd = d // k
    m = neighbors.shape[0] // n
    eps = 1e-12
    xc = x.reshape(n, k, dd)
    xc = xc / jnp.maximum(jnp.sqrt(jnp.sum(xc * xc, -1, keepdims=True)), eps)
    xf = xc.reshape(n, d)
    z = jnp.concatenate([xf, jnp.zeros((1, d), x.dtype)], 0)[neighbors]
    z = z.reshape(n, m, k, dd)
    u = None
    for it in range(max_iter):
        if u is None:
            p = jnp.zeros((n, m, k), x.dtype)
        else:
            p = jnp.sum(z * u.reshape(n, 1, k, dd), axis=3)
        p = jax.nn.softmax(p, axis=2)
        u = jnp.sum(z * p.reshape(n, m, k, 1), axis=1) + xc
        if it < max_iter - 1:
            u = u / jnp.maximum(jnp.sqrt(jnp.sum(u * u, -1, keepdims=True)), eps)
    return u.reshape(n, d)


if __name__ == "__main__":
    # small shapes consistent with the module (n nodes, m neighbors each)
    n, d, k, m, max_iter = 10, 32, 4, 5, 3

    key = jax.random.PRNGKey(0)
    kx, kn = jax.random.split(key)
    x = jax.random.normal(kx, (n, d), dtype=jnp.float32)
    # neighbor indices in [0, n]; index n == zero padding row
    neighbors = jax.random.randint(kn, (n * m,), 0, n + 1, dtype=jnp.int32)

    layer = RoutingLayer(dim=d, num_caps=k)
    out = jax.block_until_ready(layer(x, neighbors, max_iter))

    ref = _routing_ref(x, neighbors, max_iter, k)
    np.testing.assert_allclose(np.asarray(out), np.asarray(ref),
                               rtol=1e-5, atol=1e-5)

    print("KERNEL_OK")
</pallas_src>

<mosaic_0001>
module attributes {stable_mosaic.version = 11 : i64} {
  func.func @_routing_kernel(%arg0: i32, %arg1: memref<4x8x8x128xf32, #tpu.memory_space<vmem>>, %arg2: memref<4x8x5x8x128xf32, #tpu.memory_space<vmem>>, %arg3: memref<4x8x8x128xf32, #tpu.memory_space<vmem>>) attributes {dimension_semantics = [#tpu.dimension_semantics<parallel>], iteration_bounds = array<i64: 1>, scalar_prefetch = 0 : i64, scratch_operands = 0 : i64, tpu.core_type = #tpu.core_type<tc>, window_params = [{transform_indices = @transform_0, window_bounds = array<i64: 4, 8, 8, 128>}, {transform_indices = @transform_1, window_bounds = array<i64: 4, 8, 5, 8, 128>}, {transform_indices = @transform_2, window_bounds = array<i64: 4, 8, 8, 128>}]} {
    %c0 = arith.constant 0 : index
    %c0_0 = arith.constant 0 : index
    %c0_1 = arith.constant 0 : index
    %c0_2 = arith.constant 0 : index
    %0 = vector.load %arg1[%c0, %c0_0, %c0_1, %c0_2] : memref<4x8x8x128xf32, #tpu.memory_space<vmem>>, vector<4x8x8x128xf32>
    %c0_3 = arith.constant 0 : index
    %c0_4 = arith.constant 0 : index
    %c0_5 = arith.constant 0 : index
    %c0_6 = arith.constant 0 : index
    %c0_7 = arith.constant 0 : index
    %1 = vector.load %arg2[%c0_3, %c0_4, %c0_5, %c0_6, %c0_7] : memref<4x8x5x8x128xf32, #tpu.memory_space<vmem>>, vector<4x8x5x8x128xf32>
    %cst = arith.constant dense<0.000000e+00> : vector<4x8x8x128xf32>
    %2 = vector.multi_reduction <add>, %1, %cst [2] : vector<4x8x5x8x128xf32> to vector<4x8x8x128xf32>
    %cst_8 = arith.constant 2.500000e-01 : f32
    %3 = vector.broadcast %cst_8 : f32 to vector<4x8x8x128xf32>
    %4 = arith.mulf %3, %2 : vector<4x8x8x128xf32>
    %5 = arith.addf %4, %0 : vector<4x8x8x128xf32>
    %c0_i32 = arith.constant 0 : i32
    %c2_i32 = arith.constant 2 : i32
    %6 = arith.addi %c0_i32, %c2_i32 : i32
    %c1_i32 = arith.constant 1 : i32
    %7 = scf.for %arg4 = %c0_i32 to %6 step %c1_i32 iter_args(%arg5 = %5) -> (vector<4x8x8x128xf32>)  : i32 {
      %9 = arith.mulf %arg5, %arg5 : vector<4x8x8x128xf32>
      %cst_13 = arith.constant dense<0.000000e+00> : vector<4x8x128xf32>
      %10 = vector.multi_reduction <add>, %9, %cst_13 [1] : vector<4x8x8x128xf32> to vector<4x8x128xf32>
      %11 = vector.shape_cast %10 : vector<4x8x128xf32> to vector<4x1x8x128xf32>
      %cst_14 = arith.constant 1.000000e-24 : f32
      %12 = vector.broadcast %cst_14 : f32 to vector<4x1x8x128xf32>
      %13 = arith.maximumf %11, %12 : vector<4x1x8x128xf32>
      %14 = math.rsqrt %13 : vector<4x1x8x128xf32>
      %15 = vector.broadcast %14 : vector<4x1x8x128xf32> to vector<4x8x8x128xf32>
      %16 = arith.mulf %arg5, %15 : vector<4x8x8x128xf32>
      %17 = vector.shape_cast %16 : vector<4x8x8x128xf32> to vector<4x8x1x8x128xf32>
      %18 = vector.broadcast %17 : vector<4x8x1x8x128xf32> to vector<4x8x5x8x128xf32>
      %19 = arith.mulf %1, %18 : vector<4x8x5x8x128xf32>
      %cst_15 = arith.constant dense<0.000000e+00> : vector<4x5x8x128xf32>
      %20 = vector.multi_reduction <add>, %19, %cst_15 [1] : vector<4x8x5x8x128xf32> to vector<4x5x8x128xf32>
      %21 = math.exp %20 : vector<4x5x8x128xf32>
      %cst_16 = arith.constant dense<0.000000e+00> : vector<5x8x128xf32>
      %22 = vector.multi_reduction <add>, %21, %cst_16 [0] : vector<4x5x8x128xf32> to vector<5x8x128xf32>
      %23 = vector.shape_cast %22 : vector<5x8x128xf32> to vector<1x5x8x128xf32>
      %24 = tpu.reciprocal %23 : vector<1x5x8x128xf32> -> vector<1x5x8x128xf32>
      %25 = vector.broadcast %24 : vector<1x5x8x128xf32> to vector<4x5x8x128xf32>
      %26 = arith.mulf %21, %25 : vector<4x5x8x128xf32>
      %27 = vector.shape_cast %26 : vector<4x5x8x128xf32> to vector<4x1x5x8x128xf32>
      %28 = vector.broadcast %27 : vector<4x1x5x8x128xf32> to vector<4x8x5x8x128xf32>
      %29 = arith.mulf %1, %28 : vector<4x8x5x8x128xf32>
      %cst_17 = arith.constant dense<0.000000e+00> : vector<4x8x8x128xf32>
      %30 = vector.multi_reduction <add>, %29, %cst_17 [2] : vector<4x8x5x8x128xf32> to vector<4x8x8x128xf32>
      %31 = arith.addf %30, %0 : vector<4x8x8x128xf32>
      scf.yield %31 : vector<4x8x8x128xf32>
    }
    %c0_9 = arith.constant 0 : index
    %c0_10 = arith.constant 0 : index
    %c0_11 = arith.constant 0 : index
    %c0_12 = arith.constant 0 : index
    %8 = vector.load %arg3[%c0_9, %c0_10, %c0_11, %c0_12] : memref<4x8x8x128xf32, #tpu.memory_space<vmem>>, vector<4x8x8x128xf32>
    tpu.vector_store %arg3[%c0_9, %c0_10, %c0_11, %c0_12], %7 {strides = array<i32>} : memref<4x8x8x128xf32, #tpu.memory_space<vmem>>, vector<4x8x8x128xf32>,
    return
  }
  func.func @transform_0(%arg0: i32) -> (i32, i32, i32, i32) {
    %c0_i32 = arith.constant 0 : i32
    %c0_i32_0 = arith.constant 0 : i32
    %c0_i32_1 = arith.constant 0 : i32
    %c0_i32_2 = arith.constant 0 : i32
    return %c0_i32, %c0_i32_0, %arg0, %c0_i32_1 : i32, i32, i32, i32
  }
  func.func @transform_1(%arg0: i32) -> (i32, i32, i32, i32, i32) {
    %c0_i32 = arith.constant 0 : i32
    %c0_i32_0 = arith.constant 0 : i32
    %c0_i32_1 = arith.constant 0 : i32
    %c0_i32_2 = arith.constant 0 : i32
    %c0_i32_3 = arith.constant 0 : i32
    return %c0_i32, %c0_i32_0, %c0_i32_1, %arg0, %c0_i32_2 : i32, i32, i32, i32, i32
  }
  func.func @transform_2(%arg0: i32) -> (i32, i32, i32, i32) {
    %c0_i32 = arith.constant 0 : i32
    %c0_i32_0 = arith.constant 0 : i32
    %c0_i32_1 = arith.constant 0 : i32
    %c0_i32_2 = arith.constant 0 : i32
    return %c0_i32, %c0_i32_0, %arg0, %c0_i32_1 : i32, i32, i32, i32
  }
}

</mosaic_0001>

<bundles_post_ra>
// kernel: tpu_custom_call.1
= control target key start
LH: loop header
LB: loop body
LE: loop exit
PB: predicated region body
PF: predicated region fallthrough
CT: control target
= control target key end

     0   :  { %7 = vsyncpa [#allocation3], 0  ;;  %s4945_s0 = inlined_call_operand.hbm [shape: f32[4,8,8,128], index: 0, kind: input, shape index: {}]   ;;  %s4946_s1 = inlined_call_operand.hbm [shape: f32[4,8,5,8,128], index: 1, kind: input, shape index: {}]   ;;  %s4947_s2 = inlined_call_operand.hbm [shape: f32[4,8,8,128], index: 2, kind: output, shape index: {}]  }
   0x1   :  { %8 = vsyncpa [#allocation6], 0 }
   0x2   :  { %9 = vsyncpa [#allocation4], 0  ;;  %s2076_s9 = smov [#allocation2]   ;;  %s1740_s13 = scalar_lea.hbm %s4945_s0, 4096 }
   0x3   :  { %s15_s10 = sshll.u32 %s2076_s9, 4  ;;  %p1741_p0 = scmp.ne.s32.totalorder %s4945_s0, %s1740_s13  ;;  %s16_s10 = int_to_ptr.vmem [resolvable:$true] %s15_s10 }
   0x4   :  { %p1744_p1 = scmp.lt.u32.totalorder %s1740_s13, %s4945_s0 }
   0x6   :  { %p1746_p2 = pnand %p1744_p1, %p1741_p0 }
   0x8   :  { %1749 = shalt.err (!%p1746_p2)
}
   0x9   :  { %s1750_s18 = scalar_lea.vmem %s16_s10, 4096  ;;  %p1755_p4 = scmp.lt.s32.totalorder %s16_s10, %s16_s10 }
   0xa   :  { %p1751_p3 = scmp.ne.s32.totalorder %s16_s10, %s1750_s18  ;;  %p1756_p5 = scmp.lt.s32.totalorder %s1750_s18, %s1750_s18 }
   0xc   :  { %p1757_p6 = por %p1756_p5, %p1755_p4 }
   0xe   :  { %p1758_p7 = pnand %p1757_p6, %p1751_p3 }
  0x10   :  { %1761 = shalt.err (!%p1758_p7)
}
  0x11   :  { %s2077_s19 = smov 128   ;;  %s2078_s20 = smov 8  }
  0x12   :  { %21 = dma.hbm_to_vmem [thread:$0]  %s4945_s0, 4096, %s16_s10, [#allocation3], %s2077_s19, %s2077_s19, %s2078_s20  }
  0x13   :  { %s2079_s23 = smov [#allocation5]   ;;  %s1762_s27 = scalar_lea.hbm %s4946_s1, 20480 }
  0x14   :  { %s27_s24 = sshll.u32 %s2079_s23, 4  ;;  %p1763_p8 = scmp.ne.s32.totalorder %s4946_s1, %s1762_s27  ;;  %s28_s24 = int_to_ptr.vmem [resolvable:$true] %s27_s24 }
  0x15   :  { %p1766_p9 = scmp.lt.u32.totalorder %s1762_s27, %s4946_s1 }
  0x17   :  { %p1768_p10 = pnand %p1766_p9, %p1763_p8 }
  0x19   :  { %1771 = shalt.err (!%p1768_p10)
}
  0x1a   :  { %s1772_s4 = scalar_lea.vmem %s28_s24, 20480  ;;  %p1777_p12 = scmp.lt.s32.totalorder %s28_s24, %s28_s24 }
  0x1b   :  { %p1773_p11 = scmp.ne.s32.totalorder %s28_s24, %s1772_s4  ;;  %p1778_p13 = scmp.lt.s32.totalorder %s1772_s4, %s1772_s4 }
  0x1d   :  { %p1779_p0 = por %p1778_p13, %p1777_p12 }
  0x1f   :  { %p1780_p1 = pnand %p1779_p0, %p1773_p11 }
  0x21   :  { %1783 = shalt.err (!%p1780_p1)
}
  0x22   :  { %33 = dma.hbm_to_vmem [thread:$0]  %s4946_s1, 20480, %s28_s24, [#allocation6], %s2077_s19, %s2077_s19, %s2078_s20  }
  0x23   :  { %1938 = dma.done.wait [#allocation3], 4096  }
  0x24   :  { %1939 = vsyncadd [#allocation3], 4294963200 }
  0x25   :  { %1940 = dma.done.wait [#allocation6], 20480  }
  0x26   :  { %1941 = vsyncadd [#allocation6], 4294946816  ;;  %v2126_v0 = vld [vmem:[#allocation5] sm:$0xff]  ;;  %v2128_v1 = vld [vmem:[#allocation5 + $0x8] sm:$0xff]  ;;  %s2835_s1 = smov 0  }
  0x27   :  { %5297 = vst [vmem:[#allocation11_spill] sm:$0xff] %v2126_v0  ;;  %5298 = vst [vmem:[#allocation12_spill] sm:$0xff] %v2128_v1  ;;  %v2130_v2 = vld [vmem:[#allocation5 + $0x10] sm:$0xff]  ;;  %v2132_v3 = vld [vmem:[#allocation5 + $0x28] sm:$0xff]  ;;  %v232_v5 = vadd.f32 %v2128_v1, %v2126_v0 }
  0x28   :  { %5299 = vst [vmem:[#allocation13_spill] sm:$0xff] %v2130_v2  ;;  %5300 = vst [vmem:[#allocation14_spill] sm:$0xff] %v2132_v3  ;;  %v2134_v4 = vld [vmem:[#allocation5 + $0x30] sm:$0xff]  ;;  %v2138_v6 = vld [vmem:[#allocation5 + $0x18] sm:$0xff] }
  0x29   :  { %5301 = vst [vmem:[#allocation15_spill] sm:$0xff] %v2134_v4  ;;  %5302 = vst [vmem:[#allocation16_spill] sm:$0xff] %v2138_v6  ;;  %v2140_v7 = vld [vmem:[#allocation5 + $0x38] sm:$0xff]  ;;  %v2142_v8 = vld [vmem:[#allocation5 + $0x40] sm:$0xff]  ;;  %v236_v9 = vadd.f32 %v2134_v4, %v2132_v3  ;;  %v233_v13 = vadd.f32 %v232_v5, %v2130_v2 }
  0x2a   :  { %5303 = vst [vmem:[#allocation17_spill] sm:$0xff] %v2140_v7  ;;  %5304 = vst [vmem:[#allocation18_spill] sm:$0xff] %v2142_v8  ;;  %v2146_v10 = vld [vmem:[#allocation5 + $0x50] sm:$0xff]  ;;  %v2148_v11 = vld [vmem:[#allocation5 + $0x58] sm:$0xff] }
  0x2b   :  { %5305 = vst [vmem:[#allocation19_spill] sm:$0xff] %v2146_v10  ;;  %5306 = vst [vmem:[#allocation20_spill] sm:$0xff] %v2148_v11  ;;  %v2150_v12 = vld [vmem:[#allocation5 + $0x60] sm:$0xff]  ;;  %v2155_v15 = vld [vmem:[#allocation5 + $0x48] sm:$0xff]  ;;  %v237_v17 = vadd.f32 %v236_v9, %v2140_v7  ;;  %v240_v18 = vadd.f32 %v2148_v11, %v2146_v10  ;;  %v234_v22 = vadd.f32 %v233_v13, %v2138_v6 }
  0x2c   :  { %5307 = vst [vmem:[#allocation21_spill] sm:$0xff] %v2150_v12  ;;  %v2153_v14 = vld [vmem:[#allocation5 + $0x20] sm:$0xff]  ;;  %5309 = vst [vmem:[#allocation23_spill] sm:$0xff] %v2155_v15  ;;  %v2157_v16 = vld [vmem:[#allocation5 + $0x78] sm:$0xff] }
  0x2d   :  { %5308 = vst [vmem:[#allocation22_spill] sm:$0xff] %v2153_v14  ;;  %5310 = vst [vmem:[#allocation24_spill] sm:$0xff] %v2157_v16  ;;  %v2162_v19 = vld [vmem:[#allocation5 + $0x68] sm:$0xff]  ;;  %v2164_v20 = vld [vmem:[#allocation5 + $0x80] sm:$0xff]  ;;  %v238_v27 = vadd.f32 %v237_v17, %v2142_v8  ;;  %v241_v28 = vadd.f32 %v240_v18, %v2150_v12  ;;  %v235_v34 = vadd.f32 %v234_v22, %v2153_v14 }
  0x2e   :  { %5311 = vst [vmem:[#allocation25_spill] sm:$0xff] %v2162_v19  ;;  %5312 = vst [vmem:[#allocation26_spill] sm:$0xff] %v2164_v20  ;;  %v2166_v21 = vld [vmem:[#allocation5 + $0x88] sm:$0xff]  ;;  %v2169_v23 = vld [vmem:[#allocation2] sm:$0xff]  ;;  %v244_v29 = vadd.f32 %v2164_v20, %v2157_v16 }
  0x2f   :  { %5313 = vst [vmem:[#allocation27_spill] sm:$0xff] %v2166_v21  ;;  %5314 = vst [vmem:[#allocation28_spill] sm:$0xff] %v2169_v23  ;;  %v2171_v24 = vld [vmem:[#allocation5 + $0x70] sm:$0xff]  ;;  %v2173_v25 = vld [vmem:[#allocation5 + $0xa0] sm:$0xff]  ;;  %v239_v39 = vadd.f32 %v238_v27, %v2155_v15  ;;  %v242_v40 = vadd.f32 %v241_v28, %v2162_v19  ;;  %v360_v48 = vmul.f32 0.25, %v235_v34 }
  0x30   :  { %5315 = vst [vmem:[#allocation29_spill] sm:$0xff] %v2171_v24  ;;  %5316 = vst [vmem:[#allocation30_spill] sm:$0xff] %v2173_v25  ;;  %v2175_v26 = vld [vmem:[#allocation5 + $0xa8] sm:$0xff]  ;;  %v2183_v31 = vld [vmem:[#allocation5 + $0x90] sm:$0xff]  ;;  %v245_v41 = vadd.f32 %v244_v29, %v2166_v21 }
  0x31   :  { %5317 = vst [vmem:[#allocation31_spill] sm:$0xff] %v2175_v26  ;;  %v2181_v30 = vld [vmem:[#allocation2 + $0x8] sm:$0xff]  ;;  %5319 = vst [vmem:[#allocation33_spill] sm:$0xff] %v2183_v31  ;;  %v2185_v32 = vld [vmem:[#allocation5 + $0xb0] sm:$0xff]  ;;  %v248_v35 = vadd.f32 %v2175_v26, %v2173_v25  ;;  %v243_v52 = vadd.f32 %v242_v40, %v2171_v24  ;;  %v361_v54 = vmul.f32 0.25, %v239_v39  ;;  %v2233_v62 = vadd.f32 %v360_v48, %v2169_v23  }
  0x32   :  { %5318 = vst [vmem:[#allocation32_spill] sm:$0xff] %v2181_v30  ;;  %5320 = vst [vmem:[#allocation34_spill] sm:$0xff] %v2185_v32  ;;  %v2187_v33 = vld [vmem:[#allocation5 + $0xb8] sm:$0xff]  ;;  %v2192_v36 = vld [vmem:[#allocation5 + $0xc8] sm:$0xff]  ;;  %v246_v53 = vadd.f32 %v245_v41, %v2183_v31 }
  0x33   :  { %5321 = vst [vmem:[#allocation35_spill] sm:$0xff] %v2187_v33  ;;  %5322 = vst [vmem:[#allocation36_spill] sm:$0xff] %v2192_v36  ;;  %v2194_v37 = vld [vmem:[#allocation5 + $0xd0] sm:$0xff]  ;;  %v2196_v38 = vld [vmem:[#allocation5 + $0xd8] sm:$0xff]  ;;  %v249_v46 = vadd.f32 %v248_v35, %v2185_v32  ;;  %v362_v22 = vmul.f32 0.25, %v243_v52  ;;  %v2247_v27 = vadd.f32 %v361_v54, %v2181_v30  }
  0x34   :  { %5323 = vst [vmem:[#allocation37_spill] sm:$0xff] %v2194_v37  ;;  %5324 = vst [vmem:[#allocation38_spill] sm:$0xff] %v2196_v38  ;;  %v2201_v42 = vld [vmem:[#allocation2 + $0x10] sm:$0xff]  ;;  %v2203_v43 = vld [vmem:[#allocation5 + $0x98] sm:$0xff]  ;;  %v252_v47 = vadd.f32 %v2194_v37, %v2192_v36 }
  0x35   :  { %5325 = vst [vmem:[#allocation39_spill] sm:$0xff] %v2201_v42  ;;  %5326 = vst [vmem:[#allocation40_spill] sm:$0xff] %v2203_v43  ;;  %v2205_v44 = vld [vmem:[#allocation5 + $0xc0] sm:$0xff]  ;;  %v2207_v45 = vld [vmem:[#allocation5 + $0xf0] sm:$0xff]  ;;  %v250_v59 = vadd.f32 %v249_v46, %v2187_v33  ;;  %v247_v17 = vadd.f32 %v246_v53, %v2203_v43 }
  0x36   :  { %5327 = vst [vmem:[#allocation41_spill] sm:$0xff] %v2205_v44  ;;  %5328 = vst [vmem:[#allocation42_spill] sm:$0xff] %v2207_v45  ;;  %v2212_v49 = vld [vmem:[#allocation5 + $0xe0] sm:$0xff]  ;;  %v2214_v50 = vld [vmem:[#allocation5 + $0xf8] sm:$0xff]  ;;  %v253_v60 = vadd.f32 %v252_v47, %v2196_v38 }
  0x37   :  { %5329 = vst [vmem:[#allocation43_spill] sm:$0xff] %v2212_v49  ;;  %5330 = vst [vmem:[#allocation44_spill] sm:$0xff] %v2214_v50  ;;  %v2216_v51 = vld [vmem:[#allocation5 + $0x100] sm:$0xff]  ;;  %v2220_v55 = vld [vmem:[#allocation2 + $0x18] sm:$0xff]  ;;  %v256_v61 = vadd.f32 %v2214_v50, %v2207_v45  ;;  %v251_v35 = vadd.f32 %v250_v59, %v2205_v44  ;;  %v363_v54 = vmul.f32 0.25, %v247_v17  ;;  %v2270_v59 = vadd.f32 %v362_v22, %v2201_v42  }
  0x38   :  { %5331 = vst [vmem:[#allocation45_spill] sm:$0xff] %v2216_v51  ;;  %5332 = vst [vmem:[#allocation46_spill] sm:$0xff] %v2220_v55  ;;  %v2222_v56 = vld [vmem:[#allocation5 + $0xe8] sm:$0xff]  ;;  %v2224_v57 = vld [vmem:[#allocation5 + $0x118] sm:$0xff]  ;;  %v254_v39 = vadd.f32 %v253_v60, %v2212_v49 }
  0x39   :  { %5333 = vst [vmem:[#allocation47_spill] sm:$0xff] %v2222_v56  ;;  %5334 = vst [vmem:[#allocation48_spill] sm:$0xff] %v2224_v57  ;;  %v2226_v58 = vld [vmem:[#allocation5 + $0x120] sm:$0xff]  ;;  %v2237_v5 = vld [vmem:[#allocation5 + $0x108] sm:$0xff]  ;;  %v257_v40 = vadd.f32 %v256_v61, %v2216_v51 }
  0x3a   :  { %5335 = vst [vmem:[#allocation49_spill] sm:$0xff] %v2226_v58  ;;  %v2235_v63 = vld [vmem:[#allocation2 + $0x20] sm:$0xff]  ;;  %5337 = vst [vmem:[#allocation51_spill] sm:$0xff] %v2237_v5  ;;  %v2239_v9 = vld [vmem:[#allocation5 + $0x128] sm:$0xff]  ;;  %v260_v18 = vadd.f32 %v2226_v58, %v2224_v57  ;;  %v255_v23 = vadd.f32 %v254_v39, %v2222_v56  ;;  %v364_v57 = vmul.f32 0.25, %v251_v35  ;;  %v2293_v39 = vadd.f32 %v363_v54, %v2220_v55  }
  0x3b   :  { %5336 = vst [vmem:[#allocation50_spill] sm:$0xff] %v2235_v63  ;;  %5338 = vst [vmem:[#allocation52_spill] sm:$0xff] %v2239_v9  ;;  %v2241_v13 = vld [vmem:[#allocation5 + $0x130] sm:$0xff]  ;;  %v2249_v28 = vld [vmem:[#allocation5 + $0x140] sm:$0xff]  ;;  %v258_v58 = vadd.f32 %v257_v40, %v2237_v5 }
  0x3c   :  { %5339 = vst [vmem:[#allocation53_spill] sm:$0xff] %v2241_v13  ;;  %5340 = vst [vmem:[#allocation54_spill] sm:$0xff] %v2249_v28  ;;  %v2251_v29 = vld [vmem:[#allocation5 + $0x148] sm:$0xff]  ;;  %v2253_v34 = vld [vmem:[#allocation5 + $0x150] sm:$0xff]  ;;  %v261_v52 = vadd.f32 %v260_v18, %v2239_v9 }
  0x3d   :  { %5341 = vst [vmem:[#allocation55_spill] sm:$0xff] %v2251_v29  ;;  %5342 = vst [vmem:[#allocation56_spill] sm:$0xff] %v2253_v34  ;;  %v2258_v41 = vld [vmem:[#allocation2 + $0x28] sm:$0xff]  ;;  %v2260_v46 = vld [vmem:[#allocation5 + $0x110] sm:$0xff]  ;;  %v264_v53 = vadd.f32 %v2251_v29, %v2249_v28 }
  0x3e   :  { %5343 = vst [vmem:[#allocation57_spill] sm:$0xff] %v2258_v41  ;;  %5344 = vst [vmem:[#allocation58_spill] sm:$0xff] %v2260_v46  ;;  %v2262_v47 = vld [vmem:[#allocation5 + $0x138] sm:$0xff]  ;;  %v2264_v48 = vld [vmem:[#allocation5 + $0x168] sm:$0xff]  ;;  %v262_v22 = vadd.f32 %v261_v52, %v2241_v13  ;;  %v259_v50 = vadd.f32 %v258_v58, %v2260_v46 }
  0x3f   :  { %5345 = vst [vmem:[#allocation59_spill] sm:$0xff] %v2262_v47  ;;  %5346 = vst [vmem:[#allocation60_spill] sm:$0xff] %v2264_v48  ;;  %v2272_v60 = vld [vmem:[#allocation5 + $0x158] sm:$0xff]  ;;  %v2274_v61 = vld [vmem:[#allocation5 + $0x170] sm:$0xff]  ;;  %v265_v42 = vadd.f32 %v264_v53, %v2253_v34  ;;  %v365_v53 = vmul.f32 0.25, %v255_v23  ;;  %v2307_v34 = vadd.f32 %v364_v57, %v2235_v63  }
  0x40   :  { %5347 = vst [vmem:[#allocation61_spill] sm:$0xff] %v2272_v60  ;;  %5348 = vst [vmem:[#allocation62_spill] sm:$0xff] %v2274_v61  ;;  %v2276_v30 = vld [vmem:[#allocation5 + $0x178] sm:$0xff]  ;;  %v2280_v51 = vld [vmem:[#allocation2 + $0x30] sm:$0xff]  ;;  %v268_v28 = vadd.f32 %v2274_v61, %v2264_v48  ;;  %v263_v48 = vadd.f32 %v262_v22, %v2262_v47 }
  0x41   :  { %5349 = vst [vmem:[#allocation63_spill] sm:$0xff] %v2276_v30  ;;  %5350 = vst [vmem:[#allocation64_spill] sm:$0xff] %v2280_v51  ;;  %v2282_v18 = vld [vmem:[#allocation5 + $0x160] sm:$0xff]  ;;  %v2284_v29 = vld [vmem:[#allocation5 + $0x190] sm:$0xff]  ;;  %v266_v13 = vadd.f32 %v265_v42, %v2272_v60  ;;  %v2330_v22 = vadd.f32 %v365_v53, %v2258_v41  }
  0x42   :  { %5351 = vst [vmem:[#allocation65_spill] sm:$0xff] %v2282_v18  ;;  %5352 = vst [vmem:[#allocation66_spill] sm:$0xff] %v2284_v29  ;;  %v2286_v17 = vld [vmem:[#allocation5 + $0x198] sm:$0xff]  ;;  %v2297_v35 = vld [vmem:[#allocation5 + $0x180] sm:$0xff]  ;;  %v269_v45 = vadd.f32 %v268_v28, %v2276_v30  ;;  %v367_v56 = vmul.f32 0.25, %v263_v48 }
  0x43   :  { %5353 = vst [vmem:[#allocation67_spill] sm:$0xff] %v2286_v17  ;;  %v2295_v40 = vld [vmem:[#allocation2 + $0x38] sm:$0xff]  ;;  %5355 = vst [vmem:[#allocation69_spill] sm:$0xff] %v2297_v35  ;;  %v2299_v9 = vld [vmem:[#allocation5 + $0x1a0] sm:$0xff]  ;;  %v272_v52 = vadd.f32 %v2286_v17, %v2284_v29  ;;  %v366_v29 = vmul.f32 0.25, %v259_v50  ;;  %v267_v60 = vadd.f32 %v266_v13, %v2282_v18 }
  0x44   :  { %5354 = vst [vmem:[#allocation68_spill] sm:$0xff] %v2295_v40  ;;  %5356 = vst [vmem:[#allocation70_spill] sm:$0xff] %v2299_v9  ;;  %v2301_v5 = vld [vmem:[#allocation5 + $0x1a8] sm:$0xff]  ;;  %v2309_v61 = vld [vmem:[#allocation5 + $0x1b8] sm:$0xff]  ;;  %v270_v47 = vadd.f32 %v269_v45, %v2297_v35 }
  0x45   :  { %5357 = vst [vmem:[#allocation71_spill] sm:$0xff] %v2301_v5  ;;  %5358 = vst [vmem:[#allocation72_spill] sm:$0xff] %v2309_v61  ;;  %v2311_v54 = vld [vmem:[#allocation5 + $0x1c0] sm:$0xff]  ;;  %v2313_v55 = vld [vmem:[#allocation5 + $0x1c8] sm:$0xff]  ;;  %v273_v63 = vadd.f32 %v272_v52, %v2299_v9  ;;  %v2353_v13 = vadd.f32 %v366_v29, %v2280_v51  }
  0x46   :  { %5359 = vst [vmem:[#allocation73_spill] sm:$0xff] %v2311_v54  ;;  %5360 = vst [vmem:[#allocation74_spill] sm:$0xff] %v2313_v55  ;;  %v2318_v58 = vld [vmem:[#allocation2 + $0x40] sm:$0xff]  ;;  %v2320_v46 = vld [vmem:[#allocation5 + $0x188] sm:$0xff]  ;;  %v276_v17 = vadd.f32 %v2311_v54, %v2309_v61 }
  0x47   :  { %5361 = vst [vmem:[#allocation75_spill] sm:$0xff] %v2318_v58  ;;  %5362 = vst [vmem:[#allocation76_spill] sm:$0xff] %v2320_v46  ;;  %v2322_v23 = vld [vmem:[#allocation5 + $0x1b0] sm:$0xff]  ;;  %v2324_v57 = vld [vmem:[#allocation5 + $0x1e0] sm:$0xff]  ;;  %v274_v53 = vadd.f32 %v273_v63, %v2301_v5  ;;  %v271_v18 = vadd.f32 %v270_v47, %v2320_v46 }
  0x48   :  { %5363 = vst [vmem:[#allocation77_spill] sm:$0xff] %v2322_v23  ;;  %5364 = vst [vmem:[#allocation78_spill] sm:$0xff] %v2324_v57  ;;  %v2332_v42 = vld [vmem:[#allocation5 + $0x1d0] sm:$0xff]  ;;  %v2334_v28 = vld [vmem:[#allocation5 + $0x1e8] sm:$0xff]  ;;  %v277_v41 = vadd.f32 %v276_v17, %v2313_v55  ;;  %v368_v17 = vmul.f32 0.25, %v267_v60  ;;  %v2367_v55 = vadd.f32 %v367_v56, %v2295_v40  }
  0x49   :  { %5365 = vst [vmem:[#allocation79_spill] sm:$0xff] %v2332_v42  ;;  %5366 = vst [vmem:[#allocation80_spill] sm:$0xff] %v2334_v28  ;;  %v2336_v30 = vld [vmem:[#allocation5 + $0x1f0] sm:$0xff]  ;;  %v2340_v49 = vld [vmem:[#allocation2 + $0x48] sm:$0xff]  ;;  %v280_v61 = vadd.f32 %v2334_v28, %v2324_v57  ;;  %v275_v57 = vadd.f32 %v274_v53, %v2322_v23 }
  0x4a   :  { %5367 = vst [vmem:[#allocation81_spill] sm:$0xff] %v2336_v30  ;;  %5368 = vst [vmem:[#allocation82_spill] sm:$0xff] %v2340_v49  ;;  %v2342_v52 = vld [vmem:[#allocation5 + $0x1d8] sm:$0xff]  ;;  %v2344_v54 = vld [vmem:[#allocation5 + $0x208] sm:$0xff]  ;;  %v278_v5 = vadd.f32 %v277_v41, %v2332_v42  ;;  %v2390_v53 = vadd.f32 %v368_v17, %v2318_v58  }
  0x4b   :  { %5369 = vst [vmem:[#allocation83_spill] sm:$0xff] %v2342_v52  ;;  %5370 = vst [vmem:[#allocation84_spill] sm:$0xff] %v2344_v54  ;;  %v2346_v50 = vld [vmem:[#allocation5 + $0x210] sm:$0xff]  ;;  %v2357_v48 = vld [vmem:[#allocation5 + $0x1f8] sm:$0xff]  ;;  %v281_v38 = vadd.f32 %v280_v61, %v2336_v30  ;;  %v370_v37 = vmul.f32 0.25, %v275_v57 }
  0x4c   :  { %5371 = vst [vmem:[#allocation85_spill] sm:$0xff] %v2346_v50  ;;  %v2355_v45 = vld [vmem:[#allocation2 + $0x50] sm:$0xff]  ;;  %5373 = vst [vmem:[#allocation87_spill] sm:$0xff] %v2357_v48  ;;  %v2359_v9 = vld [vmem:[#allocation5 + $0x218] sm:$0xff]  ;;  %v284_v63 = vadd.f32 %v2346_v50, %v2344_v54  ;;  %v369_v54 = vmul.f32 0.25, %v271_v18  ;;  %v279_v42 = vadd.f32 %v278_v5, %v2342_v52 }
  0x4d   :  { %5372 = vst [vmem:[#allocation86_spill] sm:$0xff] %v2355_v45  ;;  %5374 = vst [vmem:[#allocation88_spill] sm:$0xff] %v2359_v9  ;;  %v2361_v35 = vld [vmem:[#allocation5 + $0x220] sm:$0xff]  ;;  %v2369_v28 = vld [vmem:[#allocation5 + $0x230] sm:$0xff]  ;;  %v282_v23 = vadd.f32 %v281_v38, %v2357_v48 }
  0x4e   :  { %5375 = vst [vmem:[#allocation89_spill] sm:$0xff] %v2361_v35  ;;  %5376 = vst [vmem:[#allocation90_spill] sm:$0xff] %v2369_v28  ;;  %v2371_v29 = vld [vmem:[#allocation5 + $0x238] sm:$0xff]  ;;  %v2373_v51 = vld [vmem:[#allocation5 + $0x240] sm:$0xff]  ;;  %v285_v40 = vadd.f32 %v284_v63, %v2359_v9  ;;  %v2413_v5 = vadd.f32 %v369_v54, %v2340_v49  }
  0x4f   :  { %5377 = vst [vmem:[#allocation91_spill] sm:$0xff] %v2371_v29  ;;  %5378 = vst [vmem:[#allocation92_spill] sm:$0xff] %v2373_v51  ;;  %v2378_v47 = vld [vmem:[#allocation2 + $0x58] sm:$0xff]  ;;  %v2380_v46 = vld [vmem:[#allocation5 + $0x200] sm:$0xff]  ;;  %v288_v50 = vadd.f32 %v2371_v29, %v2369_v28 }
  0x50   :  { %5379 = vst [vmem:[#allocation93_spill] sm:$0xff] %v2378_v47  ;;  %5380 = vst [vmem:[#allocation94_spill] sm:$0xff] %v2380_v46  ;;  %v2382_v60 = vld [vmem:[#allocation5 + $0x228] sm:$0xff]  ;;  %v2384_v56 = vld [vmem:[#allocation5 + $0x258] sm:$0xff]  ;;  %v286_v17 = vadd.f32 %v285_v40, %v2361_v35  ;;  %v283_v52 = vadd.f32 %v282_v23, %v2380_v46 }
  0x51   :  { %5381 = vst [vmem:[#allocation95_spill] sm:$0xff] %v2382_v60  ;;  %5382 = vst [vmem:[#allocation96_spill] sm:$0xff] %v2384_v56  ;;  %v2392_v41 = vld [vmem:[#allocation5 + $0x248] sm:$0xff]  ;;  %v2394_v61 = vld [vmem:[#allocation5 + $0x260] sm:$0xff]  ;;  %v289_v58 = vadd.f32 %v288_v50, %v2373_v51  ;;  %v371_v50 = vmul.f32 0.25, %v279_v42  ;;  %v2427_v51 = vadd.f32 %v370_v37, %v2355_v45  }
  0x52   :  { %5383 = vst [vmem:[#allocation97_spill] sm:$0xff] %v2392_v41  ;;  %5384 = vst [vmem:[#allocation98_spill] sm:$0xff] %v2394_v61  ;;  %v2396_v30 = vld [vmem:[#allocation5 + $0x268] sm:$0xff]  ;;  %v2400_v36 = vld [vmem:[#allocation2 + $0x60] sm:$0xff]  ;;  %v292_v28 = vadd.f32 %v2394_v61, %v2384_v56  ;;  %v287_v56 = vadd.f32 %v286_v17, %v2382_v60 }
  0x53   :  { %5385 = vst [vmem:[#allocation99_spill] sm:$0xff] %v2396_v30  ;;  %5386 = vst [vmem:[#allocation100_spill] sm:$0xff] %v2400_v36  ;;  %v2402_v63 = vld [vmem:[#allocation5 + $0x250] sm:$0xff]  ;;  %v2404_v29 = vld [vmem:[#allocation5 + $0x280] sm:$0xff]  ;;  %v290_v35 = vadd.f32 %v289_v58, %v2392_v41  ;;  %v2450_v17 = vadd.f32 %v371_v50, %v2378_v47  }
  0x54   :  { %5387 = vst [vmem:[#allocation101_spill] sm:$0xff] %v2402_v63  ;;  %5388 = vst [vmem:[#allocation102_spill] sm:$0xff] %v2404_v29  ;;  %v2406_v18 = vld [vmem:[#allocation5 + $0x288] sm:$0xff]  ;;  %v2417_v57 = vld [vmem:[#allocation5 + $0x270] sm:$0xff]  ;;  %v293_v44 = vadd.f32 %v292_v28, %v2396_v30  ;;  %v373_v33 = vmul.f32 0.25, %v287_v56 }
  0x55   :  { %5389 = vst [vmem:[#allocation103_spill] sm:$0xff] %v2406_v18  ;;  %v2415_v38 = vld [vmem:[#allocation2 + $0x68] sm:$0xff]  ;;  %5391 = vst [vmem:[#allocation105_spill] sm:$0xff] %v2417_v57  ;;  %v2419_v9 = vld [vmem:[#allocation5 + $0x290] sm:$0xff]  ;;  %v296_v40 = vadd.f32 %v2406_v18, %v2404_v29  ;;  %v372_v29 = vmul.f32 0.25, %v283_v52  ;;  %v291_v41 = vadd.f32 %v290_v35, %v2402_v63 }
  0x56   :  { %5390 = vst [vmem:[#allocation104_spill] sm:$0xff] %v2415_v38  ;;  %5392 = vst [vmem:[#allocation106_spill] sm:$0xff] %v2419_v9  ;;  %v2421_v48 = vld [vmem:[#allocation5 + $0x298] sm:$0xff]  ;;  %v2429_v61 = vld [vmem:[#allocation5 + $0x2a8] sm:$0xff]  ;;  %v294_v60 = vadd.f32 %v293_v44, %v2417_v57 }
  0x57   :  { %5393 = vst [vmem:[#allocation107_spill] sm:$0xff] %v2421_v48  ;;  %5394 = vst [vmem:[#allocation108_spill] sm:$0xff] %v2429_v61  ;;  %v2431_v54 = vld [vmem:[#allocation5 + $0x2b0] sm:$0xff]  ;;  %v2433_v49 = vld [vmem:[#allocation5 + $0x2b8] sm:$0xff]  ;;  %v297_v45 = vadd.f32 %v296_v40, %v2419_v9  ;;  %v2473_v35 = vadd.f32 %v372_v29, %v2400_v36  }
  0x58   :  { %5395 = vst [vmem:[#allocation109_spill] sm:$0xff] %v2431_v54  ;;  %5396 = vst [vmem:[#allocation110_spill] sm:$0xff] %v2433_v49  ;;  %v2438_v23 = vld [vmem:[#allocation2 + $0x70] sm:$0xff]  ;;  %v2440_v46 = vld [vmem:[#allocation5 + $0x278] sm:$0xff]  ;;  %v300_v18 = vadd.f32 %v2431_v54, %v2429_v61 }
  0x59   :  { %5397 = vst [vmem:[#allocation111_spill] sm:$0xff] %v2438_v23  ;;  %5398 = vst [vmem:[#allocation112_spill] sm:$0xff] %v2440_v46  ;;  %v2442_v42 = vld [vmem:[#allocation5 + $0x2a0] sm:$0xff]  ;;  %v2444_v37 = vld [vmem:[#allocation5 + $0x2d0] sm:$0xff]  ;;  %v298_v50 = vadd.f32 %v297_v45, %v2421_v48  ;;  %v295_v63 = vadd.f32 %v294_v60, %v2440_v46 }
  0x5a   :  { %5399 = vst [vmem:[#allocation113_spill] sm:$0xff] %v2442_v42  ;;  %5400 = vst [vmem:[#allocation114_spill] sm:$0xff] %v2444_v37  ;;  %v2452_v58 = vld [vmem:[#allocation5 + $0x2c0] sm:$0xff]  ;;  %v2454_v28 = vld [vmem:[#allocation5 + $0x2d8] sm:$0xff]  ;;  %v301_v47 = vadd.f32 %v300_v18, %v2433_v49  ;;  %v374_v18 = vmul.f32 0.25, %v291_v41  ;;  %v2487_v49 = vadd.f32 %v373_v33, %v2415_v38  }
  0x5b   :  { %5401 = vst [vmem:[#allocation115_spill] sm:$0xff] %v2452_v58  ;;  %5402 = vst [vmem:[#allocation116_spill] sm:$0xff] %v2454_v28  ;;  %v2456_v30 = vld [vmem:[#allocation5 + $0x2e0] sm:$0xff]  ;;  %v2460_v32 = vld [vmem:[#allocation2 + $0x78] sm:$0xff]  ;;  %v304_v61 = vadd.f32 %v2454_v28, %v2444_v37  ;;  %v299_v37 = vadd.f32 %v298_v50, %v2442_v42 }
  0x5c   :  { %5403 = vst [vmem:[#allocation117_spill] sm:$0xff] %v2456_v30  ;;  %5404 = vst [vmem:[#allocation118_spill] sm:$0xff] %v2460_v32  ;;  %v2462_v40 = vld [vmem:[#allocation5 + $0x2c8] sm:$0xff]  ;;  %v2464_v54 = vld [vmem:[#allocation5 + $0x2f8] sm:$0xff]  ;;  %v302_v48 = vadd.f32 %v301_v47, %v2452_v58  ;;  %v2510_v50 = vadd.f32 %v374_v18, %v2438_v23  }
  0x5d   :  { %5405 = vst [vmem:[#allocation119_spill] sm:$0xff] %v2462_v40  ;;  %5406 = vst [vmem:[#allocation120_spill] sm:$0xff] %v2464_v54  ;;  %v2466_v52 = vld [vmem:[#allocation5 + $0x300] sm:$0xff]  ;;  %v2477_v56 = vld [vmem:[#allocation5 + $0x2e8] sm:$0xff]  ;;  %v305_v26 = vadd.f32 %v304_v61, %v2456_v30  ;;  %v376_v25 = vmul.f32 0.25, %v299_v37 }
  0x5e   :  { %5407 = vst [vmem:[#allocation121_spill] sm:$0xff] %v2466_v52  ;;  %v2475_v44 = vld [vmem:[#allocation2 + $0x80] sm:$0xff]  ;;  %5409 = vst [vmem:[#allocation123_spill] sm:$0xff] %v2477_v56  ;;  %v2479_v9 = vld [vmem:[#allocation5 + $0x308] sm:$0xff]  ;;  %v308_v45 = vadd.f32 %v2466_v52, %v2464_v54  ;;  %v375_v54 = vmul.f32 0.25, %v295_v63  ;;  %v303_v58 = vadd.f32 %v302_v48, %v2462_v40 }
  0x5f   :  { %5408 = vst [vmem:[#allocation122_spill] sm:$0xff] %v2475_v44  ;;  %5410 = vst [vmem:[#allocation124_spill] sm:$0xff] %v2479_v9  ;;  %v2481_v57 = vld [vmem:[#allocation5 + $0x310] sm:$0xff]  ;;  %v2489_v28 = vld [vmem:[#allocation5 + $0x320] sm:$0xff]  ;;  %v306_v42 = vadd.f32 %v305_v26, %v2477_v56 }
  0x60   :  { %5411 = vst [vmem:[#allocation125_spill] sm:$0xff] %v2481_v57  ;;  %5412 = vst [vmem:[#allocation126_spill] sm:$0xff] %v2489_v28  ;;  %v2491_v29 = vld [vmem:[#allocation5 + $0x328] sm:$0xff]  ;;  %v2493_v36 = vld [vmem:[#allocation5 + $0x330] sm:$0xff]  ;;  %v309_v38 = vadd.f32 %v308_v45, %v2479_v9  ;;  %v2533_v48 = vadd.f32 %v375_v54, %v2460_v32  }
  0x61   :  { %5413 = vst [vmem:[#allocation127_spill] sm:$0xff] %v2491_v29  ;;  %5414 = vst [vmem:[#allocation128_spill] sm:$0xff] %v2493_v36  ;;  %v2498_v60 = vld [vmem:[#allocation2 + $0x88] sm:$0xff]  ;;  %v2500_v46 = vld [vmem:[#allocation5 + $0x2f0] sm:$0xff]  ;;  %v312_v52 = vadd.f32 %v2491_v29, %v2489_v28 }
  0x62   :  { %5415 = vst [vmem:[#allocation129_spill] sm:$0xff] %v2498_v60  ;;  %5416 = vst [vmem:[#allocation130_spill] sm:$0xff] %v2500_v46  ;;  %v2502_v41 = vld [vmem:[#allocation5 + $0x318] sm:$0xff]  ;;  %v2504_v33 = vld [vmem:[#allocation5 + $0x348] sm:$0xff]  ;;  %v310_v18 = vadd.f32 %v309_v38, %v2481_v57  ;;  %v307_v40 = vadd.f32 %v306_v42, %v2500_v46 }
  0x63   :  { %5417 = vst [vmem:[#allocation131_spill] sm:$0xff] %v2502_v41  ;;  %5418 = vst [vmem:[#allocation132_spill] sm:$0xff] %v2504_v33  ;;  %v2512_v47 = vld [vmem:[#allocation5 + $0x338] sm:$0xff]  ;;  %v2514_v61 = vld [vmem:[#allocation5 + $0x350] sm:$0xff]  ;;  %v313_v23 = vadd.f32 %v312_v52, %v2493_v36  ;;  %v377_v52 = vmul.f32 0.25, %v303_v58  ;;  %v2547_v36 = vadd.f32 %v376_v25, %v2475_v44  }
  0x64   :  { %5419 = vst [vmem:[#allocation133_spill] sm:$0xff] %v2512_v47  ;;  %5420 = vst [vmem:[#allocation134_spill] sm:$0xff] %v2514_v61  ;;  %v2516_v30 = vld [vmem:[#allocation5 + $0x358] sm:$0xff]  ;;  %v2520_v43 = vld [vmem:[#allocation2 + $0x90] sm:$0xff]  ;;  %v316_v28 = vadd.f32 %v2514_v61, %v2504_v33  ;;  %v311_v33 = vadd.f32 %v310_v18, %v2502_v41 }
  0x65   :  { %5421 = vst [vmem:[#allocation135_spill] sm:$0xff] %v2516_v30  ;;  %5422 = vst [vmem:[#allocation136_spill] sm:$0xff] %v2520_v43  ;;  %v2522_v45 = vld [vmem:[#allocation5 + $0x340] sm:$0xff]  ;;  %v2524_v29 = vld [vmem:[#allocation5 + $0x370] sm:$0xff]  ;;  %v314_v57 = vadd.f32 %v313_v23, %v2512_v47  ;;  %v2570_v18 = vadd.f32 %v377_v52, %v2498_v60  }
  0x66   :  { %5423 = vst [vmem:[#allocation137_spill] sm:$0xff] %v2522_v45  ;;  %5424 = vst [vmem:[#allocation138_spill] sm:$0xff] %v2524_v29  ;;  %v2526_v63 = vld [vmem:[#allocation5 + $0x378] sm:$0xff]  ;;  %v2537_v37 = vld [vmem:[#allocation5 + $0x360] sm:$0xff]  ;;  %v317_v31 = vadd.f32 %v316_v28, %v2516_v30  ;;  %v379_v21 = vmul.f32 0.25, %v311_v33 }
  0x67   :  { %5425 = vst [vmem:[#allocation139_spill] sm:$0xff] %v2526_v63  ;;  %v2535_v26 = vld [vmem:[#allocation2 + $0x98] sm:$0xff]  ;;  %5427 = vst [vmem:[#allocation141_spill] sm:$0xff] %v2537_v37  ;;  %v2539_v9 = vld [vmem:[#allocation5 + $0x380] sm:$0xff]  ;;  %v320_v38 = vadd.f32 %v2526_v63, %v2524_v29  ;;  %v378_v29 = vmul.f32 0.25, %v307_v40  ;;  %v315_v47 = vadd.f32 %v314_v57, %v2522_v45 }
  0x68   :  { %5426 = vst [vmem:[#allocation140_spill] sm:$0xff] %v2535_v26  ;;  %5428 = vst [vmem:[#allocation142_spill] sm:$0xff] %v2539_v9  ;;  %v2541_v56 = vld [vmem:[#allocation5 + $0x388] sm:$0xff]  ;;  %v2549_v61 = vld [vmem:[#allocation5 + $0x398] sm:$0xff]  ;;  %v318_v41 = vadd.f32 %v317_v31, %v2537_v37 }
  0x69   :  { %5429 = vst [vmem:[#allocation143_spill] sm:$0xff] %v2541_v56  ;;  %5430 = vst [vmem:[#allocation144_spill] sm:$0xff] %v2549_v61  ;;  %v2551_v54 = vld [vmem:[#allocation5 + $0x3a0] sm:$0xff]  ;;  %v2553_v32 = vld [vmem:[#allocation5 + $0x3a8] sm:$0xff]  ;;  %v321_v44 = vadd.f32 %v320_v38, %v2539_v9  ;;  %v2593_v57 = vadd.f32 %v378_v29, %v2520_v43  }
  0x6a   :  { %5431 = vst [vmem:[#allocation145_spill] sm:$0xff] %v2551_v54  ;;  %5432 = vst [vmem:[#allocation146_spill] sm:$0xff] %v2553_v32  ;;  %v2558_v42 = vld [vmem:[#allocation2 + $0xa0] sm:$0xff]  ;;  %v2560_v46 = vld [vmem:[#allocation5 + $0x368] sm:$0xff]  ;;  %v324_v63 = vadd.f32 %v2551_v54, %v2549_v61 }
  0x6b   :  { %5433 = vst [vmem:[#allocation147_spill] sm:$0xff] %v2558_v42  ;;  %5434 = vst [vmem:[#allocation148_spill] sm:$0xff] %v2560_v46  ;;  %v2562_v58 = vld [vmem:[#allocation5 + $0x390] sm:$0xff]  ;;  %v2564_v25 = vld [vmem:[#allocation5 + $0x3c0] sm:$0xff]  ;;  %v322_v52 = vadd.f32 %v321_v44, %v2541_v56  ;;  %v319_v45 = vadd.f32 %v318_v41, %v2560_v46 }
  0x6c   :  { %5435 = vst [vmem:[#allocation149_spill] sm:$0xff] %v2562_v58  ;;  %5436 = vst [vmem:[#allocation150_spill] sm:$0xff] %v2564_v25  ;;  %v2572_v23 = vld [vmem:[#allocation5 + $0x3b0] sm:$0xff]  ;;  %v2574_v28 = vld [vmem:[#allocation5 + $0x3c8] sm:$0xff]  ;;  %v325_v60 = vadd.f32 %v324_v63, %v2553_v32  ;;  %v380_v63 = vmul.f32 0.25, %v315_v47  ;;  %v2607_v32 = vadd.f32 %v379_v21, %v2535_v26  }
  0x6d   :  { %5437 = vst [vmem:[#allocation151_spill] sm:$0xff] %v2572_v23  ;;  %5438 = vst [vmem:[#allocation152_spill] sm:$0xff] %v2574_v28  ;;  %v2576_v30 = vld [vmem:[#allocation5 + $0x3d0] sm:$0xff]  ;;  %v2580_v20 = vld [vmem:[#allocation2 + $0xa8] sm:$0xff]  ;;  %v328_v61 = vadd.f32 %v2574_v28, %v2564_v25  ;;  %v323_v25 = vadd.f32 %v322_v52, %v2562_v58 }
  0x6e   :  { %5439 = vst [vmem:[#allocation153_spill] sm:$0xff] %v2576_v30  ;;  %5440 = vst [vmem:[#allocation154_spill] sm:$0xff] %v2580_v20  ;;  %v2582_v38 = vld [vmem:[#allocation5 + $0x3b8] sm:$0xff]  ;;  %v2584_v54 = vld [vmem:[#allocation5 + $0x3e8] sm:$0xff]  ;;  %v326_v56 = vadd.f32 %v325_v60, %v2572_v23  ;;  %v2630_v52 = vadd.f32 %v380_v63, %v2558_v42  }
  0x6f   :  { %5441 = vst [vmem:[#allocation155_spill] sm:$0xff] %v2582_v38  ;;  %5442 = vst [vmem:[#allocation156_spill] sm:$0xff] %v2584_v54  ;;  %v2586_v40 = vld [vmem:[#allocation5 + $0x3f0] sm:$0xff]  ;;  %v2597_v33 = vld [vmem:[#allocation5 + $0x3d8] sm:$0xff]  ;;  %v329_v16 = vadd.f32 %v328_v61, %v2576_v30  ;;  %v382_v24 = vmul.f32 0.25, %v323_v25 }
  0x70   :  { %5443 = vst [vmem:[#allocation157_spill] sm:$0xff] %v2586_v40  ;;  %v2595_v31 = vld [vmem:[#allocation2 + $0xb0] sm:$0xff]  ;;  %5445 = vst [vmem:[#allocation159_spill] sm:$0xff] %v2597_v33  ;;  %v2599_v9 = vld [vmem:[#allocation5 + $0x3f8] sm:$0xff]  ;;  %v332_v44 = vadd.f32 %v2586_v40, %v2584_v54  ;;  %v381_v54 = vmul.f32 0.25, %v319_v45  ;;  %v327_v23 = vadd.f32 %v326_v56, %v2582_v38 }
  0x71   :  { %5444 = vst [vmem:[#allocation158_spill] sm:$0xff] %v2595_v31  ;;  %5446 = vst [vmem:[#allocation160_spill] sm:$0xff] %v2599_v9  ;;  %v2601_v37 = vld [vmem:[#allocation5 + $0x400] sm:$0xff]  ;;  %v2609_v28 = vld [vmem:[#allocation5 + $0x410] sm:$0xff]  ;;  %v330_v58 = vadd.f32 %v329_v16, %v2597_v33 }
  0x72   :  { %5447 = vst [vmem:[#allocation161_spill] sm:$0xff] %v2601_v37  ;;  %5448 = vst [vmem:[#allocation162_spill] sm:$0xff] %v2609_v28  ;;  %v2611_v29 = vld [vmem:[#allocation5 + $0x418] sm:$0xff]  ;;  %v2613_v43 = vld [vmem:[#allocation5 + $0x420] sm:$0xff]  ;;  %v333_v26 = vadd.f32 %v332_v44, %v2599_v9  ;;  %v2653_v56 = vadd.f32 %v381_v54, %v2580_v20  }
  0x73   :  { %5449 = vst [vmem:[#allocation163_spill] sm:$0xff] %v2611_v29  ;;  %5450 = vst [vmem:[#allocation164_spill] sm:$0xff] %v2613_v43  ;;  %v2618_v41 = vld [vmem:[#allocation2 + $0xb8] sm:$0xff]  ;;  %v2620_v46 = vld [vmem:[#allocation5 + $0x3e0] sm:$0xff]  ;;  %v336_v40 = vadd.f32 %v2611_v29, %v2609_v28 }
  0x74   :  { %5451 = vst [vmem:[#allocation165_spill] sm:$0xff] %v2618_v41  ;;  %5452 = vst [vmem:[#allocation166_spill] sm:$0xff] %v2620_v46  ;;  %v2622_v47 = vld [vmem:[#allocation5 + $0x408] sm:$0xff]  ;;  %v2624_v21 = vld [vmem:[#allocation5 + $0x438] sm:$0xff]  ;;  %v334_v63 = vadd.f32 %v333_v26, %v2601_v37  ;;  %v331_v38 = vadd.f32 %v330_v58, %v2620_v46 }
  0x75   :  { %5453 = vst [vmem:[#allocation167_spill] sm:$0xff] %v2622_v47  ;;  %5454 = vst [vmem:[#allocation168_spill] sm:$0xff] %v2624_v21  ;;  %v2632_v60 = vld [vmem:[#allocation5 + $0x428] sm:$0xff]  ;;  %v2634_v61 = vld [vmem:[#allocation5 + $0x440] sm:$0xff]  ;;  %v337_v42 = vadd.f32 %v336_v40, %v2613_v43  ;;  %v383_v40 = vmul.f32 0.25, %v327_v23  ;;  %v2667_v43 = vadd.f32 %v382_v24, %v2595_v31  }
  0x76   :  { %5455 = vst [vmem:[#allocation169_spill] sm:$0xff] %v2632_v60  ;;  %5456 = vst [vmem:[#allocation170_spill] sm:$0xff] %v2634_v61  ;;  %v2636_v30 = vld [vmem:[#allocation5 + $0x448] sm:$0xff]  ;;  %v2640_v19 = vld [vmem:[#allocation2 + $0xc0] sm:$0xff]  ;;  %v340_v28 = vadd.f32 %v2634_v61, %v2624_v21  ;;  %v335_v21 = vadd.f32 %v334_v63, %v2622_v47 }
  0x77   :  { %5457 = vst [vmem:[#allocation171_spill] sm:$0xff] %v2636_v30  ;;  %5458 = vst [vmem:[#allocation172_spill] sm:$0xff] %v2640_v19  ;;  %v2642_v44 = vld [vmem:[#allocation5 + $0x430] sm:$0xff]  ;;  %v2644_v29 = vld [vmem:[#allocation5 + $0x460] sm:$0xff]  ;;  %v338_v37 = vadd.f32 %v337_v42, %v2632_v60 }
  0x78   :  { %5459 = vst [vmem:[#allocation173_spill] sm:$0xff] %v2642_v44  ;;  %5460 = vst [vmem:[#allocation174_spill] sm:$0xff] %v2644_v29  ;;  %v2646_v45 = vld [vmem:[#allocation5 + $0x468] sm:$0xff]  ;;  %v2657_v25 = vld [vmem:[#allocation5 + $0x450] sm:$0xff]  ;;  %v341_v12 = vadd.f32 %v340_v28, %v2636_v30  ;;  %v385_v60 = vmul.f32 0.25, %v335_v21 }
  0x79   :  { %5461 = vst [vmem:[#allocation175_spill] sm:$0xff] %v2646_v45  ;;  %v2655_v16 = vld [vmem:[#allocation2 + $0xc8] sm:$0xff]  ;;  %5463 = vst [vmem:[#allocation177_spill] sm:$0xff] %v2657_v25  ;;  %v2659_v9 = vld [vmem:[#allocation5 + $0x470] sm:$0xff]  ;;  %v344_v26 = vadd.f32 %v2646_v45, %v2644_v29  ;;  %v384_v45 = vmul.f32 0.25, %v331_v38  ;;  %v415_v29 = vadd.f32 %v383_v40, %v2618_v41   ;;  %v339_v28 = vadd.f32 %v338_v37, %v2642_v44 }
  0x7a   :  { %5462 = vst [vmem:[#allocation176_spill] sm:$0xff] %v2655_v16  ;;  %5464 = vst [vmem:[#allocation178_spill] sm:$0xff] %v2659_v9  ;;  %v2661_v33 = vld [vmem:[#allocation5 + $0x478] sm:$0xff]  ;;  %v2669_v61 = vld [vmem:[#allocation5 + $0x488] sm:$0xff]  ;;  %v342_v30 = vadd.f32 %v341_v12, %v2657_v25 }
  0x7b   :  { %5465 = vst [vmem:[#allocation179_spill] sm:$0xff] %v2661_v33  ;;  %5466 = vst [vmem:[#allocation180_spill] sm:$0xff] %v2669_v61  ;;  %v2671_v54 = vld [vmem:[#allocation5 + $0x490] sm:$0xff]  ;;  %v2673_v20 = vld [vmem:[#allocation5 + $0x498] sm:$0xff]  ;;  %v345_v24 = vadd.f32 %v344_v26, %v2659_v9  ;;  %v386_v44 = vmul.f32 0.25, %v339_v28 }
  0x7c   :  { %5467 = vst [vmem:[#allocation181_spill] sm:$0xff] %v2671_v54  ;;  %5468 = vst [vmem:[#allocation182_spill] sm:$0xff] %v2673_v20  ;;  %v2678_v58 = vld [vmem:[#allocation5 + $0x458] sm:$0xff]  ;;  %v2680_v46 = vld [vmem:[#allocation5 + $0x480] sm:$0xff]  ;;  %v348_v31 = vadd.f32 %v2671_v54, %v2669_v61  ;;  %v416_v54 = vadd.f32 %v384_v45, %v2640_v19  }
  0x7d   :  { %5469 = vst [vmem:[#allocation183_spill] sm:$0xff] %v2678_v58  ;;  %5470 = vst [vmem:[#allocation184_spill] sm:$0xff] %v2680_v46  ;;  %v2682_v23 = vld [vmem:[#allocation5 + $0x4b0] sm:$0xff]  ;;  %v2688_v11 = vld [vmem:[#allocation5 + $0x4a0] sm:$0xff]  ;;  %v346_v38 = vadd.f32 %v345_v24, %v2661_v33  ;;  %v343_v21 = vadd.f32 %v342_v30, %v2678_v58  ;;  %v417_v24 = vadd.f32 %v385_v60, %v2655_v16  }
  0x7e   :  { %5471 = vst [vmem:[#allocation185_spill] sm:$0xff] %v2682_v23  ;;  %5472 = vst [vmem:[#allocation186_spill] sm:$0xff] %v2688_v11  ;;  %v2690_v63 = vld [vmem:[#allocation5 + $0x4b8] sm:$0xff]  ;;  %v2692_v42 = vld [vmem:[#allocation5 + $0x4c0] sm:$0xff]  ;;  %v349_v40 = vadd.f32 %v348_v31, %v2673_v20 }
  0x7f   :  { %5473 = vst [vmem:[#allocation187_spill] sm:$0xff] %v2690_v63  ;;  %5474 = vst [vmem:[#allocation188_spill] sm:$0xff] %v2692_v42  ;;  %v2696_v47 = vld [vmem:[#allocation2 + $0xd0] sm:$0xff]  ;;  %v2698_v26 = vld [vmem:[#allocation5 + $0x4d8] sm:$0xff]  ;;  %v352_v41 = vadd.f32 %v2690_v63, %v2682_v23  ;;  %v347_v45 = vadd.f32 %v346_v38, %v2680_v46 }
  0x80   :  { %5475 = vst [vmem:[#allocation189_spill] sm:$0xff] %v2696_v47  ;;  %5476 = vst [vmem:[#allocation190_spill] sm:$0xff] %v2698_v26  ;;  %v2700_v9 = vld [vmem:[#allocation5 + $0x4e0] sm:$0xff]  ;;  %v2707_v61 = vld [vmem:[#allocation5 + $0x4a8] sm:$0xff]  ;;  %v350_v19 = vadd.f32 %v349_v40, %v2688_v11  ;;  %v418_v28 = vadd.f32 %v386_v44, %v2696_v47  }
  0x81   :  { %5477 = vst [vmem:[#allocation191_spill] sm:$0xff] %v2700_v9  ;;  %5478 = vst [vmem:[#allocation192_spill] sm:$0xff] %v2707_v61  ;;  %v2709_v37 = vld [vmem:[#allocation5 + $0x4c8] sm:$0xff]  ;;  %v356_v25 = vadd.f32 %v2700_v9, %v2698_v26  ;;  %v2717_v31 = vld [vmem:[#allocation2 + $0xd8] sm:$0xff]  ;;  %v353_v63 = vadd.f32 %v352_v41, %v2692_v42  ;;  %v387_v9 = vmul.f32 0.25, %v343_v21  ;;  %v388_v38 = vmul.f32 0.25, %v347_v45 }
  0x82   :  { %5479 = vst [vmem:[#allocation193_spill] sm:$0xff] %v2709_v37  ;;  %v2711_v12 = vld [vmem:[#allocation5 + $0x4e8] sm:$0xff]  ;;  %5481 = vst [vmem:[#allocation195_spill] sm:$0xff] %v2717_v31  ;;  %v2719_v20 = vld [vmem:[#allocation5 + $0x4f0] sm:$0xff]  ;;  %v351_v16 = vadd.f32 %v350_v19, %v2707_v61 }
  0x83   :  { %5480 = vst [vmem:[#allocation194_spill] sm:$0xff] %v2711_v12  ;;  %5482 = vst [vmem:[#allocation196_spill] sm:$0xff] %v2719_v20  ;;  %v2724_v23 = vld [vmem:[#allocation2 + $0xe0] sm:$0xff]  ;;  %v2726_v33 = vld [vmem:[#allocation5 + $0x4d0] sm:$0xff]  ;;  %v357_v30 = vadd.f32 %v356_v25, %v2711_v12  ;;  %v354_v26 = vadd.f32 %v353_v63, %v2709_v37  ;;  %v419_v40 = vadd.f32 %v387_v9, %v2717_v31  }
  0x84   :  { %5483 = vst [vmem:[#allocation197_spill] sm:$0xff] %v2724_v23  ;;  %5484 = vst [vmem:[#allocation198_spill] sm:$0xff] %v2726_v33  ;;  %v2730_v60 = vld [vmem:[#allocation5 + $0x4f8] sm:$0xff]  ;;  %v2734_v46 = vld [vmem:[#allocation2 + $0xe8] sm:$0xff]  ;;  %v389_v11 = vmul.f32 0.25, %v351_v16  ;;  %v420_v25 = vadd.f32 %v388_v38, %v2724_v23  }
  0x85   :  { %5485 = vst [vmem:[#allocation199_spill] sm:$0xff] %v2730_v60  ;;  %5486 = vst [vmem:[#allocation200_spill] sm:$0xff] %v2734_v46  ;;  %v358_v41 = vadd.f32 %v357_v30, %v2719_v20  ;;  %v355_v42 = vadd.f32 %v354_v26, %v2726_v33  ;;  %v2740_v21 = vld [vmem:[#allocation2 + $0xf0] sm:$0xff]  ;;  %v2743_v47 = vld [vmem:[#allocation2 + $0xf8] sm:$0xff] }
  0x86   :  { %5487 = vst [vmem:[#allocation201_spill] sm:$0xff] %v2740_v21  ;;  %5488 = vst [vmem:[#allocation202_spill] sm:$0xff] %v2743_v47  ;;  %v421_v63 = vadd.f32 %v389_v11, %v2734_v46  }
  0x87   :  { %v359_v44 = vadd.f32 %v358_v41, %v2730_v60  ;;  %v390_v19 = vmul.f32 0.25, %v355_v42 }
  0x89   :  { %v391_v45 = vmul.f32 0.25, %v359_v44  ;;  %v422_v12 = vadd.f32 %v390_v19, %v2740_v21  }
  0x8b   :  { %v423_v30 = vadd.f32 %v391_v45, %v2743_v47  }
  0x8c LB: > { %v462_v11 = vmul.f32 %v2070_v62, %v2070_v62  ;;  %v463_v9 = vmul.f32 %v2066_v27, %v2066_v27  ;;  %v470_v16 = vmul.f32 %v2038_v53, %v2038_v53  ;;  %v471_v42 = vmul.f32 %v2034_v5, %v2034_v5  ;;  %v5490_v0 = vld [vmem:[#allocation11_spill] sm:$0xff]  ;;  %v5491_v1 = vld [vmem:[#allocation12_spill] sm:$0xff]  ;;  %v5492_v2 = vld [vmem:[#allocation13_spill] sm:$0xff]  ;;  %s429_s6 = sadd.s32 1, %s2074_s1   ;;  %s2074_s1 = sphi %s2835_s1, %s6305_s1   ;;  %v2070_v62 = vphi %v2233_v62, %v6304_v62   ;;  %v2066_v27 = vphi %v2247_v27, %v6303_v27   ;;  %v2062_v59 = vphi %v2270_v59, %v6302_v59   ;;  %v2058_v39 = vphi %v2293_v39, %v6301_v39   ;;  %v2054_v34 = vphi %v2307_v34, %v6300_v34   ;;  %v2050_v22 = vphi %v2330_v22, %v6299_v22   ;;  %v2046_v13 = vphi %v2353_v13, %v6298_v13   ;;  %v2042_v55 = vphi %v2367_v55, %v6297_v55   ;;  %v2038_v53 = vphi %v2390_v53, %v6296_v53   ;;  %v2034_v5 = vphi %v2413_v5, %v6295_v5   ;;  %v2030_v51 = vphi %v2427_v51, %v6294_v51   ;;  %v2026_v17 = vphi %v2450_v17, %v6293_v17   ;;  %v2022_v35 = vphi %v2473_v35, %v6292_v35   ;;  %v2018_v49 = vphi %v2487_v49, %v6291_v49   ;;  %v2014_v50 = vphi %v2510_v50, %v6290_v50   ;;  %v2010_v48 = vphi %v2533_v48, %v6289_v48   ;;  %v2006_v36 = vphi %v2547_v36, %v6288_v36   ;;  %v2002_v18 = vphi %v2570_v18, %v6287_v18   ;;  %v1998_v57 = vphi %v2593_v57, %v6286_v57   ;;  %v1994_v32 = vphi %v2607_v32, %v6285_v32   ;;  %v1990_v52 = vphi %v2630_v52, %v6284_v52   ;;  %v1986_v56 = vphi %v2653_v56, %v6283_v56   ;;  %v1982_v43 = vphi %v2667_v43, %v6282_v43   ;;  %v1978_v29 = vphi %v415_v29, %v6281_v29   ;;  %v1974_v54 = vphi %v416_v54, %v6280_v54   ;;  %v1970_v24 = vphi %v417_v24, %v6279_v24   ;;  %v1966_v28 = vphi %v418_v28, %v6278_v28   ;;  %v1962_v40 = vphi %v419_v40, %v6277_v40   ;;  %v1958_v25 = vphi %v420_v25, %v6276_v25   ;;  %v1954_v63 = vphi %v421_v63, %v6275_v63   ;;  %v1950_v12 = vphi %v422_v12, %v6274_v12   ;;  %v1946_v30 = vphi %v423_v30, %v6273_v30  }
  0x8d   : > { %v478_v26 = vmul.f32 %v2006_v36, %v2006_v36  ;;  %v479_v38 = vmul.f32 %v2002_v18, %v2002_v18  ;;  %v464_v41 = vmul.f32 %v2062_v59, %v2062_v59  ;;  %v472_v44 = vmul.f32 %v2030_v51, %v2030_v51  ;;  %v5493_v6 = vld [vmem:[#allocation16_spill] sm:$0xff]  ;;  %p4792_p2 = scmp.ge.s32.totalorder %s429_s6, 2   ;;  %s6305_s1 = smov %s429_s6 }
  0x8e   : > { %v480_v19 = vmul.f32 %v1998_v57, %v1998_v57  ;;  %v486_v45 = vmul.f32 %v1974_v54, %v1974_v54  ;;  %v487_v47 = vmul.f32 %v1970_v24, %v1970_v24  ;;  %v488_v21 = vmul.f32 %v1966_v28, %v1966_v28  ;;  %s2080_s8 = smov (%p4792_p2), [#allocation7]  }
  0x8f   : > { %v465_v46 = vmul.f32 %v2058_v39, %v2058_v39  ;;  %v473_v23 = vmul.f32 %v2026_v17, %v2026_v17  ;;  %v481_v31 = vmul.f32 %v1994_v32, %v1994_v32  ;;  %v489_v60 = vmul.f32 %v1962_v40, %v1962_v40  ;;  %s1299_s9 = sshll.u32 (%p4792_p2), %s2080_s8, 4  ;;  %s1300_s9 = int_to_ptr.vmem [resolvable:$true] %s1299_s9 }
  0x90   : > { %v494_v20 = vadd.f32 %v463_v9, %v462_v11  ;;  %v501_v33 = vadd.f32 %v471_v42, %v470_v16  ;;  %v508_v37 = vadd.f32 %v479_v38, %v478_v26  ;;  %v515_v61 = vadd.f32 %v487_v47, %v486_v45  ;;  %s1784_s10 = scalar_lea.vmem (%p4792_p2), %s1300_s9, 4096  ;;  %p1789_p4 = scmp.lt.s32.totalorder (%p4792_p2), %s1300_s9, %s1300_s9 }
  0x91   : > { %v466_v58 = vmul.f32 %v2054_v34, %v2054_v34  ;;  %v474_v10 = vmul.f32 %v2022_v35, %v2022_v35  ;;  %v482_v15 = vmul.f32 %v1990_v52, %v1990_v52  ;;  %v490_v8 = vmul.f32 %v1958_v25, %v1958_v25  ;;  %p1785_p3 = scmp.ne.s32.totalorder (%p4792_p2), %s1300_s9, %s1784_s10  ;;  %p1790_p5 = scmp.lt.s32.totalorder (%p4792_p2), %s1784_s10, %s1784_s10 }
  0x92   : > { %v495_v7 = vadd.f32 %v494_v20, %v464_v41  ;;  %v502_v4 = vadd.f32 %v501_v33, %v472_v44  ;;  %v509_v3 = vadd.f32 %v508_v37, %v480_v19  ;;  %v516_v14 = vadd.f32 %v515_v61, %v488_v21 }
  0x93   : > { %v467_v11 = vmul.f32 %v2050_v22, %v2050_v22  ;;  %v475_v47 = vmul.f32 %v2018_v49, %v2018_v49  ;;  %v483_v9 = vmul.f32 %v1986_v56, %v1986_v56  ;;  %v468_v45 = vmul.f32 %v2046_v13, %v2046_v13  ;;  %p1791_p6 = por (%p4792_p2), %p1790_p5, %p1789_p4 }
  0x94   : > { %v496_v16 = vadd.f32 %v495_v7, %v465_v46  ;;  %v503_v42 = vadd.f32 %v502_v4, %v473_v23  ;;  %v510_v26 = vadd.f32 %v509_v3, %v481_v31  ;;  %v517_v38 = vadd.f32 %v516_v14, %v489_v60 }
  0x95   : > { %v476_v20 = vmul.f32 %v2014_v50, %v2014_v50  ;;  %v491_v33 = vmul.f32 %v1954_v63, %v1954_v63  ;;  %v484_v44 = vmul.f32 %v1982_v43, %v1982_v43  ;;  %v469_v3 = vmul.f32 %v2042_v55, %v2042_v55  ;;  %p1792_p7 = pnand (%p4792_p2), %p1791_p6, %p1785_p3 }
  0x96   : > { %v497_v61 = vadd.f32 %v496_v16, %v466_v58  ;;  %v504_v37 = vadd.f32 %v503_v42, %v474_v10  ;;  %v511_v21 = vadd.f32 %v510_v26, %v482_v15  ;;  %v518_v41 = vadd.f32 %v517_v38, %v490_v8 }
  0x97   : > { %v477_v46 = vmul.f32 %v2010_v48, %v2010_v48  ;;  %v492_v23 = vmul.f32 %v1950_v12, %v1950_v12  ;;  %v485_v8 = vmul.f32 %v1978_v29, %v1978_v29  ;;  %v493_v19 = vmul.f32 %v1946_v30, %v1946_v30 }
  0x98   : > { %v498_v4 = vadd.f32 %v497_v61, %v467_v11  ;;  %v505_v7 = vadd.f32 %v504_v37, %v475_v47  ;;  %v512_v14 = vadd.f32 %v511_v21, %v483_v9  ;;  %v519_v31 = vadd.f32 %v518_v41, %v491_v33 }
  0x9a   : > { %v499_v58 = vadd.f32 %v498_v4, %v468_v45  ;;  %v506_v10 = vadd.f32 %v505_v7, %v476_v20  ;;  %v513_v15 = vadd.f32 %v512_v14, %v484_v44  ;;  %v520_v47 = vadd.f32 %v519_v31, %v492_v23 }
  0x9c   : > { %v500_v60 = vadd.f32 %v499_v58, %v469_v3  ;;  %v507_v11 = vadd.f32 %v506_v10, %v477_v46  ;;  %v514_v9 = vadd.f32 %v513_v15, %v485_v8  ;;  %v521_v42 = vadd.f32 %v520_v47, %v493_v19  ;;  %v5497_v15 = vld [vmem:[#allocation17_spill] sm:$0xff]  ;;  %v5498_v19 = vld [vmem:[#allocation18_spill] sm:$0xff]  ;;  %v5499_v47 = vld [vmem:[#allocation23_spill] sm:$0xff] }
  0x9e   : > { %v522_v16 = vmax.f32 %v500_v60, 1e-24  ;;  %v523_v26 = vmax.f32 %v507_v11, 1e-24  ;;  %v524_v38 = vmax.f32 %v514_v9, 1e-24 }
  0x9f   : > { %v525_v61 = vmax.f32 %v521_v42, 1e-24 }
  0xa0   : > { %1682 = vrsqrt.f32 %v522_v16  ;;  %v5500_v16 = vld [vmem:[#allocation19_spill] sm:$0xff] }
  0xa1   : > { %1684 = vrsqrt.f32 %v523_v26  ;;  %v5501_v26 = vld [vmem:[#allocation20_spill] sm:$0xff] }
  0xa2   : > { %1686 = vrsqrt.f32 %v524_v38 }
  0xa3   : > { %1688 = vrsqrt.f32 %v525_v61  ;;  %v5502_v61 = vld [vmem:[#allocation21_spill] sm:$0xff] }
  0xaa   : > { %v1683_v45 = vpop.eup %1682 }
  0xab   : > { %v1685_v20 = vpop.eup %1684  ;;  %v530_v33 = vmul.f32 %v2070_v62, %v1683_v45  ;;  %v531_v37 = vmul.f32 %v2066_v27, %v1683_v45  ;;  %v532_v21 = vmul.f32 %v2062_v59, %v1683_v45  ;;  %v533_v41 = vmul.f32 %v2058_v39, %v1683_v45 }
  0xac   : > { %v1687_v44 = vpop.eup %1686  ;;  %v534_v3 = vmul.f32 %v2054_v34, %v1683_v45  ;;  %v535_v4 = vmul.f32 %v2050_v22, %v1683_v45  ;;  %v536_v7 = vmul.f32 %v2046_v13, %v1683_v45  ;;  %v3008_v14 = vmul.f32 %v2042_v55, %v1683_v45 }
  0xad   : > { %v3011_v46 = vmul.f32 %v2038_v53, %v1685_v20  ;;  %v3014_v62 = vmul.f32 %v2034_v5, %v1685_v20  ;;  %v3017_v27 = vmul.f32 %v2030_v51, %v1685_v20  ;;  %v3020_v59 = vmul.f32 %v2026_v17, %v1685_v20  ;;  %v1689_v34 = vpop.eup %1688 }
  0xae   : > { %v3023_v39 = vmul.f32 %v2022_v35, %v1685_v20  ;;  %v3026_v22 = vmul.f32 %v2018_v49, %v1685_v20  ;;  %v3029_v55 = vmul.f32 %v2014_v50, %v1685_v20  ;;  %v3032_v13 = vmul.f32 %v2010_v48, %v1685_v20  ;;  %v5503_v20 = vld [vmem:[#allocation25_spill] sm:$0xff] }
  0xaf   : > { %v3035_v53 = vmul.f32 %v2006_v36, %v1687_v44  ;;  %v3038_v51 = vmul.f32 %v2002_v18, %v1687_v44  ;;  %v3041_v5 = vmul.f32 %v1998_v57, %v1687_v44  ;;  %v3044_v17 = vmul.f32 %v1994_v32, %v1687_v44 }
  0xb0   : > { %v3047_v49 = vmul.f32 %v1990_v52, %v1687_v44  ;;  %v3050_v35 = vmul.f32 %v1986_v56, %v1687_v44  ;;  %v3053_v50 = vmul.f32 %v1982_v43, %v1687_v44  ;;  %v3056_v36 = vmul.f32 %v1978_v29, %v1687_v44  ;;  %v5504_v44 = vld [vmem:[#allocation29_spill] sm:$0xff] }
  0xb1   : > { %v3059_v48 = vmul.f32 %v1974_v54, %v1689_v34  ;;  %v3062_v18 = vmul.f32 %v1970_v24, %v1689_v34  ;;  %v3065_v32 = vmul.f32 %v1966_v28, %v1689_v34  ;;  %v3068_v57 = vmul.f32 %v1962_v40, %v1689_v34 }
  0xb2   : > { %v3071_v52 = vmul.f32 %v1958_v25, %v1689_v34  ;;  %v3074_v43 = vmul.f32 %v1954_v63, %v1689_v34  ;;  %v3077_v29 = vmul.f32 %v1950_v12, %v1689_v34  ;;  %v3080_v56 = vmul.f32 %v1946_v30, %v1689_v34  ;;  %v5494_v25 = vld [vmem:[#allocation22_spill] sm:$0xff]  ;;  %v5496_v30 = vld [vmem:[#allocation15_spill] sm:$0xff] }
  0xb3   : > { %v3083_v54 = vmul.f32 %v530_v33, %v5490_v0  ;;  %v3086_v24 = vmul.f32 %v530_v33, %v5491_v1  ;;  %v3089_v28 = vmul.f32 %v530_v33, %v5492_v2  ;;  %v3092_v40 = vmul.f32 %v530_v33, %v5493_v6  ;;  %v5495_v12 = vld [vmem:[#allocation14_spill] sm:$0xff] }
  0xb4   : > { %5489 = vst [vmem:[#allocation203_spill] sm:$0xff] %v3080_v56  ;;  %v3095_v63 = vmul.f32 %v530_v33, %v5494_v25  ;;  %v3098_v58 = vmul.f32 %v531_v37, %v5495_v12  ;;  %v3101_v8 = vmul.f32 %v531_v37, %v5496_v30  ;;  %v3104_v60 = vmul.f32 %v531_v37, %v5497_v15  ;;  %v5505_v25 = vld [vmem:[#allocation24_spill] sm:$0xff] }
  0xb5   : > { %v3107_v11 = vmul.f32 %v531_v37, %v5498_v19  ;;  %v3110_v9 = vmul.f32 %v531_v37, %v5499_v47  ;;  %v3113_v42 = vmul.f32 %v532_v21, %v5500_v16  ;;  %v3116_v38 = vmul.f32 %v532_v21, %v5501_v26  ;;  %v5506_v37 = vld [vmem:[#allocation26_spill] sm:$0xff]  ;;  %v5507_v16 = vld [vmem:[#allocation27_spill] sm:$0xff]  ;;  %v5508_v26 = vld [vmem:[#allocation33_spill] sm:$0xff] }
  0xb6   : > { %v3119_v45 = vmul.f32 %v532_v21, %v5502_v61  ;;  %v3122_v33 = vmul.f32 %v532_v21, %v5503_v20  ;;  %v3125_v34 = vmul.f32 %v532_v21, %v5504_v44  ;;  %v3128_v12 = vmul.f32 %v533_v41, %v5505_v25  ;;  %v5509_v61 = vld [vmem:[#allocation40_spill] sm:$0xff]  ;;  %v5510_v20 = vld [vmem:[#allocation30_spill] sm:$0xff]  ;;  %v5512_v21 = vld [vmem:[#allocation31_spill] sm:$0xff] }
  0xb7   : > { %v3131_v30 = vmul.f32 %v533_v41, %v5506_v37  ;;  %v3134_v47 = vmul.f32 %v533_v41, %v5507_v16  ;;  %v3137_v15 = vmul.f32 %v533_v41, %v5508_v26  ;;  %v3140_v10 = vmul.f32 %v533_v41, %v5509_v61  ;;  %v5514_v25 = vld [vmem:[#allocation34_spill] sm:$0xff]  ;;  %v5516_v37 = vld [vmem:[#allocation35_spill] sm:$0xff]  ;;  %v5518_v16 = vld [vmem:[#allocation41_spill] sm:$0xff] }
  0xb8   : > { %v3143_v31 = vmul.f32 %v534_v3, %v5510_v20  ;;  %v3146_v44 = vmul.f32 %v534_v3, %v5512_v21  ;;  %v3149_v23 = vmul.f32 %v534_v3, %v5514_v25  ;;  %v3152_v6 = vmul.f32 %v534_v3, %v5516_v37  ;;  %v5520_v26 = vld [vmem:[#allocation36_spill] sm:$0xff]  ;;  %v5522_v41 = vld [vmem:[#allocation37_spill] sm:$0xff]  ;;  %v5524_v20 = vld [vmem:[#allocation38_spill] sm:$0xff] }
  0xb9   : > { %v3155_v2 = vmul.f32 %v534_v3, %v5518_v16  ;;  %v3158_v1 = vmul.f32 %v535_v4, %v5520_v26  ;;  %v3161_v61 = vmul.f32 %v535_v4, %v5522_v41  ;;  %v3164_v0 = vmul.f32 %v535_v4, %v5524_v20  ;;  %v5526_v21 = vld [vmem:[#allocation43_spill] sm:$0xff]  ;;  %v5530_v37 = vld [vmem:[#allocation42_spill] sm:$0xff]  ;;  %v5532_v3 = vld [vmem:[#allocation44_spill] sm:$0xff] }
  0xba   : > { %5511 = vst [vmem:[#allocation204_spill] sm:$0xff] %v3143_v31  ;;  %5513 = vst [vmem:[#allocation205_spill] sm:$0xff] %v3146_v44  ;;  %v3167_v56 = vmul.f32 %v535_v4, %v5526_v21  ;;  %v5528_v25 = vld [vmem:[#allocation47_spill] sm:$0xff]  ;;  %v3176_v16 = vmul.f32 %v536_v7, %v5532_v3  ;;  %v5534_v26 = vld [vmem:[#allocation45_spill] sm:$0xff] }
  0xbb   : > { %5515 = vst [vmem:[#allocation206_spill] sm:$0xff] %v3149_v23  ;;  %5517 = vst [vmem:[#allocation207_spill] sm:$0xff] %v3152_v6  ;;  %v3170_v23 = vmul.f32 %v535_v4, %v5528_v25  ;;  %v3173_v6 = vmul.f32 %v536_v7, %v5530_v37  ;;  %v5536_v41 = vld [vmem:[#allocation51_spill] sm:$0xff]  ;;  %v5538_v20 = vld [vmem:[#allocation58_spill] sm:$0xff] }
  0xbc   : > { %5519 = vst [vmem:[#allocation208_spill] sm:$0xff] %v3155_v2  ;;  %5521 = vst [vmem:[#allocation209_spill] sm:$0xff] %v3158_v1  ;;  %v3179_v1 = vmul.f32 %v536_v7, %v5534_v26  ;;  %v5540_v21 = vld [vmem:[#allocation48_spill] sm:$0xff]  ;;  %v5542_v4 = vld [vmem:[#allocation49_spill] sm:$0xff] }
  0xbd   : > { %5523 = vst [vmem:[#allocation210_spill] sm:$0xff] %v3161_v61  ;;  %5525 = vst [vmem:[#allocation211_spill] sm:$0xff] %v3164_v0  ;;  %v3182_v61 = vmul.f32 %v536_v7, %v5536_v41  ;;  %v3185_v0 = vmul.f32 %v536_v7, %v5538_v20  ;;  %v3189_v19 = vmul.f32 %v3008_v14, %v5540_v21  ;;  %v5544_v37 = vld [vmem:[#allocation52_spill] sm:$0xff]  ;;  %v5546_v26 = vld [vmem:[#allocation53_spill] sm:$0xff] }
  0xbe   : > { %5527 = vst [vmem:[#allocation212_spill] sm:$0xff] %v3167_v56  ;;  %5529 = vst [vmem:[#allocation213_spill] sm:$0xff] %v3170_v23  ;;  %v3193_v25 = vmul.f32 %v3008_v14, %v5542_v4  ;;  %v3197_v3 = vmul.f32 %v3008_v14, %v5544_v37  ;;  %v5548_v41 = vld [vmem:[#allocation59_spill] sm:$0xff]  ;;  %v5550_v20 = vld [vmem:[#allocation54_spill] sm:$0xff] }
  0xbf   : > { %5531 = vst [vmem:[#allocation214_spill] sm:$0xff] %v3173_v6  ;;  %5533 = vst [vmem:[#allocation215_spill] sm:$0xff] %v3176_v16  ;;  %v3205_v7 = vmul.f32 %v3008_v14, %v5548_v41  ;;  %v3209_v21 = vmul.f32 %v3011_v46, %v5550_v20  ;;  %v5557_v41 = vld [vmem:[#allocation60_spill] sm:$0xff]  ;;  %v5565_v6 = vld [vmem:[#allocation67_spill] sm:$0xff] }
  0xc0   : > { %5535 = vst [vmem:[#allocation216_spill] sm:$0xff] %v3179_v1  ;;  %5537 = vst [vmem:[#allocation217_spill] sm:$0xff] %v3182_v61  ;;  %v3201_v1 = vmul.f32 %v3008_v14, %v5546_v26  ;;  %v3229_v20 = vmul.f32 %v3014_v62, %v5557_v41  ;;  %v5560_v61 = vld [vmem:[#allocation69_spill] sm:$0xff]  ;;  %v5562_v16 = vld [vmem:[#allocation76_spill] sm:$0xff] }
  0xc1   : > { %5539 = vst [vmem:[#allocation218_spill] sm:$0xff] %v3185_v0  ;;  %5541 = vst [vmem:[#allocation219_spill] sm:$0xff] %v3189_v19  ;;  %v5551_v19 = vld [vmem:[#allocation55_spill] sm:$0xff]  ;;  %v5566_v23 = vld [vmem:[#allocation70_spill] sm:$0xff] }
  0xc2   : > { %5543 = vst [vmem:[#allocation220_spill] sm:$0xff] %v3193_v25  ;;  %5545 = vst [vmem:[#allocation221_spill] sm:$0xff] %v3197_v3  ;;  %v3213_v4 = vmul.f32 %v3011_v46, %v5551_v19  ;;  %v5552_v25 = vld [vmem:[#allocation56_spill] sm:$0xff]  ;;  %v5553_v3 = vld [vmem:[#allocation61_spill] sm:$0xff] }
  0xc3   : > { %5547 = vst [vmem:[#allocation222_spill] sm:$0xff] %v3201_v1  ;;  %5549 = vst [vmem:[#allocation223_spill] sm:$0xff] %v3205_v7  ;;  %v3217_v37 = vmul.f32 %v3011_v46, %v5552_v25  ;;  %v3221_v26 = vmul.f32 %v3011_v46, %v5553_v3  ;;  %v5555_v1 = vld [vmem:[#allocation65_spill] sm:$0xff]  ;;  %v5558_v7 = vld [vmem:[#allocation62_spill] sm:$0xff]  ;;  %v3241_v3 = vmul.f32 %v3014_v62, %v5560_v61 }
  0xc4   : > { %v3225_v14 = vmul.f32 %v3011_v46, %v5555_v1  ;;  %v3233_v19 = vmul.f32 %v3014_v62, %v5558_v7  ;;  %v5559_v0 = vld [vmem:[#allocation63_spill] sm:$0xff]  ;;  %v3245_v46 = vmul.f32 %v3014_v62, %v5562_v16  ;;  %v5564_v1 = vld [vmem:[#allocation66_spill] sm:$0xff]  ;;  %v3253_v7 = vmul.f32 %v3017_v27, %v5565_v6  ;;  %v5571_v16 = vld [vmem:[#allocation72_spill] sm:$0xff] }
  0xc5   : > { %5554 = vst [vmem:[#allocation224_spill] sm:$0xff] %v3221_v26  ;;  %v3237_v25 = vmul.f32 %v3014_v62, %v5559_v0  ;;  %5561 = vst [vmem:[#allocation226_spill] sm:$0xff] %v3241_v3  ;;  %v3249_v41 = vmul.f32 %v3017_v27, %v5564_v1  ;;  %v3257_v0 = vmul.f32 %v3017_v27, %v5566_v23  ;;  %v5569_v3 = vld [vmem:[#allocation77_spill] sm:$0xff]  ;;  %v5573_v26 = vld [vmem:[#allocation74_spill] sm:$0xff] }
  0xc6   : > { %5556 = vst [vmem:[#allocation225_spill] sm:$0xff] %v3225_v14  ;;  %5563 = vst [vmem:[#allocation227_spill] sm:$0xff] %v3245_v46  ;;  %v5567_v14 = vld [vmem:[#allocation71_spill] sm:$0xff]  ;;  %v3265_v62 = vmul.f32 %v3017_v27, %v5569_v3  ;;  %v3269_v1 = vmul.f32 %v3020_v59, %v5571_v16  ;;  %v5572_v46 = vld [vmem:[#allocation73_spill] sm:$0xff]  ;;  %v3277_v23 = vmul.f32 %v3020_v59, %v5573_v26 }
  0xc7   : > { %v3261_v61 = vmul.f32 %v3017_v27, %v5567_v14  ;;  %v3273_v6 = vmul.f32 %v3020_v59, %v5572_v46  ;;  %v5575_v56 = vld [vmem:[#allocation79_spill] sm:$0xff]  ;;  %v5579_v3 = vld [vmem:[#allocation78_spill] sm:$0xff]  ;;  %v5583_v31 = vld [vmem:[#allocation81_spill] sm:$0xff] }
  0xc8   : > { %5570 = vst [vmem:[#allocation229_spill] sm:$0xff] %v3265_v62  ;;  %5574 = vst [vmem:[#allocation230_spill] sm:$0xff] %v3277_v23  ;;  %v3281_v14 = vmul.f32 %v3020_v59, %v5575_v56  ;;  %v3289_v16 = vmul.f32 %v3023_v39, %v5579_v3  ;;  %v5581_v62 = vld [vmem:[#allocation80_spill] sm:$0xff]  ;;  %v3297_v26 = vmul.f32 %v3023_v39, %v5583_v31  ;;  %v5585_v2 = vld [vmem:[#allocation87_spill] sm:$0xff] }
  0xc9   : > { %5568 = vst [vmem:[#allocation228_spill] sm:$0xff] %v3261_v61  ;;  %v5577_v61 = vld [vmem:[#allocation83_spill] sm:$0xff]  ;;  %v3293_v46 = vmul.f32 %v3023_v39, %v5581_v62  ;;  %v3301_v56 = vmul.f32 %v3023_v39, %v5585_v2  ;;  %v5591_v44 = vld [vmem:[#allocation85_spill] sm:$0xff]  ;;  %v5642_v23 = vld [vmem:[#allocation130_spill] sm:$0xff] }
  0xca   : > { %5576 = vst [vmem:[#allocation231_spill] sm:$0xff] %v3281_v14  ;;  %v3285_v27 = vmul.f32 %v3020_v59, %v5577_v61  ;;  %5580 = vst [vmem:[#allocation233_spill] sm:$0xff] %v3289_v16  ;;  %v5587_v14 = vld [vmem:[#allocation94_spill] sm:$0xff]  ;;  %v5589_v61 = vld [vmem:[#allocation84_spill] sm:$0xff]  ;;  %v3313_v62 = vmul.f32 %v3026_v22, %v5591_v44 }
  0xcb   : > { %5582 = vst [vmem:[#allocation234_spill] sm:$0xff] %v3293_v46  ;;  %5584 = vst [vmem:[#allocation235_spill] sm:$0xff] %v3297_v26  ;;  %v3305_v59 = vmul.f32 %v3023_v39, %v5587_v14  ;;  %v3309_v3 = vmul.f32 %v3026_v22, %v5589_v61  ;;  %v5595_v26 = vld [vmem:[#allocation89_spill] sm:$0xff]  ;;  %v5599_v14 = vld [vmem:[#allocation90_spill] sm:$0xff] }
  0xcc   : > { %5578 = vst [vmem:[#allocation232_spill] sm:$0xff] %v3285_v27  ;;  %5586 = vst [vmem:[#allocation236_spill] sm:$0xff] %v3301_v56  ;;  %v5593_v27 = vld [vmem:[#allocation88_spill] sm:$0xff]  ;;  %v3321_v2 = vmul.f32 %v3026_v22, %v5595_v26  ;;  %v5597_v56 = vld [vmem:[#allocation95_spill] sm:$0xff]  ;;  %v3329_v61 = vmul.f32 %v3029_v55, %v5599_v14 }
  0xcd   : > { %5588 = vst [vmem:[#allocation237_spill] sm:$0xff] %v3305_v59  ;;  %5590 = vst [vmem:[#allocation238_spill] sm:$0xff] %v3309_v3  ;;  %v3317_v31 = vmul.f32 %v3026_v22, %v5593_v27  ;;  %v3325_v39 = vmul.f32 %v3026_v22, %v5597_v56  ;;  %v5601_v59 = vld [vmem:[#allocation91_spill] sm:$0xff]  ;;  %v5603_v46 = vld [vmem:[#allocation92_spill] sm:$0xff] }
  0xce   : > { %5592 = vst [vmem:[#allocation239_spill] sm:$0xff] %v3313_v62  ;;  %5596 = vst [vmem:[#allocation241_spill] sm:$0xff] %v3321_v2  ;;  %v3333_v44 = vmul.f32 %v3029_v55, %v5601_v59  ;;  %v3337_v27 = vmul.f32 %v3029_v55, %v5603_v46  ;;  %v5607_v16 = vld [vmem:[#allocation101_spill] sm:$0xff]  ;;  %v5609_v56 = vld [vmem:[#allocation96_spill] sm:$0xff] }
  0xcf   : > { %5594 = vst [vmem:[#allocation240_spill] sm:$0xff] %v3317_v31  ;;  %5598 = vst [vmem:[#allocation242_spill] sm:$0xff] %v3325_v39  ;;  %v5605_v31 = vld [vmem:[#allocation97_spill] sm:$0xff]  ;;  %v3345_v22 = vmul.f32 %v3029_v55, %v5607_v16  ;;  %v3349_v14 = vmul.f32 %v3032_v13, %v5609_v56  ;;  %v5611_v3 = vld [vmem:[#allocation98_spill] sm:$0xff] }
  0xd0   : > { %5600 = vst [vmem:[#allocation243_spill] sm:$0xff] %v3329_v61  ;;  %5602 = vst [vmem:[#allocation244_spill] sm:$0xff] %v3333_v44  ;;  %v3341_v26 = vmul.f32 %v3029_v55, %v5605_v31  ;;  %v3353_v59 = vmul.f32 %v3032_v13, %v5611_v3  ;;  %v5613_v39 = vld [vmem:[#allocation99_spill] sm:$0xff]  ;;  %v5619_v2 = vld [vmem:[#allocation102_spill] sm:$0xff] }
  0xd1   : > { %5604 = vst [vmem:[#allocation245_spill] sm:$0xff] %v3337_v27  ;;  %5608 = vst [vmem:[#allocation247_spill] sm:$0xff] %v3345_v22  ;;  %v3357_v46 = vmul.f32 %v3032_v13, %v5613_v39  ;;  %v5615_v27 = vld [vmem:[#allocation105_spill] sm:$0xff]  ;;  %v3369_v56 = vmul.f32 %v3035_v53, %v5619_v2  ;;  %v5620_v16 = vld [vmem:[#allocation103_spill] sm:$0xff] }
  0xd2   : > { %5606 = vst [vmem:[#allocation246_spill] sm:$0xff] %v3341_v26  ;;  %5610 = vst [vmem:[#allocation248_spill] sm:$0xff] %v3349_v14  ;;  %v3361_v31 = vmul.f32 %v3032_v13, %v5615_v27  ;;  %v5617_v26 = vld [vmem:[#allocation112_spill] sm:$0xff]  ;;  %v3373_v3 = vmul.f32 %v3035_v53, %v5620_v16  ;;  %v5622_v44 = vld [vmem:[#allocation106_spill] sm:$0xff] }
  0xd3   : > { %5612 = vst [vmem:[#allocation249_spill] sm:$0xff] %v3353_v59  ;;  %5614 = vst [vmem:[#allocation250_spill] sm:$0xff] %v3357_v46  ;;  %v3365_v55 = vmul.f32 %v3032_v13, %v5617_v26  ;;  %v3377_v39 = vmul.f32 %v3035_v53, %v5622_v44  ;;  %v5623_v61 = vld [vmem:[#allocation107_spill] sm:$0xff]  ;;  %v5625_v26 = vld [vmem:[#allocation108_spill] sm:$0xff] }
  0xd4   : > { %5616 = vst [vmem:[#allocation251_spill] sm:$0xff] %v3361_v31  ;;  %5621 = vst [vmem:[#allocation253_spill] sm:$0xff] %v3373_v3  ;;  %v3381_v27 = vmul.f32 %v3035_v53, %v5623_v61  ;;  %v5624_v31 = vld [vmem:[#allocation113_spill] sm:$0xff]  ;;  %v3389_v2 = vmul.f32 %v3038_v51, %v5625_v26  ;;  %v5629_v22 = vld [vmem:[#allocation110_spill] sm:$0xff] }
  0xd5   : > { %5618 = vst [vmem:[#allocation252_spill] sm:$0xff] %v3365_v55  ;;  %v3385_v13 = vmul.f32 %v3035_v53, %v5624_v31  ;;  %v5627_v55 = vld [vmem:[#allocation109_spill] sm:$0xff]  ;;  %v3397_v44 = vmul.f32 %v3038_v51, %v5629_v22  ;;  %v5631_v59 = vld [vmem:[#allocation115_spill] sm:$0xff]  ;;  %v5634_v31 = vld [vmem:[#allocation114_spill] sm:$0xff] }
  0xd6   : > { %5626 = vst [vmem:[#allocation254_spill] sm:$0xff] %v3389_v2  ;;  %v3393_v16 = vmul.f32 %v3038_v51, %v5627_v55  ;;  %v3401_v61 = vmul.f32 %v3038_v51, %v5631_v59  ;;  %v5633_v62 = vld [vmem:[#allocation119_spill] sm:$0xff]  ;;  %v3409_v26 = vmul.f32 %v3041_v5, %v5634_v31  ;;  %v5636_v46 = vld [vmem:[#allocation116_spill] sm:$0xff]  ;;  %v5638_v14 = vld [vmem:[#allocation117_spill] sm:$0xff] }
  0xd7   : > { %5630 = vst [vmem:[#allocation256_spill] sm:$0xff] %v3397_v44  ;;  %v3405_v53 = vmul.f32 %v3038_v51, %v5633_v62  ;;  %v3413_v55 = vmul.f32 %v3041_v5, %v5636_v46  ;;  %v3417_v22 = vmul.f32 %v3041_v5, %v5638_v14  ;;  %v5640_v3 = vld [vmem:[#allocation123_spill] sm:$0xff]  ;;  %v3425_v51 = vmul.f32 %v3041_v5, %v5642_v23  ;;  %v5643_v62 = vld [vmem:[#allocation120_spill] sm:$0xff]  ;;  %v5660_v2 = vld [vmem:[#allocation137_spill] sm:$0xff] }
  0xd8   : > { %5628 = vst [vmem:[#allocation255_spill] sm:$0xff] %v3393_v16  ;;  %5632 = vst [vmem:[#allocation257_spill] sm:$0xff] %v3401_v61  ;;  %v3421_v59 = vmul.f32 %v3041_v5, %v5640_v3  ;;  %v3429_v31 = vmul.f32 %v3044_v17, %v5643_v62  ;;  %v5652_v61 = vld [vmem:[#allocation126_spill] sm:$0xff]  ;;  %v5654_v23 = vld [vmem:[#allocation127_spill] sm:$0xff] }
  0xd9   : > { %5635 = vst [vmem:[#allocation258_spill] sm:$0xff] %v3409_v26  ;;  %5637 = vst [vmem:[#allocation259_spill] sm:$0xff] %v3413_v55  ;;  %v5645_v26 = vld [vmem:[#allocation121_spill] sm:$0xff]  ;;  %v5647_v55 = vld [vmem:[#allocation124_spill] sm:$0xff]  ;;  %v3449_v62 = vmul.f32 %v3047_v49, %v5652_v61 }
  0xda   : > { %5639 = vst [vmem:[#allocation260_spill] sm:$0xff] %v3417_v22  ;;  %5641 = vst [vmem:[#allocation261_spill] sm:$0xff] %v3421_v59  ;;  %v3433_v46 = vmul.f32 %v3044_v17, %v5645_v26  ;;  %v3437_v14 = vmul.f32 %v3044_v17, %v5647_v55  ;;  %v5649_v22 = vld [vmem:[#allocation125_spill] sm:$0xff]  ;;  %v5651_v59 = vld [vmem:[#allocation131_spill] sm:$0xff]  ;;  %v3453_v26 = vmul.f32 %v3047_v49, %v5654_v23 }
  0xdb   : > { %5644 = vst [vmem:[#allocation262_spill] sm:$0xff] %v3429_v31  ;;  %v3441_v3 = vmul.f32 %v3044_v17, %v5649_v22  ;;  %v3445_v5 = vmul.f32 %v3044_v17, %v5651_v59  ;;  %5653 = vst [vmem:[#allocation266_spill] sm:$0xff] %v3449_v62  ;;  %v5656_v44 = vld [vmem:[#allocation128_spill] sm:$0xff]  ;;  %v5658_v16 = vld [vmem:[#allocation133_spill] sm:$0xff]  ;;  %v3465_v17 = vmul.f32 %v3047_v49, %v5660_v2 }
  0xdc   : > { %5646 = vst [vmem:[#allocation263_spill] sm:$0xff] %v3433_v46  ;;  %5648 = vst [vmem:[#allocation264_spill] sm:$0xff] %v3437_v14  ;;  %v3457_v55 = vmul.f32 %v3047_v49, %v5656_v44  ;;  %v3461_v22 = vmul.f32 %v3047_v49, %v5658_v16  ;;  %v5661_v59 = vld [vmem:[#allocation132_spill] sm:$0xff]  ;;  %v5663_v62 = vld [vmem:[#allocation134_spill] sm:$0xff] }
  0xdd   : > { %5650 = vst [vmem:[#allocation265_spill] sm:$0xff] %v3441_v3  ;;  %5655 = vst [vmem:[#allocation267_spill] sm:$0xff] %v3453_v26  ;;  %v3469_v61 = vmul.f32 %v3050_v35, %v5661_v59  ;;  %v3473_v23 = vmul.f32 %v3050_v35, %v5663_v62  ;;  %v5665_v26 = vld [vmem:[#allocation135_spill] sm:$0xff]  ;;  %v5671_v3 = vld [vmem:[#allocation138_spill] sm:$0xff] }
  0xde   : > { %5657 = vst [vmem:[#allocation268_spill] sm:$0xff] %v3457_v55  ;;  %5659 = vst [vmem:[#allocation269_spill] sm:$0xff] %v3461_v22  ;;  %v3477_v44 = vmul.f32 %v3050_v35, %v5665_v26  ;;  %v5667_v55 = vld [vmem:[#allocation141_spill] sm:$0xff]  ;;  %v5669_v22 = vld [vmem:[#allocation148_spill] sm:$0xff]  ;;  %v3489_v59 = vmul.f32 %v3053_v50, %v5671_v3 }
  0xdf   : > { %5662 = vst [vmem:[#allocation270_spill] sm:$0xff] %v3469_v61  ;;  %5664 = vst [vmem:[#allocation271_spill] sm:$0xff] %v3473_v23  ;;  %v3481_v16 = vmul.f32 %v3050_v35, %v5667_v55  ;;  %v3485_v49 = vmul.f32 %v3050_v35, %v5669_v22  ;;  %v5673_v14 = vld [vmem:[#allocation139_spill] sm:$0xff]  ;;  %v5675_v2 = vld [vmem:[#allocation142_spill] sm:$0xff] }
  0xe0   : > { %5666 = vst [vmem:[#allocation272_spill] sm:$0xff] %v3477_v44  ;;  %5672 = vst [vmem:[#allocation275_spill] sm:$0xff] %v3489_v59  ;;  %v3493_v62 = vmul.f32 %v3053_v50, %v5673_v14  ;;  %v3497_v26 = vmul.f32 %v3053_v50, %v5675_v2  ;;  %v5677_v46 = vld [vmem:[#allocation143_spill] sm:$0xff]  ;;  %v5679_v31 = vld [vmem:[#allocation149_spill] sm:$0xff] }
  0xe1   : > { %5668 = vst [vmem:[#allocation273_spill] sm:$0xff] %v3481_v16  ;;  %5670 = vst [vmem:[#allocation274_spill] sm:$0xff] %v3485_v49  ;;  %v3501_v55 = vmul.f32 %v3053_v50, %v5677_v46  ;;  %v3505_v35 = vmul.f32 %v3053_v50, %v5679_v31  ;;  %v5681_v22 = vld [vmem:[#allocation144_spill] sm:$0xff]  ;;  %v5683_v59 = vld [vmem:[#allocation145_spill] sm:$0xff] }
  0xe2   : > { %5674 = vst [vmem:[#allocation276_spill] sm:$0xff] %v3493_v62  ;;  %5676 = vst [vmem:[#allocation277_spill] sm:$0xff] %v3497_v26  ;;  %v3509_v3 = vmul.f32 %v3056_v36, %v5681_v22  ;;  %v3513_v14 = vmul.f32 %v3056_v36, %v5683_v59  ;;  %v5685_v62 = vld [vmem:[#allocation146_spill] sm:$0xff]  ;;  %v5687_v26 = vld [vmem:[#allocation151_spill] sm:$0xff] }
  0xe3   : > { %5678 = vst [vmem:[#allocation278_spill] sm:$0xff] %v3501_v55  ;;  %5680 = vst [vmem:[#allocation279_spill] sm:$0xff] %v3505_v35  ;;  %v3517_v2 = vmul.f32 %v3056_v36, %v5685_v62  ;;  %v3521_v46 = vmul.f32 %v3056_v36, %v5687_v26  ;;  %v5689_v55 = vld [vmem:[#allocation155_spill] sm:$0xff]  ;;  %v5691_v16 = vld [vmem:[#allocation150_spill] sm:$0xff] }
  0xe4   : > { %5682 = vst [vmem:[#allocation280_spill] sm:$0xff] %v3509_v3  ;;  %5684 = vst [vmem:[#allocation281_spill] sm:$0xff] %v3513_v14  ;;  %v3525_v50 = vmul.f32 %v3056_v36, %v5689_v55  ;;  %v3529_v22 = vmul.f32 %v3059_v48, %v5691_v16  ;;  %v5692_v44 = vld [vmem:[#allocation152_spill] sm:$0xff]  ;;  %v5693_v23 = vld [vmem:[#allocation153_spill] sm:$0xff] }
  0xe5   : > { %5686 = vst [vmem:[#allocation282_spill] sm:$0xff] %v3517_v2  ;;  %5688 = vst [vmem:[#allocation283_spill] sm:$0xff] %v3521_v46  ;;  %v3533_v59 = vmul.f32 %v3059_v48, %v5692_v44  ;;  %v3537_v62 = vmul.f32 %v3059_v48, %v5693_v23  ;;  %v5694_v31 = vld [vmem:[#allocation159_spill] sm:$0xff]  ;;  %v5696_v61 = vld [vmem:[#allocation166_spill] sm:$0xff] }
  0xe6   : > { %5690 = vst [vmem:[#allocation284_spill] sm:$0xff] %v3525_v50  ;;  %v3541_v26 = vmul.f32 %v3059_v48, %v5694_v31  ;;  %v3545_v36 = vmul.f32 %v3059_v48, %v5696_v61  ;;  %v5697_v55 = vld [vmem:[#allocation156_spill] sm:$0xff]  ;;  %v5699_v50 = vld [vmem:[#allocation157_spill] sm:$0xff]  ;;  %v5705_v35 = vld [vmem:[#allocation167_spill] sm:$0xff] }
  0xe7   : > { %v3549_v16 = vmul.f32 %v3062_v18, %v5697_v55  ;;  %v3553_v44 = vmul.f32 %v3062_v18, %v5699_v50  ;;  %v5701_v14 = vld [vmem:[#allocation160_spill] sm:$0xff]  ;;  %v5703_v3 = vld [vmem:[#allocation161_spill] sm:$0xff]  ;;  %v3565_v48 = vmul.f32 %v3062_v18, %v5705_v35  ;;  %v5707_v46 = vld [vmem:[#allocation162_spill] sm:$0xff] }
  0xe8   : > { %5695 = vst [vmem:[#allocation285_spill] sm:$0xff] %v3541_v26  ;;  %v3557_v23 = vmul.f32 %v3062_v18, %v5701_v14  ;;  %v3561_v31 = vmul.f32 %v3062_v18, %v5703_v3  ;;  %v3569_v55 = vmul.f32 %v3065_v32, %v5707_v46  ;;  %v5708_v2 = vld [vmem:[#allocation163_spill] sm:$0xff]  ;;  %v5710_v61 = vld [vmem:[#allocation164_spill] sm:$0xff]  ;;  %v5711_v49 = vld [vmem:[#allocation169_spill] sm:$0xff] }
  0xe9   : > { %5698 = vst [vmem:[#allocation286_spill] sm:$0xff] %v3549_v16  ;;  %5700 = vst [vmem:[#allocation287_spill] sm:$0xff] %v3553_v44  ;;  %v3573_v50 = vmul.f32 %v3065_v32, %v5708_v2  ;;  %v3577_v14 = vmul.f32 %v3065_v32, %v5710_v61  ;;  %v3581_v3 = vmul.f32 %v3065_v32, %v5711_v49  ;;  %v5713_v26 = vld [vmem:[#allocation173_spill] sm:$0xff]  ;;  %v5714_v35 = vld [vmem:[#allocation168_spill] sm:$0xff] }
  0xea   : > { %5702 = vst [vmem:[#allocation288_spill] sm:$0xff] %v3557_v23  ;;  %5704 = vst [vmem:[#allocation289_spill] sm:$0xff] %v3561_v31  ;;  %v3585_v18 = vmul.f32 %v3065_v32, %v5713_v26  ;;  %v3589_v46 = vmul.f32 %v3068_v57, %v5714_v35  ;;  %v5717_v23 = vld [vmem:[#allocation177_spill] sm:$0xff]  ;;  %v722_v35 = vadd.f32 %v3098_v58, %v3083_v54 }
  0xeb   : > { %5706 = vst [vmem:[#allocation290_spill] sm:$0xff] %v3565_v48  ;;  %5709 = vst [vmem:[#allocation291_spill] sm:$0xff] %v3573_v50  ;;  %v5715_v48 = vld [vmem:[#allocation170_spill] sm:$0xff]  ;;  %v5716_v50 = vld [vmem:[#allocation171_spill] sm:$0xff]  ;;  %v3601_v49 = vmul.f32 %v3068_v57, %v5717_v23  ;;  %v729_v44 = vadd.f32 %v3101_v8, %v3086_v24  ;;  %v750_v23 = vadd.f32 %v3110_v9, %v3095_v63 }
  0xec   : > { %5712 = vst [vmem:[#allocation292_spill] sm:$0xff] %v3581_v3  ;;  %v3593_v2 = vmul.f32 %v3068_v57, %v5715_v48  ;;  %v3597_v61 = vmul.f32 %v3068_v57, %v5716_v50  ;;  %v5718_v3 = vld [vmem:[#allocation183_spill] sm:$0xff]  ;;  %v736_v48 = vadd.f32 %v3104_v60, %v3089_v28  ;;  %v743_v50 = vadd.f32 %v3107_v11, %v3092_v40  ;;  %v5719_v8 = vld [vmem:[#allocation174_spill] sm:$0xff] }
  0xed   : > { %v3605_v32 = vmul.f32 %v3068_v57, %v5718_v3  ;;  %v757_v16 = vadd.f32 %v3229_v20, %v3209_v21  ;;  %v764_v57 = vadd.f32 %v3233_v19, %v3213_v4  ;;  %v771_v54 = vadd.f32 %v3237_v25, %v3217_v37  ;;  %v5720_v60 = vld [vmem:[#allocation175_spill] sm:$0xff]  ;;  %v5721_v19 = vld [vmem:[#allocation178_spill] sm:$0xff]  ;;  %v5754_v3 = vld [vmem:[#allocation209_spill] sm:$0xff] }
  0xee   : > { %v723_v24 = vadd.f32 %v722_v35, %v3113_v42  ;;  %v730_v58 = vadd.f32 %v729_v44, %v3116_v38  ;;  %v737_v28 = vadd.f32 %v736_v48, %v3119_v45  ;;  %v744_v40 = vadd.f32 %v743_v50, %v3122_v33  ;;  %v5722_v20 = vld [vmem:[#allocation179_spill] sm:$0xff]  ;;  %v5723_v35 = vld [vmem:[#allocation184_spill] sm:$0xff] }
  0xef   : > { %v3629_v63 = vmul.f32 %v3071_v52, %v5719_v8  ;;  %v3633_v11 = vmul.f32 %v3071_v52, %v5720_v60  ;;  %v3637_v9 = vmul.f32 %v3071_v52, %v5721_v19  ;;  %v3641_v42 = vmul.f32 %v3071_v52, %v5722_v20  ;;  %v5724_v50 = vld [vmem:[#allocation180_spill] sm:$0xff]  ;;  %v5737_v60 = vld [vmem:[#allocation193_spill] sm:$0xff] }
  0xf0   : > { %v751_v38 = vadd.f32 %v750_v23, %v3125_v34  ;;  %v758_v45 = vadd.f32 %v757_v16, %v3249_v41  ;;  %v765_v33 = vadd.f32 %v764_v57, %v3253_v7  ;;  %v772_v44 = vadd.f32 %v771_v54, %v3257_v0  ;;  %v5725_v16 = vld [vmem:[#allocation181_spill] sm:$0xff]  ;;  %v5726_v0 = vld [vmem:[#allocation182_spill] sm:$0xff]  ;;  %v5730_v54 = vld [vmem:[#allocation187_spill] sm:$0xff] }
  0xf1   : > { %v724_v37 = vadd.f32 %v723_v24, %v3128_v12  ;;  %v731_v21 = vadd.f32 %v730_v58, %v3131_v30  ;;  %v738_v4 = vadd.f32 %v737_v28, %v3134_v47  ;;  %v745_v25 = vadd.f32 %v744_v40, %v3137_v15  ;;  %v5727_v30 = vld [vmem:[#allocation186_spill] sm:$0xff]  ;;  %v5728_v15 = vld [vmem:[#allocation192_spill] sm:$0xff]  ;;  %v5729_v7 = vld [vmem:[#allocation185_spill] sm:$0xff] }
  0xf2   : > { %v3653_v48 = vmul.f32 %v3071_v52, %v5723_v35  ;;  %v3657_v23 = vmul.f32 %v3074_v43, %v5724_v50  ;;  %v3661_v34 = vmul.f32 %v3074_v43, %v5725_v16  ;;  %v3665_v12 = vmul.f32 %v3074_v43, %v5726_v0  ;;  %v5731_v50 = vld [vmem:[#allocation230_spill] sm:$0xff]  ;;  %v5732_v41 = vld [vmem:[#allocation204_spill] sm:$0xff] }
  0xf3   : > { %v3669_v47 = vmul.f32 %v3074_v43, %v5727_v30  ;;  %v3673_v52 = vmul.f32 %v3074_v43, %v5728_v15  ;;  %v3677_v57 = vmul.f32 %v3077_v29, %v5729_v7  ;;  %v3681_v24 = vmul.f32 %v3077_v29, %v5730_v54  ;;  %v5733_v43 = vld [vmem:[#allocation205_spill] sm:$0xff]  ;;  %v5734_v16 = vld [vmem:[#allocation206_spill] sm:$0xff]  ;;  %v5735_v7 = vld [vmem:[#allocation207_spill] sm:$0xff] }
  0xf4   : > { %v752_v28 = vadd.f32 %v751_v38, %v3140_v10  ;;  %v759_v40 = vadd.f32 %v758_v45, %v3269_v1  ;;  %v766_v35 = vadd.f32 %v765_v33, %v3273_v6  ;;  %v773_v30 = vadd.f32 %v772_v44, %v5731_v50  ;;  %v5736_v58 = vld [vmem:[#allocation188_spill] sm:$0xff]  ;;  %v5738_v1 = vld [vmem:[#allocation198_spill] sm:$0xff]  ;;  %v5741_v45 = vld [vmem:[#allocation203_spill] sm:$0xff] }
  0xf5   : > { %v725_v0 = vadd.f32 %v724_v37, %v5732_v41  ;;  %v732_v15 = vadd.f32 %v731_v21, %v5733_v43  ;;  %v739_v20 = vadd.f32 %v738_v4, %v5734_v16  ;;  %v746_v19 = vadd.f32 %v745_v25, %v5735_v7  ;;  %v5740_v38 = vld [vmem:[#allocation190_spill] sm:$0xff]  ;;  %v5742_v44 = vld [vmem:[#allocation191_spill] sm:$0xff]  ;;  %v5746_v25 = vld [vmem:[#allocation196_spill] sm:$0xff] }
  0xf6   : > { %v3693_v54 = vmul.f32 %v3077_v29, %v5736_v58  ;;  %v3697_v10 = vmul.f32 %v3077_v29, %v5737_v60  ;;  %v3701_v6 = vmul.f32 %v3077_v29, %v5738_v1  ;;  %v3705_v33 = vmul.f32 %v5741_v45, %v5740_v38  ;;  %v5744_v21 = vld [vmem:[#allocation194_spill] sm:$0xff]  ;;  %v5748_v7 = vld [vmem:[#allocation199_spill] sm:$0xff]  ;;  %v5750_v50 = vld [vmem:[#allocation208_spill] sm:$0xff] }
  0xf7   : > { %v3709_v37 = vmul.f32 %v5741_v45, %v5742_v44  ;;  %v3713_v4 = vmul.f32 %v5741_v45, %v5744_v21  ;;  %v3717_v41 = vmul.f32 %v5741_v45, %v5746_v25  ;;  %v3721_v29 = vmul.f32 %v5741_v45, %v5748_v7  ;;  %v5751_v38 = vld [vmem:[#allocation233_spill] sm:$0xff]  ;;  %v5752_v60 = vld [vmem:[#allocation234_spill] sm:$0xff]  ;;  %v5753_v44 = vld [vmem:[#allocation235_spill] sm:$0xff] }
  0xf8   : > { %5739 = vst [vmem:[#allocation230_spill] sm:$0xff] %v3701_v6  ;;  %v753_v43 = vadd.f32 %v752_v28, %v5750_v50  ;;  %v760_v1 = vadd.f32 %v759_v40, %v5751_v38  ;;  %v767_v58 = vadd.f32 %v766_v35, %v5752_v60  ;;  %v774_v8 = vadd.f32 %v773_v30, %v5753_v44  ;;  %v5755_v21 = vld [vmem:[#allocation210_spill] sm:$0xff]  ;;  %v5756_v16 = vld [vmem:[#allocation211_spill] sm:$0xff]  ;;  %v5757_v25 = vld [vmem:[#allocation212_spill] sm:$0xff] }
  0xf9   : > { %5743 = vst [vmem:[#allocation204_spill] sm:$0xff] %v3709_v37  ;;  %5745 = vst [vmem:[#allocation205_spill] sm:$0xff] %v3713_v4  ;;  %v726_v31 = vadd.f32 %v725_v0, %v5754_v3  ;;  %v733_v26 = vadd.f32 %v732_v15, %v5755_v21  ;;  %v740_v4 = vadd.f32 %v739_v20, %v5756_v16  ;;  %v5758_v37 = vld [vmem:[#allocation224_spill] sm:$0xff]  ;;  %v5759_v6 = vld [vmem:[#allocation226_spill] sm:$0xff] }
  0xfa   : > { %5747 = vst [vmem:[#allocation206_spill] sm:$0xff] %v3717_v41  ;;  %5749 = vst [vmem:[#allocation207_spill] sm:$0xff] %v3721_v29  ;;  %v747_v41 = vadd.f32 %v746_v19, %v5757_v25  ;;  %v778_v45 = vadd.f32 %v5759_v6, %v5758_v37  ;;  %v5760_v7 = vld [vmem:[#allocation225_spill] sm:$0xff]  ;;  %v5761_v29 = vld [vmem:[#allocation227_spill] sm:$0xff]  ;;  %v820_v19 = vadd.f32 %v3405_v53, %v3385_v13 }
  0xfb   : > { %v785_v28 = vadd.f32 %v5761_v29, %v5760_v7  ;;  %v5762_v40 = vld [vmem:[#allocation254_spill] sm:$0xff]  ;;  %v5763_v60 = vld [vmem:[#allocation253_spill] sm:$0xff]  ;;  %v5764_v35 = vld [vmem:[#allocation255_spill] sm:$0xff] }
  0xfc   : > { %v792_v38 = vadd.f32 %v5762_v40, %v3369_v56  ;;  %v799_v30 = vadd.f32 %v5764_v35, %v5763_v60  ;;  %v5765_v3 = vld [vmem:[#allocation256_spill] sm:$0xff]  ;;  %v5766_v15 = vld [vmem:[#allocation257_spill] sm:$0xff]  ;;  %v5767_v6 = vld [vmem:[#allocation286_spill] sm:$0xff] }
  0xfd   : > { %v806_v0 = vadd.f32 %v5765_v3, %v3377_v39  ;;  %v813_v20 = vadd.f32 %v5766_v15, %v3381_v27  ;;  %v827_v44 = vadd.f32 %v5767_v6, %v3529_v22  ;;  %v5768_v37 = vld [vmem:[#allocation228_spill] sm:$0xff]  ;;  %v5769_v16 = vld [vmem:[#allocation229_spill] sm:$0xff]  ;;  %v5770_v56 = vld [vmem:[#allocation258_spill] sm:$0xff]  ;;  %v821_v27 = vadd.f32 %v820_v19, %v3425_v51 }
  0xfe   : > { %v779_v21 = vadd.f32 %v778_v45, %v5768_v37  ;;  %v786_v7 = vadd.f32 %v785_v28, %v5769_v16  ;;  %v793_v29 = vadd.f32 %v792_v38, %v5770_v56  ;;  %v5771_v50 = vld [vmem:[#allocation259_spill] sm:$0xff]  ;;  %v5772_v40 = vld [vmem:[#allocation260_spill] sm:$0xff]  ;;  %v5773_v39 = vld [vmem:[#allocation261_spill] sm:$0xff] }
  0xff   : > { %v800_v25 = vadd.f32 %v799_v30, %v5771_v50  ;;  %v807_v60 = vadd.f32 %v806_v0, %v5772_v40  ;;  %v814_v35 = vadd.f32 %v813_v20, %v5773_v39  ;;  %v828_v3 = vadd.f32 %v827_v44, %v3569_v55  ;;  %v5774_v13 = vld [vmem:[#allocation213_spill] sm:$0xff]  ;;  %v5775_v15 = vld [vmem:[#allocation238_spill] sm:$0xff]  ;;  %v5776_v6 = vld [vmem:[#allocation239_spill] sm:$0xff] }
 0x100   : > { %v754_v53 = vadd.f32 %v753_v43, %v5774_v13  ;;  %v761_v22 = vadd.f32 %v760_v1, %v5775_v15  ;;  %v768_v45 = vadd.f32 %v767_v58, %v5776_v6  ;;  %v5777_v37 = vld [vmem:[#allocation240_spill] sm:$0xff]  ;;  %v5778_v16 = vld [vmem:[#allocation231_spill] sm:$0xff]  ;;  %v5780_v50 = vld [vmem:[#allocation262_spill] sm:$0xff] }
 0x101   : > { %v775_v28 = vadd.f32 %v774_v8, %v5777_v37  ;;  %v780_v38 = vadd.f32 %v779_v21, %v5778_v16  ;;  %v5779_v56 = vld [vmem:[#allocation232_spill] sm:$0xff]  ;;  %v794_v0 = vadd.f32 %v793_v29, %v5780_v50  ;;  %v5781_v40 = vld [vmem:[#allocation263_spill] sm:$0xff]  ;;  %v5782_v39 = vld [vmem:[#allocation214_spill] sm:$0xff]  ;;  %v822_v21 = vadd.f32 %v821_v27, %v3445_v5 }
 0x102   : > { %v787_v30 = vadd.f32 %v786_v7, %v5779_v56  ;;  %v801_v20 = vadd.f32 %v800_v25, %v5781_v40  ;;  %v727_v51 = vadd.f32 %v726_v31, %v5782_v39  ;;  %v5783_v19 = vld [vmem:[#allocation215_spill] sm:$0xff]  ;;  %v5784_v44 = vld [vmem:[#allocation216_spill] sm:$0xff]  ;;  %v5785_v13 = vld [vmem:[#allocation217_spill] sm:$0xff]  ;;  %v829_v7 = vadd.f32 %v828_v3, %v3589_v46 }
 0x103   : > { %v734_v55 = vadd.f32 %v733_v26, %v5783_v19  ;;  %v741_v43 = vadd.f32 %v740_v4, %v5784_v44  ;;  %v748_v1 = vadd.f32 %v747_v41, %v5785_v13  ;;  %v5786_v15 = vld [vmem:[#allocation264_spill] sm:$0xff]  ;;  %v5787_v6 = vld [vmem:[#allocation265_spill] sm:$0xff]  ;;  %v5788_v37 = vld [vmem:[#allocation218_spill] sm:$0xff] }
 0x104   : > { %v808_v58 = vadd.f32 %v807_v60, %v5786_v15  ;;  %v815_v8 = vadd.f32 %v814_v35, %v5787_v6  ;;  %v755_v29 = vadd.f32 %v754_v53, %v5788_v37  ;;  %v5789_v16 = vld [vmem:[#allocation243_spill] sm:$0xff]  ;;  %v5790_v56 = vld [vmem:[#allocation244_spill] sm:$0xff]  ;;  %v5791_v50 = vld [vmem:[#allocation245_spill] sm:$0xff] }
 0x105   : > { %v762_v25 = vadd.f32 %v761_v22, %v5789_v16  ;;  %v769_v31 = vadd.f32 %v768_v45, %v5790_v56  ;;  %v776_v26 = vadd.f32 %v775_v28, %v5791_v50  ;;  %v5792_v40 = vld [vmem:[#allocation236_spill] sm:$0xff]  ;;  %v5793_v39 = vld [vmem:[#allocation237_spill] sm:$0xff]  ;;  %v5794_v19 = vld [vmem:[#allocation266_spill] sm:$0xff] }
 0x106   : > { %v781_v4 = vadd.f32 %v780_v38, %v5792_v40  ;;  %v788_v41 = vadd.f32 %v787_v30, %v5793_v39  ;;  %v795_v60 = vadd.f32 %v794_v0, %v5794_v19  ;;  %v5795_v44 = vld [vmem:[#allocation267_spill] sm:$0xff]  ;;  %v5797_v27 = vld [vmem:[#allocation220_spill] sm:$0xff]  ;;  %v5798_v3 = vld [vmem:[#allocation221_spill] sm:$0xff]  ;;  %v823_v38 = vadd.f32 %v822_v21, %v3465_v17 }
 0x107   : > { %v802_v35 = vadd.f32 %v801_v20, %v5795_v44  ;;  %v5796_v13 = vld [vmem:[#allocation219_spill] sm:$0xff]  ;;  %v735_v46 = vadd.f32 %v734_v55, %v5797_v27  ;;  %v742_v53 = vadd.f32 %v741_v43, %v5798_v3  ;;  %v5799_v15 = vld [vmem:[#allocation222_spill] sm:$0xff]  ;;  %v5800_v6 = vld [vmem:[#allocation268_spill] sm:$0xff]  ;;  %v830_v30 = vadd.f32 %v829_v7, %v3629_v63 }
 0x108   : > { %v728_v5 = vadd.f32 %v727_v51, %v5796_v13  ;;  %v749_v22 = vadd.f32 %v748_v1, %v5799_v15  ;;  %v809_v45 = vadd.f32 %v808_v58, %v5800_v6  ;;  %v5801_v37 = vld [vmem:[#allocation269_spill] sm:$0xff]  ;;  %v5802_v16 = vld [vmem:[#allocation223_spill] sm:$0xff]  ;;  %v5803_v56 = vld [vmem:[#allocation248_spill] sm:$0xff] }
 0x109   : > { %v816_v28 = vadd.f32 %v815_v8, %v5801_v37  ;;  %v756_v0 = vadd.f32 %v755_v29, %v5802_v16  ;;  %v763_v20 = vadd.f32 %v762_v25, %v5803_v56  ;;  %v5804_v50 = vld [vmem:[#allocation249_spill] sm:$0xff]  ;;  %v5805_v40 = vld [vmem:[#allocation250_spill] sm:$0xff]  ;;  %v5809_v13 = vld [vmem:[#allocation271_spill] sm:$0xff] }
 0x10a   : > { %v770_v51 = vadd.f32 %v769_v31, %v5804_v50  ;;  %v777_v55 = vadd.f32 %v776_v26, %v5805_v40  ;;  %v5806_v39 = vld [vmem:[#allocation241_spill] sm:$0xff]  ;;  %v5807_v19 = vld [vmem:[#allocation242_spill] sm:$0xff]  ;;  %v803_v8 = vadd.f32 %v802_v35, %v5809_v13  ;;  %v5810_v17 = vld [vmem:[#allocation287_spill] sm:$0xff]  ;;  %v831_v35 = vadd.f32 %v830_v30, %v3657_v23 }
 0x10b   : > { %v782_v43 = vadd.f32 %v781_v4, %v5806_v39  ;;  %v789_v1 = vadd.f32 %v788_v41, %v5807_v19  ;;  %v5808_v44 = vld [vmem:[#allocation270_spill] sm:$0xff]  ;;  %v834_v21 = vadd.f32 %v5810_v17, %v3533_v59  ;;  %v5811_v63 = vld [vmem:[#allocation288_spill] sm:$0xff]  ;;  %v5812_v29 = vld [vmem:[#allocation285_spill] sm:$0xff]  ;;  %v862_v13 = vmul.f32 1.442695, %v728_v5 }
 0x10c   : > { %v796_v58 = vadd.f32 %v795_v60, %v5808_v44  ;;  %v841_v7 = vadd.f32 %v5811_v63, %v3537_v62  ;;  %v5813_v25 = vld [vmem:[#allocation289_spill] sm:$0xff]  ;;  %v5814_v31 = vld [vmem:[#allocation290_spill] sm:$0xff]  ;;  %v5815_v3 = vld [vmem:[#allocation272_spill] sm:$0xff] }
 0x10d   : > { %v848_v27 = vadd.f32 %v5813_v25, %v5812_v29  ;;  %v855_v26 = vadd.f32 %v5814_v31, %v3545_v36  ;;  %v810_v4 = vadd.f32 %v809_v45, %v5815_v3  ;;  %v5816_v15 = vld [vmem:[#allocation273_spill] sm:$0xff]  ;;  %v5817_v6 = vld [vmem:[#allocation274_spill] sm:$0xff]  ;;  %v5818_v37 = vld [vmem:[#allocation291_spill] sm:$0xff]  ;;  %v868_v25 = vmul.f32 1.442695, %v749_v22 }
 0x10e   : > { %v817_v41 = vadd.f32 %v816_v28, %v5816_v15  ;;  %v824_v60 = vadd.f32 %v823_v38, %v5817_v6  ;;  %v835_v16 = vadd.f32 %v834_v21, %v5818_v37  ;;  %v842_v59 = vadd.f32 %v841_v7, %v3577_v14  ;;  %v5819_v56 = vld [vmem:[#allocation292_spill] sm:$0xff]  ;;  %v5820_v40 = vld [vmem:[#allocation246_spill] sm:$0xff]  ;;  %v5821_v19 = vld [vmem:[#allocation247_spill] sm:$0xff] }
 0x10f   : > { %v849_v62 = vadd.f32 %v848_v27, %v5819_v56  ;;  %v856_v50 = vadd.f32 %v855_v26, %v3585_v18  ;;  %v783_v39 = vadd.f32 %v782_v43, %v5820_v40  ;;  %v790_v36 = vadd.f32 %v789_v1, %v5821_v19  ;;  %v5822_v44 = vld [vmem:[#allocation275_spill] sm:$0xff]  ;;  %v5823_v14 = vld [vmem:[#allocation276_spill] sm:$0xff]  ;;  %v5824_v21 = vld [vmem:[#allocation277_spill] sm:$0xff] }
 0x110   : > { %v797_v45 = vadd.f32 %v796_v58, %v5822_v44  ;;  %v836_v28 = vadd.f32 %v835_v16, %v3593_v2  ;;  %v843_v38 = vadd.f32 %v842_v59, %v3597_v61  ;;  %v804_v17 = vadd.f32 %v803_v8, %v5823_v14  ;;  %v5825_v18 = vld [vmem:[#allocation278_spill] sm:$0xff]  ;;  %v5826_v29 = vld [vmem:[#allocation279_spill] sm:$0xff]  ;;  %v5828_v26 = vld [vmem:[#allocation252_spill] sm:$0xff] }
 0x111   : > { %v850_v23 = vadd.f32 %v849_v62, %v3601_v49  ;;  %v857_v30 = vadd.f32 %v856_v50, %v3605_v32  ;;  %v811_v63 = vadd.f32 %v810_v4, %v5824_v21  ;;  %v818_v7 = vadd.f32 %v817_v41, %v5825_v18  ;;  %v5827_v8 = vld [vmem:[#allocation251_spill] sm:$0xff]  ;;  %v5831_v41 = vld [vmem:[#allocation282_spill] sm:$0xff]  ;;  %v5833_v37 = vld [vmem:[#allocation284_spill] sm:$0xff] }
 0x112   : > { %v864_v43 = vmul.f32 1.442695, %v735_v46  ;;  %v837_v1 = vadd.f32 %v836_v28, %v3633_v11  ;;  %v844_v58 = vadd.f32 %v843_v38, %v3637_v9  ;;  %v866_v2 = vmul.f32 1.442695, %v742_v53  ;;  %v5829_v53 = vld [vmem:[#allocation280_spill] sm:$0xff]  ;;  %v5834_v59 = vld [vmem:[#allocation230_spill] sm:$0xff] }
 0x113   : > { %v851_v5 = vadd.f32 %v850_v23, %v3641_v42  ;;  %v825_v61 = vadd.f32 %v824_v60, %v5826_v29  ;;  %v832_v49 = vadd.f32 %v831_v35, %v3677_v57  ;;  %v858_v32 = vadd.f32 %v857_v30, %v3653_v48  ;;  %v5830_v48 = vld [vmem:[#allocation281_spill] sm:$0xff]  ;;  %v5832_v60 = vld [vmem:[#allocation283_spill] sm:$0xff]  ;;  %v5835_v62 = vld [vmem:[#allocation204_spill] sm:$0xff] }
 0x114   : > { %v784_v27 = vadd.f32 %v783_v39, %v5827_v8  ;;  %v838_v31 = vadd.f32 %v837_v1, %v3661_v34  ;;  %1690 = vpow2.f32 %v862_v13  ;;  %v870_v46 = vmul.f32 1.442695, %v756_v0  ;;  %v5836_v39 = vld [vmem:[#allocation205_spill] sm:$0xff]  ;;  %v5837_v44 = vld [vmem:[#allocation206_spill] sm:$0xff]  ;;  %v5838_v28 = vld [vmem:[#allocation207_spill] sm:$0xff] }
 0x115   : > { %v791_v11 = vadd.f32 %v790_v36, %v5828_v26  ;;  %v845_v9 = vadd.f32 %v844_v58, %v3665_v12  ;;  %1692 = vpow2.f32 %v864_v43  ;;  %v872_v42 = vmul.f32 1.442695, %v763_v20 }
 0x116   : > { %v798_v3 = vadd.f32 %v797_v45, %v5829_v53  ;;  %v852_v4 = vadd.f32 %v851_v5, %v3669_v47  ;;  %1694 = vpow2.f32 %v866_v2  ;;  %v874_v57 = vmul.f32 1.442695, %v770_v51 }
 0x117   : > { %v805_v22 = vadd.f32 %v804_v17, %v5830_v48  ;;  %v859_v15 = vadd.f32 %v858_v32, %v3673_v52  ;;  %1696 = vpow2.f32 %v868_v25  ;;  %v876_v34 = vmul.f32 1.442695, %v777_v55 }
 0x118   : > { %v812_v0 = vadd.f32 %v811_v63, %v5831_v41  ;;  %v839_v6 = vadd.f32 %v838_v31, %v3681_v24  ;;  %1698 = vpow2.f32 %v870_v46  ;;  %v878_v12 = vmul.f32 1.442695, %v784_v27 }
 0x119   : > { %v819_v20 = vadd.f32 %v818_v7, %v5832_v60  ;;  %v846_v35 = vadd.f32 %v845_v9, %v3693_v54  ;;  %1700 = vpow2.f32 %v872_v42  ;;  %v880_v47 = vmul.f32 1.442695, %v791_v11 }
 0x11a   : > { %v826_v51 = vadd.f32 %v825_v61, %v5833_v37  ;;  %v853_v16 = vadd.f32 %v852_v4, %v3697_v10  ;;  %1702 = vpow2.f32 %v874_v57  ;;  %v882_v52 = vmul.f32 1.442695, %v798_v3 }
 0x11b   : > { %v833_v55 = vadd.f32 %v832_v49, %v3705_v33  ;;  %v860_v56 = vadd.f32 %v859_v15, %v5834_v59  ;;  %1704 = vpow2.f32 %v876_v34  ;;  %v884_v24 = vmul.f32 1.442695, %v805_v22 }
 0x11c   : > { %v840_v50 = vadd.f32 %v839_v6, %v5835_v62  ;;  %1706 = vpow2.f32 %v878_v12  ;;  %v886_v40 = vmul.f32 1.442695, %v812_v0  ;;  %v847_v54 = vadd.f32 %v846_v35, %v5836_v39 }
 0x11d   : > { %1708 = vpow2.f32 %v880_v47  ;;  %v888_v19 = vmul.f32 1.442695, %v819_v20  ;;  %v854_v45 = vadd.f32 %v853_v16, %v5837_v44  ;;  %v890_v10 = vmul.f32 1.442695, %v826_v51 }
 0x11e   : > { %v1691_v36 = vpop.eup %1690  ;;  %1710 = vpow2.f32 %v882_v52  ;;  %v861_v33 = vadd.f32 %v860_v56, %v5838_v28  ;;  %v892_v38 = vmul.f32 1.442695, %v833_v55  ;;  %v894_v30 = vmul.f32 1.442695, %v840_v50 }
 0x11f   : > { %v1693_v13 = vpop.eup %1692  ;;  %1712 = vpow2.f32 %v884_v24  ;;  %v896_v17 = vmul.f32 1.442695, %v847_v54  ;;  %v898_v63 = vmul.f32 1.442695, %v854_v45 }
 0x120   : > { %v1695_v23 = vpop.eup %1694  ;;  %1714 = vpow2.f32 %v886_v40  ;;  %v900_v7 = vmul.f32 1.442695, %v861_v33  ;;  %v5839_v33 = vld [vmem:[#allocation11_spill] sm:$0xff] }
 0x121   : > { %v3847_v14 = vpop.eup %1696  ;;  %1716 = vpow2.f32 %v888_v19 }
 0x122   : > { %v3849_v21 = vpop.eup %1698  ;;  %1718 = vpow2.f32 %v890_v10 }
 0x123   : > { %v1701_v18 = vpop.eup %1700  ;;  %1720 = vpow2.f32 %v892_v38 }
 0x124   : > { %v1703_v43 = vpop.eup %1702  ;;  %1722 = vpow2.f32 %v894_v30  ;;  %v902_v5 = vadd.f32 %v1701_v18, %v1691_v36 }
 0x125   : > { %v1705_v1 = vpop.eup %1704  ;;  %1724 = vpow2.f32 %v896_v17  ;;  %v905_v29 = vadd.f32 %v1703_v43, %v1693_v13 }
 0x126   : > { %v1707_v58 = vpop.eup %1706  ;;  %1726 = vpow2.f32 %v898_v63  ;;  %v908_v49 = vadd.f32 %v1705_v1, %v1695_v23  ;;  %v5842_v63 = vld [vmem:[#allocation16_spill] sm:$0xff] }
 0x127   : > { %v1709_v2 = vpop.eup %1708  ;;  %1728 = vpow2.f32 %v900_v7  ;;  %v911_v25 = vadd.f32 %v1707_v58, %v3847_v14  ;;  %v5843_v7 = vld [vmem:[#allocation22_spill] sm:$0xff] }
 0x128   : > { %v1711_v61 = vpop.eup %1710  ;;  %v914_v31 = vadd.f32 %v1709_v2, %v3849_v21 }
 0x129   : > { %v1713_v32 = vpop.eup %1712  ;;  %v903_v27 = vadd.f32 %v1711_v61, %v902_v5 }
 0x12a   : > { %v1715_v8 = vpop.eup %1714  ;;  %v906_v26 = vadd.f32 %v1713_v32, %v905_v29 }
 0x12b   : > { %v1717_v46 = vpop.eup %1716  ;;  %v909_v9 = vadd.f32 %v1715_v8, %v908_v49 }
 0x12c   : > { %v1719_v11 = vpop.eup %1718  ;;  %v912_v53 = vadd.f32 %v1717_v46, %v911_v25 }
 0x12d   : > { %v1721_v42 = vpop.eup %1720  ;;  %v915_v57 = vadd.f32 %v1719_v11, %v914_v31  ;;  %v5850_v31 = vld [vmem:[#allocation20_spill] sm:$0xff] }
 0x12e   : > { %v1723_v3 = vpop.eup %1722  ;;  %v904_v4 = vadd.f32 %v1721_v42, %v903_v27 }
 0x12f   : > { %v1725_v48 = vpop.eup %1724  ;;  %v907_v22 = vadd.f32 %v1723_v3, %v906_v26  ;;  %v5851_v26 = vld [vmem:[#allocation21_spill] sm:$0xff] }
 0x130   : > { %v1727_v15 = vpop.eup %1726  ;;  %v910_v34 = vadd.f32 %v1725_v48, %v909_v9  ;;  %1730 = vrcp.f32 %v904_v4  ;;  %v5852_v9 = vld [vmem:[#allocation25_spill] sm:$0xff]  ;;  %v5855_v4 = vld [vmem:[#allocation24_spill] sm:$0xff] }
 0x131   : > { %v1729_v41 = vpop.eup %1728  ;;  %v913_v0 = vadd.f32 %v1727_v15, %v912_v53  ;;  %1732 = vrcp.f32 %v907_v22  ;;  %v5853_v53 = vld [vmem:[#allocation29_spill] sm:$0xff] }
 0x132   : > { %v916_v6 = vadd.f32 %v1729_v41, %v915_v57  ;;  %1734 = vrcp.f32 %v910_v34 }
 0x133   : > { %1736 = vrcp.f32 %v913_v0 }
 0x134   : > { %1738 = vrcp.f32 %v916_v6  ;;  %v5859_v6 = vld [vmem:[#allocation40_spill] sm:$0xff] }
 0x13a   : > { %v1731_v12 = vpop.eup %1730 }
 0x13b   : > { %v1733_v60 = vpop.eup %1732  ;;  %v922_v20 = vmul.f32 %v1731_v12, %v1691_v36  ;;  %v3853_v35 = vmul.f32 %v1731_v12, %v1701_v18  ;;  %v3855_v47 = vmul.f32 %v1731_v12, %v1711_v61  ;;  %v3857_v37 = vmul.f32 %v1731_v12, %v1721_v42  ;;  %v5847_v61 = vld [vmem:[#allocation18_spill] sm:$0xff] }
 0x13c   : > { %v1735_v51 = vpop.eup %1734  ;;  %v923_v16 = vmul.f32 %v1733_v60, %v1693_v13  ;;  %v3859_v52 = vmul.f32 %v1733_v60, %v1703_v43  ;;  %v3861_v55 = vmul.f32 %v1733_v60, %v1713_v32  ;;  %v3863_v59 = vmul.f32 %v1733_v60, %v1723_v3  ;;  %v5844_v43 = vld [vmem:[#allocation14_spill] sm:$0xff]  ;;  %v5848_v32 = vld [vmem:[#allocation23_spill] sm:$0xff] }
 0x13d   : > { %v1737_v56 = vpop.eup %1736  ;;  %v924_v24 = vmul.f32 %v1735_v51, %v1695_v23  ;;  %v3865_v62 = vmul.f32 %v1735_v51, %v1705_v1  ;;  %v3867_v50 = vmul.f32 %v1735_v51, %v1715_v8  ;;  %v3869_v40 = vmul.f32 %v1735_v51, %v1725_v48  ;;  %v5840_v23 = vld [vmem:[#allocation12_spill] sm:$0xff]  ;;  %v5849_v8 = vld [vmem:[#allocation19_spill] sm:$0xff]  ;;  %v5856_v48 = vld [vmem:[#allocation26_spill] sm:$0xff] }
 0x13e   : > { %v1739_v39 = vpop.eup %1738  ;;  %v925_v54 = vmul.f32 %v1737_v56, %v3847_v14  ;;  %v3872_v19 = vmul.f32 %v1737_v56, %v1707_v58  ;;  %v3874_v36 = vmul.f32 %v1737_v56, %v1717_v46  ;;  %v3876_v44 = vmul.f32 %v1737_v56, %v1727_v15  ;;  %v5841_v14 = vld [vmem:[#allocation13_spill] sm:$0xff]  ;;  %v5845_v58 = vld [vmem:[#allocation15_spill] sm:$0xff]  ;;  %v5861_v60 = vld [vmem:[#allocation30_spill] sm:$0xff] }
 0x13f   : > { %v926_v45 = vmul.f32 %v1739_v39, %v3849_v21  ;;  %v3879_v10 = vmul.f32 %v1739_v39, %v1709_v2  ;;  %v3881_v13 = vmul.f32 %v1739_v39, %v1719_v11  ;;  %v3883_v28 = vmul.f32 %v1739_v39, %v1729_v41  ;;  %v5846_v2 = vld [vmem:[#allocation17_spill] sm:$0xff]  ;;  %v5857_v15 = vld [vmem:[#allocation27_spill] sm:$0xff] }
 0x140   : > { %v3886_v38 = vmul.f32 %v922_v20, %v5839_v33  ;;  %v3889_v30 = vmul.f32 %v923_v16, %v5840_v23  ;;  %v3892_v17 = vmul.f32 %v924_v24, %v5841_v14  ;;  %v3895_v18 = vmul.f32 %v925_v54, %v5842_v63  ;;  %v5858_v41 = vld [vmem:[#allocation33_spill] sm:$0xff]  ;;  %v5862_v56 = vld [vmem:[#allocation31_spill] sm:$0xff]  ;;  %v5863_v33 = vld [vmem:[#allocation34_spill] sm:$0xff] }
 0x141   : > { %v3898_v21 = vmul.f32 %v926_v45, %v5843_v7  ;;  %v3901_v1 = vmul.f32 %v922_v20, %v5844_v43  ;;  %v3904_v5 = vmul.f32 %v923_v16, %v5845_v58  ;;  %v3907_v29 = vmul.f32 %v924_v24, %v5846_v2  ;;  %v5864_v14 = vld [vmem:[#allocation35_spill] sm:$0xff]  ;;  %v5865_v7 = vld [vmem:[#allocation41_spill] sm:$0xff]  ;;  %v5867_v58 = vld [vmem:[#allocation36_spill] sm:$0xff] }
 0x142   : > { %v3910_v49 = vmul.f32 %v925_v54, %v5847_v61  ;;  %v3913_v25 = vmul.f32 %v926_v45, %v5848_v32  ;;  %v3916_v27 = vmul.f32 %v922_v20, %v5849_v8  ;;  %v3919_v46 = vmul.f32 %v923_v16, %v5850_v31  ;;  %v5868_v61 = vld [vmem:[#allocation37_spill] sm:$0xff]  ;;  %v5869_v8 = vld [vmem:[#allocation38_spill] sm:$0xff] }
 0x143   : > { %v3922_v11 = vmul.f32 %v924_v24, %v5851_v26  ;;  %v3925_v42 = vmul.f32 %v925_v54, %v5852_v9  ;;  %v3928_v3 = vmul.f32 %v926_v45, %v5853_v53  ;;  %v3931_v57 = vmul.f32 %v922_v20, %v5855_v4  ;;  %v5870_v26 = vld [vmem:[#allocation43_spill] sm:$0xff] }
 0x144   : > { %v3934_v22 = vmul.f32 %v923_v16, %v5856_v48  ;;  %v3937_v34 = vmul.f32 %v924_v24, %v5857_v15  ;;  %v3940_v0 = vmul.f32 %v925_v54, %v5858_v41  ;;  %v3943_v12 = vmul.f32 %v926_v45, %v5859_v6  ;;  %v5871_v53 = vld [vmem:[#allocation47_spill] sm:$0xff]  ;;  %v5873_v48 = vld [vmem:[#allocation42_spill] sm:$0xff]  ;;  %v5874_v41 = vld [vmem:[#allocation44_spill] sm:$0xff] }
 0x145   : > { %5854 = vst [vmem:[#allocation203_spill] sm:$0xff] %v3928_v3  ;;  %v3946_v51 = vmul.f32 %v922_v20, %v5861_v60  ;;  %v3949_v39 = vmul.f32 %v923_v16, %v5862_v56  ;;  %v3952_v23 = vmul.f32 %v924_v24, %v5863_v33  ;;  %v3955_v63 = vmul.f32 %v925_v54, %v5864_v14  ;;  %v5875_v60 = vld [vmem:[#allocation45_spill] sm:$0xff]  ;;  %v5876_v33 = vld [vmem:[#allocation51_spill] sm:$0xff] }
 0x146   : > { %5860 = vst [vmem:[#allocation208_spill] sm:$0xff] %v3943_v12  ;;  %v3958_v43 = vmul.f32 %v926_v45, %v5865_v7  ;;  %v3961_v2 = vmul.f32 %v922_v20, %v5867_v58  ;;  %v3964_v32 = vmul.f32 %v923_v16, %v5868_v61  ;;  %v3967_v31 = vmul.f32 %v924_v24, %v5869_v8  ;;  %v5877_v7 = vld [vmem:[#allocation58_spill] sm:$0xff]  ;;  %v5878_v61 = vld [vmem:[#allocation48_spill] sm:$0xff] }
 0x147   : > { %v3970_v9 = vmul.f32 %v925_v54, %v5870_v26  ;;  %v3973_v4 = vmul.f32 %v926_v45, %v5871_v53  ;;  %v3976_v15 = vmul.f32 %v922_v20, %v5873_v48  ;;  %v3979_v6 = vmul.f32 %v923_v16, %v5874_v41  ;;  %v5879_v26 = vld [vmem:[#allocation49_spill] sm:$0xff]  ;;  %v5880_v48 = vld [vmem:[#allocation52_spill] sm:$0xff] }
 0x148   : > { %5866 = vst [vmem:[#allocation233_spill] sm:$0xff] %v3958_v43  ;;  %v3982_v56 = vmul.f32 %v924_v24, %v5875_v60  ;;  %v3985_v14 = vmul.f32 %v925_v54, %v5876_v33  ;;  %v3988_v58 = vmul.f32 %v926_v45, %v5877_v7  ;;  %v3991_v8 = vmul.f32 %v922_v20, %v5878_v61  ;;  %v5881_v41 = vld [vmem:[#allocation53_spill] sm:$0xff]  ;;  %v5882_v60 = vld [vmem:[#allocation59_spill] sm:$0xff]  ;;  %v5883_v33 = vld [vmem:[#allocation54_spill] sm:$0xff] }
 0x149   : > { %5872 = vst [vmem:[#allocation234_spill] sm:$0xff] %v3973_v4  ;;  %v3994_v53 = vmul.f32 %v923_v16, %v5879_v26  ;;  %v3997_v4 = vmul.f32 %v924_v24, %v5880_v48  ;;  %v4000_v43 = vmul.f32 %v925_v54, %v5881_v41  ;;  %v4003_v12 = vmul.f32 %v926_v45, %v5882_v60  ;;  %v5884_v7 = vld [vmem:[#allocation55_spill] sm:$0xff]  ;;  %v5885_v61 = vld [vmem:[#allocation56_spill] sm:$0xff]  ;;  %v5887_v24 = vld [vmem:[#allocation61_spill] sm:$0xff] }
 0x14a   : > { %v4007_v3 = vmul.f32 %v3853_v35, %v5883_v33  ;;  %v4011_v20 = vmul.f32 %v3859_v52, %v5884_v7  ;;  %v4015_v16 = vmul.f32 %v3865_v62, %v5885_v61  ;;  %v4019_v26 = vmul.f32 %v3872_v19, %v5887_v24  ;;  %v5889_v54 = vld [vmem:[#allocation65_spill] sm:$0xff]  ;;  %v5891_v48 = vld [vmem:[#allocation60_spill] sm:$0xff]  ;;  %v5893_v60 = vld [vmem:[#allocation62_spill] sm:$0xff] }
 0x14b   : > { %v4023_v45 = vmul.f32 %v3879_v10, %v5889_v54  ;;  %v4027_v41 = vmul.f32 %v3853_v35, %v5891_v48  ;;  %v4031_v33 = vmul.f32 %v3859_v52, %v5893_v60  ;;  %v5895_v7 = vld [vmem:[#allocation63_spill] sm:$0xff] }
 0x14c   : > { %5886 = vst [vmem:[#allocation235_spill] sm:$0xff] %v4015_v16  ;;  %5888 = vst [vmem:[#allocation209_spill] sm:$0xff] %v4019_v26  ;;  %v4035_v61 = vmul.f32 %v3865_v62, %v5895_v7  ;;  %v5897_v16 = vld [vmem:[#allocation69_spill] sm:$0xff]  ;;  %v5899_v26 = vld [vmem:[#allocation76_spill] sm:$0xff] }
 0x14d   : > { %5890 = vst [vmem:[#allocation210_spill] sm:$0xff] %v4023_v45  ;;  %5892 = vst [vmem:[#allocation211_spill] sm:$0xff] %v4027_v41  ;;  %v4039_v24 = vmul.f32 %v3872_v19, %v5897_v16  ;;  %v4043_v54 = vmul.f32 %v3879_v10, %v5899_v26  ;;  %v5901_v45 = vld [vmem:[#allocation66_spill] sm:$0xff]  ;;  %v5903_v41 = vld [vmem:[#allocation67_spill] sm:$0xff] }
 0x14e   : > { %5894 = vst [vmem:[#allocation212_spill] sm:$0xff] %v4031_v33  ;;  %5896 = vst [vmem:[#allocation224_spill] sm:$0xff] %v4035_v61  ;;  %v4047_v48 = vmul.f32 %v3853_v35, %v5901_v45  ;;  %v4051_v60 = vmul.f32 %v3859_v52, %v5903_v41  ;;  %v5905_v33 = vld [vmem:[#allocation70_spill] sm:$0xff]  ;;  %v5907_v61 = vld [vmem:[#allocation71_spill] sm:$0xff] }
 0x14f   : > { %5898 = vst [vmem:[#allocation226_spill] sm:$0xff] %v4039_v24  ;;  %5900 = vst [vmem:[#allocation225_spill] sm:$0xff] %v4043_v54  ;;  %v4055_v7 = vmul.f32 %v3865_v62, %v5905_v33  ;;  %v4059_v16 = vmul.f32 %v3872_v19, %v5907_v61  ;;  %v5909_v24 = vld [vmem:[#allocation77_spill] sm:$0xff]  ;;  %v5911_v54 = vld [vmem:[#allocation72_spill] sm:$0xff] }
 0x150   : > { %5902 = vst [vmem:[#allocation227_spill] sm:$0xff] %v4047_v48  ;;  %5904 = vst [vmem:[#allocation254_spill] sm:$0xff] %v4051_v60  ;;  %v4063_v26 = vmul.f32 %v3879_v10, %v5909_v24  ;;  %v4067_v45 = vmul.f32 %v3853_v35, %v5911_v54  ;;  %v5913_v48 = vld [vmem:[#allocation73_spill] sm:$0xff]  ;;  %v5915_v60 = vld [vmem:[#allocation74_spill] sm:$0xff] }
 0x151   : > { %5906 = vst [vmem:[#allocation253_spill] sm:$0xff] %v4055_v7  ;;  %5908 = vst [vmem:[#allocation255_spill] sm:$0xff] %v4059_v16  ;;  %v4071_v41 = vmul.f32 %v3859_v52, %v5913_v48  ;;  %v4075_v33 = vmul.f32 %v3865_v62, %v5915_v60  ;;  %v5917_v7 = vld [vmem:[#allocation79_spill] sm:$0xff] }
 0x152   : > { %5910 = vst [vmem:[#allocation256_spill] sm:$0xff] %v4063_v26  ;;  %5912 = vst [vmem:[#allocation257_spill] sm:$0xff] %v4067_v45  ;;  %v4079_v61 = vmul.f32 %v3872_v19, %v5917_v7  ;;  %v5919_v16 = vld [vmem:[#allocation83_spill] sm:$0xff]  ;;  %v5921_v26 = vld [vmem:[#allocation78_spill] sm:$0xff] }
 0x153   : > { %5914 = vst [vmem:[#allocation286_spill] sm:$0xff] %v4071_v41  ;;  %5916 = vst [vmem:[#allocation228_spill] sm:$0xff] %v4075_v33  ;;  %v4083_v24 = vmul.f32 %v3879_v10, %v5919_v16  ;;  %v4087_v54 = vmul.f32 %v3853_v35, %v5921_v26  ;;  %v5923_v45 = vld [vmem:[#allocation80_spill] sm:$0xff]  ;;  %v5925_v41 = vld [vmem:[#allocation81_spill] sm:$0xff] }
 0x154   : > { %5918 = vst [vmem:[#allocation229_spill] sm:$0xff] %v4079_v61  ;;  %v4091_v48 = vmul.f32 %v3859_v52, %v5923_v45  ;;  %v4095_v60 = vmul.f32 %v3865_v62, %v5925_v41  ;;  %v5927_v33 = vld [vmem:[#allocation87_spill] sm:$0xff]  ;;  %v5929_v61 = vld [vmem:[#allocation94_spill] sm:$0xff] }
 0x155   : > { %5920 = vst [vmem:[#allocation258_spill] sm:$0xff] %v4083_v24  ;;  %5922 = vst [vmem:[#allocation259_spill] sm:$0xff] %v4087_v54  ;;  %v4099_v7 = vmul.f32 %v3872_v19, %v5927_v33  ;;  %v4103_v16 = vmul.f32 %v3879_v10, %v5929_v61  ;;  %v5931_v24 = vld [vmem:[#allocation84_spill] sm:$0xff]  ;;  %v5933_v54 = vld [vmem:[#allocation85_spill] sm:$0xff] }
 0x156   : > { %5924 = vst [vmem:[#allocation260_spill] sm:$0xff] %v4091_v48  ;;  %5926 = vst [vmem:[#allocation261_spill] sm:$0xff] %v4095_v60  ;;  %v4107_v26 = vmul.f32 %v3853_v35, %v5931_v24  ;;  %v4111_v45 = vmul.f32 %v3859_v52, %v5933_v54  ;;  %v5935_v48 = vld [vmem:[#allocation88_spill] sm:$0xff]  ;;  %v5937_v60 = vld [vmem:[#allocation89_spill] sm:$0xff] }
 0x157   : > { %5928 = vst [vmem:[#allocation213_spill] sm:$0xff] %v4099_v7  ;;  %5930 = vst [vmem:[#allocation238_spill] sm:$0xff] %v4103_v16  ;;  %v4115_v41 = vmul.f32 %v3865_v62, %v5935_v48  ;;  %v4119_v33 = vmul.f32 %v3872_v19, %v5937_v60  ;;  %v5939_v7 = vld [vmem:[#allocation95_spill] sm:$0xff]  ;;  %v5941_v16 = vld [vmem:[#allocation90_spill] sm:$0xff] }
 0x158   : > { %5932 = vst [vmem:[#allocation239_spill] sm:$0xff] %v4107_v26  ;;  %5934 = vst [vmem:[#allocation240_spill] sm:$0xff] %v4111_v45  ;;  %v4123_v61 = vmul.f32 %v3879_v10, %v5939_v7  ;;  %v4127_v24 = vmul.f32 %v3853_v35, %v5941_v16  ;;  %v5943_v26 = vld [vmem:[#allocation91_spill] sm:$0xff]  ;;  %v5945_v45 = vld [vmem:[#allocation92_spill] sm:$0xff] }
 0x159   : > { %5936 = vst [vmem:[#allocation231_spill] sm:$0xff] %v4115_v41  ;;  %5938 = vst [vmem:[#allocation232_spill] sm:$0xff] %v4119_v33  ;;  %v4131_v54 = vmul.f32 %v3859_v52, %v5943_v26  ;;  %v4135_v48 = vmul.f32 %v3865_v62, %v5945_v45  ;;  %v5947_v41 = vld [vmem:[#allocation97_spill] sm:$0xff] }
 0x15a   : > { %5940 = vst [vmem:[#allocation262_spill] sm:$0xff] %v4123_v61  ;;  %5942 = vst [vmem:[#allocation263_spill] sm:$0xff] %v4127_v24  ;;  %v4139_v60 = vmul.f32 %v3872_v19, %v5947_v41  ;;  %v5949_v33 = vld [vmem:[#allocation101_spill] sm:$0xff]  ;;  %v5951_v61 = vld [vmem:[#allocation96_spill] sm:$0xff] }
 0x15b   : > { %5944 = vst [vmem:[#allocation214_spill] sm:$0xff] %v4131_v54  ;;  %5946 = vst [vmem:[#allocation215_spill] sm:$0xff] %v4135_v48  ;;  %v4143_v7 = vmul.f32 %v3879_v10, %v5949_v33  ;;  %v4147_v16 = vmul.f32 %v3853_v35, %v5951_v61  ;;  %v5952_v24 = vld [vmem:[#allocation98_spill] sm:$0xff]  ;;  %v5953_v54 = vld [vmem:[#allocation99_spill] sm:$0xff] }
 0x15c   : > { %5948 = vst [vmem:[#allocation216_spill] sm:$0xff] %v4139_v60  ;;  %v4151_v26 = vmul.f32 %v3859_v52, %v5952_v24  ;;  %v4155_v45 = vmul.f32 %v3865_v62, %v5953_v54  ;;  %v5954_v48 = vld [vmem:[#allocation105_spill] sm:$0xff]  ;;  %v5955_v60 = vld [vmem:[#allocation112_spill] sm:$0xff]  ;;  %v5958_v61 = vld [vmem:[#allocation103_spill] sm:$0xff] }
 0x15d   : > { %5950 = vst [vmem:[#allocation217_spill] sm:$0xff] %v4143_v7  ;;  %v4159_v41 = vmul.f32 %v3872_v19, %v5954_v48  ;;  %v4163_v33 = vmul.f32 %v3879_v10, %v5955_v60  ;;  %v5956_v7 = vld [vmem:[#allocation102_spill] sm:$0xff]  ;;  %v4171_v52 = vmul.f32 %v3861_v55, %v5958_v61  ;;  %v5962_v54 = vld [vmem:[#allocation107_spill] sm:$0xff]  ;;  %v5964_v48 = vld [vmem:[#allocation113_spill] sm:$0xff] }
 0x15e   : > { %v4167_v35 = vmul.f32 %v3855_v47, %v5956_v7  ;;  %v5960_v24 = vld [vmem:[#allocation106_spill] sm:$0xff]  ;;  %v4179_v19 = vmul.f32 %v3874_v36, %v5962_v54  ;;  %v4183_v10 = vmul.f32 %v3881_v13, %v5964_v48  ;;  %v5966_v60 = vld [vmem:[#allocation108_spill] sm:$0xff] }
 0x15f   : > { %5959 = vst [vmem:[#allocation265_spill] sm:$0xff] %v4171_v52  ;;  %v4175_v62 = vmul.f32 %v3867_v50, %v5960_v24  ;;  %v4187_v7 = vmul.f32 %v3855_v47, %v5966_v60  ;;  %v5970_v52 = vld [vmem:[#allocation110_spill] sm:$0xff] }
 0x160   : > { %5957 = vst [vmem:[#allocation264_spill] sm:$0xff] %v4167_v35  ;;  %5963 = vst [vmem:[#allocation243_spill] sm:$0xff] %v4179_v19  ;;  %v5968_v35 = vld [vmem:[#allocation109_spill] sm:$0xff]  ;;  %v4195_v24 = vmul.f32 %v3867_v50, %v5970_v52  ;;  %v5974_v19 = vld [vmem:[#allocation119_spill] sm:$0xff] }
 0x161   : > { %5961 = vst [vmem:[#allocation218_spill] sm:$0xff] %v4175_v62  ;;  %5965 = vst [vmem:[#allocation244_spill] sm:$0xff] %v4183_v10  ;;  %v4191_v61 = vmul.f32 %v3861_v55, %v5968_v35  ;;  %v5972_v62 = vld [vmem:[#allocation115_spill] sm:$0xff]  ;;  %v4203_v48 = vmul.f32 %v3881_v13, %v5974_v19  ;;  %v5976_v10 = vld [vmem:[#allocation114_spill] sm:$0xff] }
 0x162   : > { %5967 = vst [vmem:[#allocation245_spill] sm:$0xff] %v4187_v7  ;;  %5971 = vst [vmem:[#allocation237_spill] sm:$0xff] %v4195_v24  ;;  %v4199_v54 = vmul.f32 %v3874_v36, %v5972_v62  ;;  %v4207_v60 = vmul.f32 %v3855_v47, %v5976_v10  ;;  %v5978_v7 = vld [vmem:[#allocation116_spill] sm:$0xff]  ;;  %v5982_v24 = vld [vmem:[#allocation123_spill] sm:$0xff] }
 0x163   : > { %5969 = vst [vmem:[#allocation236_spill] sm:$0xff] %v4191_v61  ;;  %5975 = vst [vmem:[#allocation267_spill] sm:$0xff] %v4203_v48  ;;  %v4211_v35 = vmul.f32 %v3861_v55, %v5978_v7  ;;  %v5980_v61 = vld [vmem:[#allocation117_spill] sm:$0xff]  ;;  %v4219_v62 = vmul.f32 %v3874_v36, %v5982_v24  ;;  %v5986_v48 = vld [vmem:[#allocation120_spill] sm:$0xff] }
 0x164   : > { %5973 = vst [vmem:[#allocation266_spill] sm:$0xff] %v4199_v54  ;;  %5977 = vst [vmem:[#allocation219_spill] sm:$0xff] %v4207_v60  ;;  %v4215_v52 = vmul.f32 %v3867_v50, %v5980_v61  ;;  %v5984_v54 = vld [vmem:[#allocation130_spill] sm:$0xff]  ;;  %v4227_v10 = vmul.f32 %v3855_v47, %v5986_v48  ;;  %v5988_v60 = vld [vmem:[#allocation121_spill] sm:$0xff] }
 0x165   : > { %5979 = vst [vmem:[#allocation220_spill] sm:$0xff] %v4211_v35  ;;  %5983 = vst [vmem:[#allocation222_spill] sm:$0xff] %v4219_v62  ;;  %v4223_v19 = vmul.f32 %v3881_v13, %v5984_v54  ;;  %v4231_v7 = vmul.f32 %v3861_v55, %v5988_v60  ;;  %v5990_v35 = vld [vmem:[#allocation124_spill] sm:$0xff]  ;;  %v5994_v62 = vld [vmem:[#allocation131_spill] sm:$0xff] }
 0x166   : > { %5981 = vst [vmem:[#allocation221_spill] sm:$0xff] %v4215_v52  ;;  %5987 = vst [vmem:[#allocation269_spill] sm:$0xff] %v4227_v10  ;;  %v4235_v61 = vmul.f32 %v3867_v50, %v5990_v35  ;;  %v5992_v52 = vld [vmem:[#allocation125_spill] sm:$0xff]  ;;  %v4243_v54 = vmul.f32 %v3881_v13, %v5994_v62  ;;  %v5998_v10 = vld [vmem:[#allocation127_spill] sm:$0xff] }
 0x167   : > { %5985 = vst [vmem:[#allocation268_spill] sm:$0xff] %v4223_v19  ;;  %5989 = vst [vmem:[#allocation223_spill] sm:$0xff] %v4231_v7  ;;  %v4239_v24 = vmul.f32 %v3874_v36, %v5992_v52  ;;  %v5996_v19 = vld [vmem:[#allocation126_spill] sm:$0xff]  ;;  %v4251_v60 = vmul.f32 %v3861_v55, %v5998_v10  ;;  %v6000_v7 = vld [vmem:[#allocation128_spill] sm:$0xff] }
 0x168   : > { %5991 = vst [vmem:[#allocation248_spill] sm:$0xff] %v4235_v61  ;;  %5995 = vst [vmem:[#allocation250_spill] sm:$0xff] %v4243_v54  ;;  %v4247_v48 = vmul.f32 %v3855_v47, %v5996_v19  ;;  %v4255_v35 = vmul.f32 %v3867_v50, %v6000_v7  ;;  %v6002_v61 = vld [vmem:[#allocation133_spill] sm:$0xff]  ;;  %v6006_v54 = vld [vmem:[#allocation132_spill] sm:$0xff] }
 0x169   : > { %5993 = vst [vmem:[#allocation249_spill] sm:$0xff] %v4239_v24  ;;  %5999 = vst [vmem:[#allocation242_spill] sm:$0xff] %v4251_v60  ;;  %v4259_v52 = vmul.f32 %v3874_v36, %v6002_v61  ;;  %v6004_v24 = vld [vmem:[#allocation137_spill] sm:$0xff]  ;;  %v4267_v19 = vmul.f32 %v3855_v47, %v6006_v54  ;;  %v6010_v60 = vld [vmem:[#allocation135_spill] sm:$0xff] }
 0x16a   : > { %5997 = vst [vmem:[#allocation241_spill] sm:$0xff] %v4247_v48  ;;  %6001 = vst [vmem:[#allocation270_spill] sm:$0xff] %v4255_v35  ;;  %v4263_v62 = vmul.f32 %v3881_v13, %v6004_v24  ;;  %v6008_v48 = vld [vmem:[#allocation134_spill] sm:$0xff]  ;;  %v4275_v7 = vmul.f32 %v3867_v50, %v6010_v60  ;;  %v6012_v35 = vld [vmem:[#allocation141_spill] sm:$0xff] }
 0x16b   : > { %6003 = vst [vmem:[#allocation271_spill] sm:$0xff] %v4259_v52  ;;  %6007 = vst [vmem:[#allocation288_spill] sm:$0xff] %v4267_v19  ;;  %v4271_v10 = vmul.f32 %v3861_v55, %v6008_v48  ;;  %v4279_v61 = vmul.f32 %v3874_v36, %v6012_v35  ;;  %v6014_v52 = vld [vmem:[#allocation148_spill] sm:$0xff]  ;;  %v6018_v19 = vld [vmem:[#allocation139_spill] sm:$0xff] }
 0x16c   : > { %6005 = vst [vmem:[#allocation287_spill] sm:$0xff] %v4263_v62  ;;  %6011 = vst [vmem:[#allocation289_spill] sm:$0xff] %v4275_v7  ;;  %v4283_v24 = vmul.f32 %v3881_v13, %v6014_v52  ;;  %v6016_v62 = vld [vmem:[#allocation138_spill] sm:$0xff]  ;;  %v4291_v48 = vmul.f32 %v3861_v55, %v6018_v19  ;;  %v6022_v7 = vld [vmem:[#allocation143_spill] sm:$0xff] }
 0x16d   : > { %6009 = vst [vmem:[#allocation285_spill] sm:$0xff] %v4271_v10  ;;  %6013 = vst [vmem:[#allocation290_spill] sm:$0xff] %v4279_v61  ;;  %v4287_v54 = vmul.f32 %v3855_v47, %v6016_v62  ;;  %v6020_v10 = vld [vmem:[#allocation142_spill] sm:$0xff]  ;;  %v4299_v35 = vmul.f32 %v3874_v36, %v6022_v7  ;;  %v6024_v61 = vld [vmem:[#allocation149_spill] sm:$0xff] }
 0x16e   : > { %6015 = vst [vmem:[#allocation272_spill] sm:$0xff] %v4283_v24  ;;  %6019 = vst [vmem:[#allocation274_spill] sm:$0xff] %v4291_v48  ;;  %v4295_v60 = vmul.f32 %v3867_v50, %v6020_v10  ;;  %v4303_v52 = vmul.f32 %v3881_v13, %v6024_v61  ;;  %v6026_v24 = vld [vmem:[#allocation144_spill] sm:$0xff]  ;;  %v6028_v48 = vld [vmem:[#allocation146_spill] sm:$0xff] }
 0x16f   : > { %6017 = vst [vmem:[#allocation273_spill] sm:$0xff] %v4287_v54  ;;  %6023 = vst [vmem:[#allocation292_spill] sm:$0xff] %v4299_v35  ;;  %v4307_v62 = vmul.f32 %v3855_v47, %v6026_v24  ;;  %v6027_v54 = vld [vmem:[#allocation145_spill] sm:$0xff]  ;;  %v4315_v10 = vmul.f32 %v3867_v50, %v6028_v48  ;;  %v6030_v35 = vld [vmem:[#allocation155_spill] sm:$0xff] }
 0x170   : > { %6021 = vst [vmem:[#allocation291_spill] sm:$0xff] %v4295_v60  ;;  %6025 = vst [vmem:[#allocation246_spill] sm:$0xff] %v4303_v52  ;;  %v4311_v19 = vmul.f32 %v3861_v55, %v6027_v54  ;;  %v6029_v60 = vld [vmem:[#allocation151_spill] sm:$0xff]  ;;  %v4323_v61 = vmul.f32 %v3881_v13, %v6030_v35  ;;  %v6031_v52 = vld [vmem:[#allocation150_spill] sm:$0xff] }
 0x171   : > { %v4319_v7 = vmul.f32 %v3874_v36, %v6029_v60  ;;  %v4327_v47 = vmul.f32 %v3857_v37, %v6031_v52  ;;  %v6033_v24 = vld [vmem:[#allocation152_spill] sm:$0xff]  ;;  %v6035_v54 = vld [vmem:[#allocation153_spill] sm:$0xff]  ;;  %v6037_v48 = vld [vmem:[#allocation159_spill] sm:$0xff] }
 0x172   : > { %v4331_v55 = vmul.f32 %v3863_v59, %v6033_v24  ;;  %v4335_v50 = vmul.f32 %v3869_v40, %v6035_v54  ;;  %v4339_v36 = vmul.f32 %v3876_v44, %v6037_v48  ;;  %v6039_v60 = vld [vmem:[#allocation166_spill] sm:$0xff]  ;;  %v6041_v35 = vld [vmem:[#allocation156_spill] sm:$0xff] }
 0x173   : > { %6032 = vst [vmem:[#allocation247_spill] sm:$0xff] %v4327_v47  ;;  %v4343_v13 = vmul.f32 %v3883_v28, %v6039_v60  ;;  %v4347_v52 = vmul.f32 %v3857_v37, %v6041_v35  ;;  %v6043_v47 = vld [vmem:[#allocation157_spill] sm:$0xff] }
 0x174   : > { %6034 = vst [vmem:[#allocation275_spill] sm:$0xff] %v4331_v55  ;;  %6036 = vst [vmem:[#allocation276_spill] sm:$0xff] %v4335_v50  ;;  %v4351_v24 = vmul.f32 %v3863_v59, %v6043_v47  ;;  %v6045_v55 = vld [vmem:[#allocation160_spill] sm:$0xff]  ;;  %v6047_v50 = vld [vmem:[#allocation161_spill] sm:$0xff] }
 0x175   : > { %6038 = vst [vmem:[#allocation277_spill] sm:$0xff] %v4339_v36  ;;  %6040 = vst [vmem:[#allocation278_spill] sm:$0xff] %v4343_v13  ;;  %v4355_v54 = vmul.f32 %v3869_v40, %v6045_v55  ;;  %v4359_v48 = vmul.f32 %v3876_v44, %v6047_v50  ;;  %v6049_v36 = vld [vmem:[#allocation167_spill] sm:$0xff]  ;;  %v6051_v13 = vld [vmem:[#allocation162_spill] sm:$0xff] }
 0x176   : > { %6042 = vst [vmem:[#allocation279_spill] sm:$0xff] %v4347_v52  ;;  %6044 = vst [vmem:[#allocation251_spill] sm:$0xff] %v4351_v24  ;;  %v4363_v60 = vmul.f32 %v3883_v28, %v6049_v36  ;;  %v4367_v35 = vmul.f32 %v3857_v37, %v6051_v13  ;;  %v6053_v52 = vld [vmem:[#allocation163_spill] sm:$0xff]  ;;  %v6055_v24 = vld [vmem:[#allocation164_spill] sm:$0xff] }
 0x177   : > { %6046 = vst [vmem:[#allocation252_spill] sm:$0xff] %v4355_v54  ;;  %6048 = vst [vmem:[#allocation280_spill] sm:$0xff] %v4359_v48  ;;  %v4371_v47 = vmul.f32 %v3863_v59, %v6053_v52  ;;  %v4375_v55 = vmul.f32 %v3869_v40, %v6055_v24  ;;  %v6057_v54 = vld [vmem:[#allocation169_spill] sm:$0xff] }
 0x178   : > { %6050 = vst [vmem:[#allocation281_spill] sm:$0xff] %v4363_v60  ;;  %6052 = vst [vmem:[#allocation282_spill] sm:$0xff] %v4367_v35  ;;  %v4379_v50 = vmul.f32 %v3876_v44, %v6057_v54  ;;  %v6059_v48 = vld [vmem:[#allocation173_spill] sm:$0xff]  ;;  %v6061_v60 = vld [vmem:[#allocation168_spill] sm:$0xff] }
 0x179   : > { %6054 = vst [vmem:[#allocation283_spill] sm:$0xff] %v4371_v47  ;;  %6056 = vst [vmem:[#allocation284_spill] sm:$0xff] %v4375_v55  ;;  %v4383_v36 = vmul.f32 %v3883_v28, %v6059_v48  ;;  %v4387_v13 = vmul.f32 %v3857_v37, %v6061_v60  ;;  %v6063_v35 = vld [vmem:[#allocation170_spill] sm:$0xff]  ;;  %v6065_v47 = vld [vmem:[#allocation171_spill] sm:$0xff] }
 0x17a   : > { %6058 = vst [vmem:[#allocation230_spill] sm:$0xff] %v4379_v50  ;;  %v4391_v52 = vmul.f32 %v3863_v59, %v6063_v35  ;;  %v4395_v24 = vmul.f32 %v3869_v40, %v6065_v47  ;;  %v6067_v55 = vld [vmem:[#allocation177_spill] sm:$0xff]  ;;  %v6069_v50 = vld [vmem:[#allocation183_spill] sm:$0xff] }
 0x17b   : > { %6060 = vst [vmem:[#allocation204_spill] sm:$0xff] %v4383_v36  ;;  %6062 = vst [vmem:[#allocation205_spill] sm:$0xff] %v4387_v13  ;;  %v4399_v54 = vmul.f32 %v3876_v44, %v6067_v55  ;;  %v4403_v48 = vmul.f32 %v3883_v28, %v6069_v50  ;;  %v6071_v36 = vld [vmem:[#allocation174_spill] sm:$0xff]  ;;  %v6073_v13 = vld [vmem:[#allocation175_spill] sm:$0xff] }
 0x17c   : > { %6064 = vst [vmem:[#allocation206_spill] sm:$0xff] %v4391_v52  ;;  %6066 = vst [vmem:[#allocation207_spill] sm:$0xff] %v4395_v24  ;;  %v4407_v60 = vmul.f32 %v3857_v37, %v6071_v36  ;;  %v4411_v35 = vmul.f32 %v3863_v59, %v6073_v13  ;;  %v6075_v52 = vld [vmem:[#allocation178_spill] sm:$0xff]  ;;  %v6077_v24 = vld [vmem:[#allocation179_spill] sm:$0xff] }
 0x17d   : > { %6068 = vst [vmem:[#allocation293_spill] sm:$0xff] %v4399_v54  ;;  %6070 = vst [vmem:[#allocation294_spill] sm:$0xff] %v4403_v48  ;;  %v4415_v47 = vmul.f32 %v3869_v40, %v6075_v52  ;;  %v4419_v55 = vmul.f32 %v3876_v44, %v6077_v24  ;;  %v6079_v54 = vld [vmem:[#allocation184_spill] sm:$0xff] }
 0x17e   : > { %6072 = vst [vmem:[#allocation295_spill] sm:$0xff] %v4407_v60  ;;  %6074 = vst [vmem:[#allocation296_spill] sm:$0xff] %v4411_v35  ;;  %v4423_v50 = vmul.f32 %v3883_v28, %v6079_v54  ;;  %v6081_v48 = vld [vmem:[#allocation180_spill] sm:$0xff]  ;;  %v6083_v60 = vld [vmem:[#allocation181_spill] sm:$0xff] }
 0x17f   : > { %6076 = vst [vmem:[#allocation297_spill] sm:$0xff] %v4415_v47  ;;  %6078 = vst [vmem:[#allocation298_spill] sm:$0xff] %v4419_v55  ;;  %v4427_v36 = vmul.f32 %v3857_v37, %v6081_v48  ;;  %v4431_v13 = vmul.f32 %v3863_v59, %v6083_v60  ;;  %v6085_v35 = vld [vmem:[#allocation182_spill] sm:$0xff]  ;;  %v6089_v55 = vld [vmem:[#allocation192_spill] sm:$0xff] }
 0x180   : > { %6080 = vst [vmem:[#allocation299_spill] sm:$0xff] %v4423_v50  ;;  %v4435_v52 = vmul.f32 %v3869_v40, %v6085_v35  ;;  %v6087_v47 = vld [vmem:[#allocation186_spill] sm:$0xff]  ;;  %v4443_v54 = vmul.f32 %v3883_v28, %v6089_v55  ;;  %v6091_v50 = vld [vmem:[#allocation185_spill] sm:$0xff] }
 0x181   : > { %6082 = vst [vmem:[#allocation300_spill] sm:$0xff] %v4427_v36  ;;  %6084 = vst [vmem:[#allocation301_spill] sm:$0xff] %v4431_v13  ;;  %v4439_v24 = vmul.f32 %v3876_v44, %v6087_v47  ;;  %v4447_v48 = vmul.f32 %v3857_v37, %v6091_v50  ;;  %v6093_v36 = vld [vmem:[#allocation187_spill] sm:$0xff]  ;;  %v6095_v13 = vld [vmem:[#allocation188_spill] sm:$0xff] }
 0x182   : > { %6086 = vst [vmem:[#allocation302_spill] sm:$0xff] %v4435_v52  ;;  %6090 = vst [vmem:[#allocation304_spill] sm:$0xff] %v4443_v54  ;;  %v4451_v60 = vmul.f32 %v3863_v59, %v6093_v36  ;;  %v4455_v35 = vmul.f32 %v3869_v40, %v6095_v13  ;;  %v6097_v52 = vld [vmem:[#allocation193_spill] sm:$0xff]  ;;  %v6100_v54 = vld [vmem:[#allocation190_spill] sm:$0xff] }
 0x183   : > { %6088 = vst [vmem:[#allocation303_spill] sm:$0xff] %v4439_v24  ;;  %6092 = vst [vmem:[#allocation305_spill] sm:$0xff] %v4447_v48  ;;  %v4459_v47 = vmul.f32 %v3876_v44, %v6097_v52  ;;  %v6099_v24 = vld [vmem:[#allocation198_spill] sm:$0xff]  ;;  %v4467_v50 = vmul.f32 %v3857_v37, %v6100_v54  ;;  %v6101_v48 = vld [vmem:[#allocation191_spill] sm:$0xff]  ;;  %v1102_v37 = vadd.f32 %v3889_v30, %v3886_v38 }
 0x184   : > { %6094 = vst [vmem:[#allocation306_spill] sm:$0xff] %v4451_v60  ;;  %6096 = vst [vmem:[#allocation307_spill] sm:$0xff] %v4455_v35  ;;  %v4463_v55 = vmul.f32 %v3883_v28, %v6099_v24  ;;  %v4471_v36 = vmul.f32 %v3863_v59, %v6101_v48  ;;  %v6102_v60 = vld [vmem:[#allocation194_spill] sm:$0xff]  ;;  %v6103_v35 = vld [vmem:[#allocation196_spill] sm:$0xff]  ;;  %v1106_v54 = vadd.f32 %v3904_v5, %v3901_v1 }
 0x185   : > { %6098 = vst [vmem:[#allocation308_spill] sm:$0xff] %v4459_v47  ;;  %v4475_v13 = vmul.f32 %v3869_v40, %v6102_v60  ;;  %v4479_v52 = vmul.f32 %v3876_v44, %v6103_v35  ;;  %v6104_v47 = vld [vmem:[#allocation199_spill] sm:$0xff]  ;;  %v1110_v59 = vadd.f32 %v3919_v46, %v3916_v27  ;;  %v1114_v40 = vadd.f32 %v3934_v22, %v3931_v57  ;;  %v6112_v60 = vld [vmem:[#allocation254_spill] sm:$0xff] }
 0x186   : > { %v4483_v24 = vmul.f32 %v3883_v28, %v6104_v47  ;;  %v1118_v44 = vadd.f32 %v3949_v39, %v3946_v51  ;;  %v1122_v48 = vadd.f32 %v3964_v32, %v3961_v2  ;;  %v1126_v28 = vadd.f32 %v3979_v6, %v3976_v15  ;;  %v6113_v47 = vld [vmem:[#allocation257_spill] sm:$0xff] }
 0x187   : > { %v1130_v38 = vadd.f32 %v3994_v53, %v3991_v8  ;;  %v1103_v30 = vadd.f32 %v1102_v37, %v3892_v17  ;;  %v1107_v1 = vadd.f32 %v1106_v54, %v3907_v29  ;;  %v1111_v5 = vadd.f32 %v1110_v59, %v3922_v11  ;;  %v6111_v53 = vld [vmem:[#allocation227_spill] sm:$0xff]  ;;  %v6114_v37 = vld [vmem:[#allocation286_spill] sm:$0xff] }
 0x188   : > { %v1115_v27 = vadd.f32 %v1114_v40, %v3937_v34  ;;  %v1119_v46 = vadd.f32 %v1118_v44, %v3952_v23  ;;  %v1123_v57 = vadd.f32 %v1122_v48, %v3967_v31  ;;  %v1127_v22 = vadd.f32 %v1126_v28, %v3982_v56  ;;  %v6109_v56 = vld [vmem:[#allocation211_spill] sm:$0xff]  ;;  %v6116_v40 = vld [vmem:[#allocation260_spill] sm:$0xff] }
 0x189   : > { %v1131_v51 = vadd.f32 %v1130_v38, %v3997_v4  ;;  %v1104_v39 = vadd.f32 %v1103_v30, %v3895_v18  ;;  %v1108_v2 = vadd.f32 %v1107_v1, %v3910_v49  ;;  %v1112_v17 = vadd.f32 %v1111_v5, %v3925_v42  ;;  %v6105_v18 = vld [vmem:[#allocation203_spill] sm:$0xff]  ;;  %v6106_v42 = vld [vmem:[#allocation208_spill] sm:$0xff]  ;;  %v6120_v38 = vld [vmem:[#allocation214_spill] sm:$0xff] }
 0x18a   : > { %v1116_v29 = vadd.f32 %v1115_v27, %v3940_v0  ;;  %v1120_v11 = vadd.f32 %v1119_v46, %v3955_v63  ;;  %v1124_v34 = vadd.f32 %v1123_v57, %v3970_v9  ;;  %v1128_v23 = vadd.f32 %v1127_v22, %v3985_v14  ;;  %v6107_v0 = vld [vmem:[#allocation233_spill] sm:$0xff]  ;;  %v6108_v9 = vld [vmem:[#allocation234_spill] sm:$0xff]  ;;  %v6110_v14 = vld [vmem:[#allocation212_spill] sm:$0xff] }
 0x18b   : > { %v1132_v32 = vadd.f32 %v1131_v51, %v4000_v43  ;;  %v4518_v31 = vadd.f32 %v1104_v39, %v3898_v21  ;;  %v4521_v4 = vadd.f32 %v1108_v2, %v3913_v25  ;;  %v4524_v49 = vadd.f32 %v1112_v17, %v6105_v18  ;;  %v6115_v59 = vld [vmem:[#allocation259_spill] sm:$0xff]  ;;  %v6118_v48 = vld [vmem:[#allocation240_spill] sm:$0xff]  ;;  %v6123_v46 = vld [vmem:[#allocation253_spill] sm:$0xff] }
 0x18c   : > { %v4527_v15 = vadd.f32 %v1116_v29, %v6106_v42  ;;  %v4530_v63 = vadd.f32 %v1120_v11, %v6107_v0  ;;  %v4533_v6 = vadd.f32 %v1124_v34, %v6108_v9  ;;  %v4536_v43 = vadd.f32 %v1128_v23, %v3988_v58  ;;  %v6117_v58 = vld [vmem:[#allocation239_spill] sm:$0xff]  ;;  %v6122_v5 = vld [vmem:[#allocation224_spill] sm:$0xff]  ;;  %v6125_v39 = vld [vmem:[#allocation261_spill] sm:$0xff] }
 0x18d   : > { %v4539_v21 = vadd.f32 %v1132_v32, %v4003_v12  ;;  %v1134_v25 = vadd.f32 %v4011_v20, %v4007_v3  ;;  %v1138_v8 = vadd.f32 %v6110_v14, %v6109_v56  ;;  %v1142_v35 = vadd.f32 %v6112_v60, %v6111_v53  ;;  %v6119_v12 = vld [vmem:[#allocation263_spill] sm:$0xff]  ;;  %v6124_v22 = vld [vmem:[#allocation228_spill] sm:$0xff]  ;;  %v6128_v32 = vld [vmem:[#allocation209_spill] sm:$0xff] }
 0x18e   : > { %v1146_v54 = vadd.f32 %v6114_v37, %v6113_v47  ;;  %v1150_v44 = vadd.f32 %v6116_v40, %v6115_v59  ;;  %v1154_v28 = vadd.f32 %v6118_v48, %v6117_v58  ;;  %v1158_v30 = vadd.f32 %v6120_v38, %v6119_v12  ;;  %v6121_v20 = vld [vmem:[#allocation235_spill] sm:$0xff]  ;;  %v6129_v42 = vld [vmem:[#allocation226_spill] sm:$0xff]  ;;  %v6131_v9 = vld [vmem:[#allocation229_spill] sm:$0xff] }
 0x18f   : > { %v1162_v3 = vadd.f32 %v4151_v26, %v4147_v16  ;;  %v1135_v1 = vadd.f32 %v1134_v25, %v6121_v20  ;;  %v1139_v27 = vadd.f32 %v1138_v8, %v6122_v5  ;;  %v1143_v57 = vadd.f32 %v1142_v35, %v6123_v46  ;;  %v6126_v17 = vld [vmem:[#allocation231_spill] sm:$0xff]  ;;  %v6132_v56 = vld [vmem:[#allocation213_spill] sm:$0xff]  ;;  %v6133_v8 = vld [vmem:[#allocation232_spill] sm:$0xff] }
 0x190   : > { %v1147_v51 = vadd.f32 %v1146_v54, %v6124_v22  ;;  %v1151_v2 = vadd.f32 %v1150_v44, %v6125_v39  ;;  %v1155_v29 = vadd.f32 %v1154_v28, %v6126_v17  ;;  %v6127_v11 = vld [vmem:[#allocation215_spill] sm:$0xff]  ;;  %v6134_v60 = vld [vmem:[#allocation216_spill] sm:$0xff]  ;;  %v6135_v37 = vld [vmem:[#allocation210_spill] sm:$0xff] }
 0x191   : > { %v1159_v34 = vadd.f32 %v1158_v30, %v6127_v11  ;;  %v1163_v23 = vadd.f32 %v1162_v3, %v4155_v45  ;;  %v1136_v18 = vadd.f32 %v1135_v1, %v6128_v32  ;;  %v1140_v16 = vadd.f32 %v1139_v27, %v6129_v42  ;;  %v6130_v26 = vld [vmem:[#allocation255_spill] sm:$0xff]  ;;  %v6136_v45 = vld [vmem:[#allocation225_spill] sm:$0xff]  ;;  %v6137_v40 = vld [vmem:[#allocation256_spill] sm:$0xff] }
 0x192   : > { %v1144_v0 = vadd.f32 %v1143_v57, %v6130_v26  ;;  %v1148_v25 = vadd.f32 %v1147_v51, %v6131_v9  ;;  %v1152_v14 = vadd.f32 %v1151_v2, %v6132_v56  ;;  %v1156_v53 = vadd.f32 %v1155_v29, %v6133_v8  ;;  %v6138_v58 = vld [vmem:[#allocation258_spill] sm:$0xff]  ;;  %v6141_v3 = vld [vmem:[#allocation217_spill] sm:$0xff]  ;;  %v6142_v1 = vld [vmem:[#allocation264_spill] sm:$0xff] }
 0x193   : > { %v1160_v35 = vadd.f32 %v1159_v34, %v6134_v60  ;;  %v1164_v47 = vadd.f32 %v1163_v23, %v4159_v41  ;;  %v4574_v54 = vadd.f32 %v1136_v18, %v6135_v37  ;;  %v4577_v59 = vadd.f32 %v1140_v16, %v6136_v45  ;;  %v6139_v28 = vld [vmem:[#allocation238_spill] sm:$0xff]  ;;  %v6143_v5 = vld [vmem:[#allocation265_spill] sm:$0xff]  ;;  %v6145_v57 = vld [vmem:[#allocation236_spill] sm:$0xff] }
 0x194   : > { %v4580_v44 = vadd.f32 %v1144_v0, %v6137_v40  ;;  %v4583_v48 = vadd.f32 %v1148_v25, %v6138_v58  ;;  %v4586_v12 = vadd.f32 %v1152_v14, %v6139_v28  ;;  %v6140_v38 = vld [vmem:[#allocation262_spill] sm:$0xff]  ;;  %v1166_v27 = vadd.f32 %v6143_v5, %v6142_v1  ;;  %v6144_v46 = vld [vmem:[#allocation245_spill] sm:$0xff]  ;;  %v6146_v51 = vld [vmem:[#allocation219_spill] sm:$0xff] }
 0x195   : > { %v4589_v30 = vadd.f32 %v1156_v53, %v6140_v38  ;;  %v4592_v41 = vadd.f32 %v1160_v35, %v6141_v3  ;;  %v4595_v20 = vadd.f32 %v1164_v47, %v4163_v33  ;;  %v1170_v22 = vadd.f32 %v6145_v57, %v6144_v46  ;;  %v6147_v39 = vld [vmem:[#allocation220_spill] sm:$0xff]  ;;  %v6148_v17 = vld [vmem:[#allocation269_spill] sm:$0xff]  ;;  %v6149_v29 = vld [vmem:[#allocation223_spill] sm:$0xff] }
 0x196   : > { %v1174_v2 = vadd.f32 %v6147_v39, %v6146_v51  ;;  %v1178_v11 = vadd.f32 %v6149_v29, %v6148_v17  ;;  %v6150_v34 = vld [vmem:[#allocation241_spill] sm:$0xff]  ;;  %v6151_v23 = vld [vmem:[#allocation242_spill] sm:$0xff]  ;;  %v6152_v18 = vld [vmem:[#allocation288_spill] sm:$0xff]  ;;  %v1194_v9 = vadd.f32 %v4311_v19, %v4307_v62 }
 0x197   : > { %v1182_v32 = vadd.f32 %v6151_v23, %v6150_v34  ;;  %v6153_v42 = vld [vmem:[#allocation285_spill] sm:$0xff]  ;;  %v6155_v26 = vld [vmem:[#allocation274_spill] sm:$0xff]  ;;  %v6159_v35 = vld [vmem:[#allocation248_spill] sm:$0xff] }
 0x198   : > { %v1186_v16 = vadd.f32 %v6153_v42, %v6152_v18  ;;  %v6154_v33 = vld [vmem:[#allocation273_spill] sm:$0xff]  ;;  %v6156_v25 = vld [vmem:[#allocation218_spill] sm:$0xff]  ;;  %v1179_v47 = vadd.f32 %v1178_v11, %v6159_v35  ;;  %v6162_v28 = vld [vmem:[#allocation291_spill] sm:$0xff]  ;;  %v1195_v3 = vadd.f32 %v1194_v9, %v4315_v10 }
 0x199   : > { %v1190_v0 = vadd.f32 %v6155_v26, %v6154_v33  ;;  %v1167_v56 = vadd.f32 %v1166_v27, %v6156_v25  ;;  %v6157_v14 = vld [vmem:[#allocation237_spill] sm:$0xff]  ;;  %v6160_v37 = vld [vmem:[#allocation270_spill] sm:$0xff]  ;;  %v6163_v1 = vld [vmem:[#allocation243_spill] sm:$0xff] }
 0x19a   : > { %v1171_v8 = vadd.f32 %v1170_v22, %v6157_v14  ;;  %v6158_v53 = vld [vmem:[#allocation221_spill] sm:$0xff]  ;;  %v1183_v45 = vadd.f32 %v1182_v32, %v6160_v37  ;;  %v6164_v46 = vld [vmem:[#allocation266_spill] sm:$0xff]  ;;  %v6167_v51 = vld [vmem:[#allocation271_spill] sm:$0xff]  ;;  %v1196_v34 = vadd.f32 %v1195_v3, %v4319_v7 }
 0x19b   : > { %v1175_v60 = vadd.f32 %v1174_v2, %v6158_v53  ;;  %v6161_v40 = vld [vmem:[#allocation289_spill] sm:$0xff]  ;;  %v1191_v38 = vadd.f32 %v1190_v0, %v6162_v28  ;;  %v1168_v5 = vadd.f32 %v1167_v56, %v6163_v1  ;;  %v6165_v19 = vld [vmem:[#allocation222_spill] sm:$0xff]  ;;  %v6169_v29 = vld [vmem:[#allocation292_spill] sm:$0xff] }
 0x19c   : > { %v1187_v58 = vadd.f32 %v1186_v16, %v6161_v40  ;;  %v1172_v62 = vadd.f32 %v1171_v8, %v6164_v46  ;;  %v6166_v57 = vld [vmem:[#allocation249_spill] sm:$0xff]  ;;  %v1184_v39 = vadd.f32 %v1183_v45, %v6167_v51  ;;  %v6168_v2 = vld [vmem:[#allocation290_spill] sm:$0xff]  ;;  %v6170_v23 = vld [vmem:[#allocation244_spill] sm:$0xff]  ;;  %v1197_v53 = vadd.f32 %v1196_v34, %v4323_v61 }
 0x19d   : > { %v1176_v27 = vadd.f32 %v1175_v60, %v6165_v19  ;;  %v1180_v22 = vadd.f32 %v1179_v47, %v6166_v57  ;;  %v1192_v11 = vadd.f32 %v1191_v38, %v6169_v29  ;;  %v1169_v32 = vadd.f32 %v1168_v5, %v6170_v23  ;;  %v6171_v18 = vld [vmem:[#allocation267_spill] sm:$0xff]  ;;  %v6172_v42 = vld [vmem:[#allocation268_spill] sm:$0xff]  ;;  %v6173_v33 = vld [vmem:[#allocation250_spill] sm:$0xff] }
 0x19e   : > { %v1188_v17 = vadd.f32 %v1187_v58, %v6168_v2  ;;  %v1173_v10 = vadd.f32 %v1172_v62, %v6171_v18  ;;  %v6174_v0 = vld [vmem:[#allocation287_spill] sm:$0xff]  ;;  %v6175_v25 = vld [vmem:[#allocation272_spill] sm:$0xff]  ;;  %v6176_v14 = vld [vmem:[#allocation246_spill] sm:$0xff] }
 0x19f   : > { %v1177_v16 = vadd.f32 %v1176_v27, %v6172_v42  ;;  %v1181_v26 = vadd.f32 %v1180_v22, %v6173_v33  ;;  %v1185_v9 = vadd.f32 %v1184_v39, %v6174_v0  ;;  %v1193_v8 = vadd.f32 %v1192_v11, %v6176_v14  ;;  %v6177_v60 = vld [vmem:[#allocation247_spill] sm:$0xff]  ;;  %v6181_v40 = vld [vmem:[#allocation282_spill] sm:$0xff]  ;;  %v6183_v38 = vld [vmem:[#allocation205_spill] sm:$0xff] }
 0x1a0   : > { %v1189_v56 = vadd.f32 %v1188_v17, %v6175_v25  ;;  %v6178_v35 = vld [vmem:[#allocation275_spill] sm:$0xff]  ;;  %v6184_v3 = vld [vmem:[#allocation206_spill] sm:$0xff]  ;;  %v6186_v46 = vld [vmem:[#allocation296_spill] sm:$0xff]  ;;  %v1226_v39 = vadd.f32 %v4471_v36, %v4467_v50 }
 0x1a1   : > { %v1198_v47 = vadd.f32 %v6178_v35, %v6177_v60  ;;  %v6179_v7 = vld [vmem:[#allocation279_spill] sm:$0xff]  ;;  %v1210_v1 = vadd.f32 %v6184_v3, %v6183_v38  ;;  %v6187_v19 = vld [vmem:[#allocation300_spill] sm:$0xff]  ;;  %v6188_v27 = vld [vmem:[#allocation301_spill] sm:$0xff] }
 0x1a2   : > { %v6180_v37 = vld [vmem:[#allocation251_spill] sm:$0xff]  ;;  %v1218_v57 = vadd.f32 %v6188_v27, %v6187_v19  ;;  %v6189_v22 = vld [vmem:[#allocation305_spill] sm:$0xff]  ;;  %v6190_v61 = vld [vmem:[#allocation306_spill] sm:$0xff] }
 0x1a3   : > { %v1202_v45 = vadd.f32 %v6180_v37, %v6179_v7  ;;  %v6182_v58 = vld [vmem:[#allocation283_spill] sm:$0xff]  ;;  %v1222_v51 = vadd.f32 %v6190_v61, %v6189_v22  ;;  %v6191_v2 = vld [vmem:[#allocation276_spill] sm:$0xff]  ;;  %v6195_v33 = vld [vmem:[#allocation297_spill] sm:$0xff]  ;;  %v1227_v7 = vadd.f32 %v1226_v39, %v4475_v13 }
 0x1a4   : > { %v1206_v28 = vadd.f32 %v6182_v58, %v6181_v40  ;;  %v6185_v5 = vld [vmem:[#allocation295_spill] sm:$0xff]  ;;  %v1199_v17 = vadd.f32 %v1198_v47, %v6191_v2  ;;  %v6192_v29 = vld [vmem:[#allocation252_spill] sm:$0xff]  ;;  %v6196_v25 = vld [vmem:[#allocation302_spill] sm:$0xff] }
 0x1a5   : > { %v1214_v62 = vadd.f32 %v6186_v46, %v6185_v5  ;;  %v1203_v11 = vadd.f32 %v1202_v45, %v6192_v29  ;;  %v6193_v34 = vld [vmem:[#allocation284_spill] sm:$0xff]  ;;  %v6194_v18 = vld [vmem:[#allocation207_spill] sm:$0xff]  ;;  %v1219_v14 = vadd.f32 %v1218_v57, %v6196_v25  ;;  %v6198_v37 = vld [vmem:[#allocation277_spill] sm:$0xff]  ;;  %v1228_v19 = vadd.f32 %v1227_v7, %v4479_v52 }
 0x1a6   : > { %v1207_v23 = vadd.f32 %v1206_v28, %v6193_v34  ;;  %v1211_v42 = vadd.f32 %v1210_v1, %v6194_v18  ;;  %v6197_v60 = vld [vmem:[#allocation307_spill] sm:$0xff]  ;;  %v1200_v40 = vadd.f32 %v1199_v17, %v6198_v37  ;;  %v6199_v58 = vld [vmem:[#allocation280_spill] sm:$0xff]  ;;  %v6200_v36 = vld [vmem:[#allocation230_spill] sm:$0xff] }
 0x1a7   : > { %v1215_v0 = vadd.f32 %v1214_v62, %v6195_v33  ;;  %v1223_v35 = vadd.f32 %v1222_v51, %v6197_v60  ;;  %v1204_v50 = vadd.f32 %v1203_v11, %v6199_v58  ;;  %v6201_v38 = vld [vmem:[#allocation293_spill] sm:$0xff]  ;;  %v6202_v3 = vld [vmem:[#allocation298_spill] sm:$0xff]  ;;  %v6203_v5 = vld [vmem:[#allocation303_spill] sm:$0xff]  ;;  %v1229_v18 = vadd.f32 %v1228_v19, %v4483_v24 }
 0x1a8   : > { %v1208_v47 = vadd.f32 %v1207_v23, %v6200_v36  ;;  %v1212_v45 = vadd.f32 %v1211_v42, %v6201_v38  ;;  %v1220_v1 = vadd.f32 %v1219_v14, %v6203_v5  ;;  %v6204_v46 = vld [vmem:[#allocation308_spill] sm:$0xff]  ;;  %v6205_v27 = vld [vmem:[#allocation278_spill] sm:$0xff]  ;;  %v6206_v22 = vld [vmem:[#allocation281_spill] sm:$0xff] }
 0x1a9   : > { %v1216_v28 = vadd.f32 %v1215_v0, %v6202_v3  ;;  %v1224_v62 = vadd.f32 %v1223_v35, %v6204_v46  ;;  %v1201_v57 = vadd.f32 %v1200_v40, %v6205_v27  ;;  %v1205_v13 = vadd.f32 %v1204_v50, %v6206_v22  ;;  %v6207_v61 = vld [vmem:[#allocation204_spill] sm:$0xff]  ;;  %v6208_v39 = vld [vmem:[#allocation294_spill] sm:$0xff]  ;;  %v6209_v17 = vld [vmem:[#allocation299_spill] sm:$0xff] }
 0x1aa   : > { %v1209_v51 = vadd.f32 %v1208_v47, %v6207_v61  ;;  %v1213_v2 = vadd.f32 %v1212_v45, %v6208_v39  ;;  %v6210_v11 = vld [vmem:[#allocation304_spill] sm:$0xff]  ;;  %v6215_v25 = vld [vmem:[#allocation39_spill] sm:$0xff]  ;;  %v6217_v60 = vld [vmem:[#allocation46_spill] sm:$0xff] }
 0x1ab   : > { %v1217_v29 = vadd.f32 %v1216_v28, %v6209_v17  ;;  %v1221_v34 = vadd.f32 %v1220_v1, %v6210_v11  ;;  %v1225_v23 = vadd.f32 %v1224_v62, %v4463_v55  ;;  %v6211_v42 = vld [vmem:[#allocation28_spill] sm:$0xff]  ;;  %v4687_v14 = vadd.f32 %v4524_v49, %v6215_v25   ;;  %v6219_v35 = vld [vmem:[#allocation50_spill] sm:$0xff]  ;;  %v6221_v24 = vld [vmem:[#allocation57_spill] sm:$0xff] }
 0x1ac   : > { %v4679_v62 = vadd.f32 %v4518_v31, %v6211_v42   ;;  %v6213_v52 = vld [vmem:[#allocation32_spill] sm:$0xff]  ;;  %v4691_v39 = vadd.f32 %v4527_v15, %v6217_v60   ;;  %v4695_v55 = vadd.f32 %v4530_v63, %v6219_v35   ;;  %v4699_v22 = vadd.f32 %v4533_v6, %v6221_v24   ;;  %v6226_v49 = vld [vmem:[#allocation75_spill] sm:$0xff]  ;;  %v6227_v50 = vld [vmem:[#allocation82_spill] sm:$0xff] }
 0x1ad   : > { %v4683_v27 = vadd.f32 %v4521_v4, %v6213_v52   ;;  %6216 = vst [vmem:[#allocation311_spill] sm:$0xff] %v4687_v14  ;;  %v6223_v40 = vld [vmem:[#allocation64_spill] sm:$0xff]  ;;  %v4711_v15 = vadd.f32 %v4574_v54, %v6226_v49   ;;  %v4715_v5 = vadd.f32 %v4577_v59, %v6227_v50   ;;  %v6229_v63 = vld [vmem:[#allocation86_spill] sm:$0xff]  ;;  %v6230_v36 = vld [vmem:[#allocation93_spill] sm:$0xff] }
 0x1ae   : > { %6212 = vst [vmem:[#allocation309_spill] sm:$0xff] %v4679_v62  ;;  %6218 = vst [vmem:[#allocation312_spill] sm:$0xff] %v4691_v39  ;;  %v6220_v37 = vmov %v4695_v55  ;;  %v6222_v31 = vmov %v4699_v22  ;;  %v4703_v4 = vadd.f32 %v4536_v43, %v6223_v40   ;;  %v6224_v58 = vld [vmem:[#allocation68_spill] sm:$0xff]  ;;  %v4719_v6 = vadd.f32 %v4580_v44, %v6229_v63   ;;  %v6236_v54 = vld [vmem:[#allocation111_spill] sm:$0xff] }
 0x1af   : > { %6214 = vst [vmem:[#allocation310_spill] sm:$0xff] %v4683_v27  ;;  %v4707_v55 = vadd.f32 %v4539_v21, %v6224_v58   ;;  %v6228_v38 = vmov %v4715_v5  ;;  %v4723_v17 = vadd.f32 %v4583_v48, %v6230_v36   ;;  %v6232_v43 = vld [vmem:[#allocation100_spill] sm:$0xff]  ;;  %v4735_v50 = vadd.f32 %v4592_v41, %v6236_v54   ;;  %v6238_v59 = vld [vmem:[#allocation118_spill] sm:$0xff]  ;;  %v6242_v5 = vld [vmem:[#allocation129_spill] sm:$0xff] }
 0x1b0   : > { %v4727_v35 = vadd.f32 %v4586_v12, %v6232_v43   ;;  %v6234_v3 = vld [vmem:[#allocation104_spill] sm:$0xff]  ;;  %v4739_v48 = vadd.f32 %v4595_v20, %v6238_v59   ;;  %v6240_v28 = vld [vmem:[#allocation122_spill] sm:$0xff]  ;;  %v4745_v62 = vadd.f32 %v1173_v10, %v6242_v5   ;;  %v6295_v5 = vmov %v6228_v38  ;;  %1266 = vst [vmem:[#allocation7 + $0x20] sm:$0xff] (%p4792_p2), %v6220_v37  ;;  %1267 = vst [vmem:[#allocation7 + $0x28] sm:$0xff] (%p4792_p2), %v6222_v31 }
 0x1b1   : > { %v6225_v47 = vmov %v4707_v55  ;;  %v6231_v45 = vmov %v4723_v17  ;;  %v4731_v49 = vadd.f32 %v4589_v30, %v6234_v3   ;;  %v6237_v46 = vmov %v4735_v50  ;;  %v6244_v12 = vld [vmem:[#allocation136_spill] sm:$0xff]  ;;  %v6248_v30 = vld [vmem:[#allocation147_spill] sm:$0xff]  ;;  %v6250_v39 = vld [vmem:[#allocation154_spill] sm:$0xff]  ;;  %1268 = vst [vmem:[#allocation7 + $0x30] sm:$0xff] (%p4792_p2), %v4703_v4 }
 0x1b2   : > { %v6233_v21 = vmov %v4727_v35  ;;  %v6239_v44 = vmov %v4739_v48  ;;  %v4742_v36 = vadd.f32 %v1169_v32, %v6240_v28   ;;  %v6243_v61 = vmov %v4745_v62  ;;  %v6246_v22 = vld [vmem:[#allocation140_spill] sm:$0xff]  ;;  %v6252_v20 = vld [vmem:[#allocation158_spill] sm:$0xff]  ;;  %v6254_v48 = vld [vmem:[#allocation165_spill] sm:$0xff]  ;;  %1269 = vst [vmem:[#allocation7 + $0x38] sm:$0xff] (%p4792_p2), %v6225_v47 }
 0x1b3   : > { %v6235_v1 = vmov %v4731_v49  ;;  %v4748_v27 = vadd.f32 %v1177_v16, %v6244_v12   ;;  %v4751_v32 = vadd.f32 %v1181_v26, %v6246_v22   ;;  %v4754_v52 = vadd.f32 %v1185_v9, %v6248_v30   ;;  %v6256_v10 = vld [vmem:[#allocation172_spill] sm:$0xff]  ;;  %v6260_v26 = vld [vmem:[#allocation189_spill] sm:$0xff]  ;;  %1270 = vst [vmem:[#allocation7 + $0x40] sm:$0xff] (%p4792_p2), %v4711_v15  ;;  %1271 = vst [vmem:[#allocation7 + $0x48] sm:$0xff] (%p4792_p2), %v6228_v38 }
 0x1b4   : > { %v6241_v19 = vmov %v4742_v36  ;;  %v4757_v56 = vadd.f32 %v1189_v56, %v6250_v39   ;;  %v4760_v43 = vadd.f32 %v1193_v8, %v6252_v20   ;;  %v4763_v17 = vadd.f32 %v1197_v53, %v6254_v48   ;;  %v6258_v16 = vld [vmem:[#allocation176_spill] sm:$0xff]  ;;  %v6268_v53 = vld [vmem:[#allocation201_spill] sm:$0xff]  ;;  %1272 = vst [vmem:[#allocation7 + $0x50] sm:$0xff] (%p4792_p2), %v4719_v6  ;;  %1273 = vst [vmem:[#allocation7 + $0x58] sm:$0xff] (%p4792_p2), %v6231_v45 }
 0x1b5   : > { %v6245_v11 = vmov %v4748_v27  ;;  %v6247_v42 = vmov %v4751_v32  ;;  %v6249_v41 = vmov %v4754_v52  ;;  %v4766_v54 = vadd.f32 %v1201_v57, %v6256_v10   ;;  %v6262_v32 = vld [vmem:[#allocation195_spill] sm:$0xff]  ;;  %v6264_v52 = vld [vmem:[#allocation197_spill] sm:$0xff]  ;;  %v6270_v57 = vld [vmem:[#allocation202_spill] sm:$0xff]  ;;  %1274 = vst [vmem:[#allocation7 + $0x60] sm:$0xff] (%p4792_p2), %v6233_v21 }
 0x1b6   : > { %v6251_v60 = vmov %v4757_v56  ;;  %v6253_v58 = vmov %v4760_v43  ;;  %v6255_v3 = vmov %v4763_v17  ;;  %v4769_v24 = vadd.f32 %v1205_v13, %v6258_v16   ;;  %v6266_v56 = vld [vmem:[#allocation200_spill] sm:$0xff]  ;;  %v6301_v39 = vld [vmem:[#allocation312_spill] sm:$0xff]  ;;  %v6302_v59 = vld [vmem:[#allocation311_spill] sm:$0xff]  ;;  %1275 = vst [vmem:[#allocation7 + $0x68] sm:$0xff] (%p4792_p2), %v6235_v1 }
 0x1b7   : > { %v6257_v33 = vmov %v4766_v54  ;;  %v4772_v28 = vadd.f32 %v1209_v51, %v6260_v26   ;;  %v4775_v40 = vadd.f32 %v1213_v2, %v6262_v32   ;;  %v4778_v25 = vadd.f32 %v1217_v29, %v6264_v52   ;;  %v6303_v27 = vld [vmem:[#allocation310_spill] sm:$0xff]  ;;  %v6304_v62 = vld [vmem:[#allocation309_spill] sm:$0xff]  ;;  %v6308_v16 = vld [vmem:[#allocation311_spill] sm:$0xff] (%p4792_p2)  ;;  %1276 = vst [vmem:[#allocation7 + $0x70] sm:$0xff] (%p4792_p2), %v6237_v46 }
 0x1b8   : > { %v6259_v0 = vmov %v4769_v24  ;;  %v4781_v63 = vadd.f32 %v1221_v34, %v6266_v56   ;;  %v4784_v12 = vadd.f32 %v1225_v23, %v6268_v53   ;;  %v4787_v30 = vadd.f32 %v1229_v18, %v6270_v57   ;;  %v6306_v2 = vld [vmem:[#allocation309_spill] sm:$0xff] (%p4792_p2)  ;;  %v6307_v23 = vld [vmem:[#allocation310_spill] sm:$0xff] (%p4792_p2)  ;;  %1264 = vst [vmem:[#allocation7 + $0x10] sm:$0xff] (%p4792_p2), %v6308_v16  ;;  %v6309_v26 = vld [vmem:[#allocation312_spill] sm:$0xff] (%p4792_p2) }
 0x1b9   : > { %v6261_v14 = vmov %v4772_v28  ;;  %v6263_v9 = vmov %v4775_v40  ;;  %v6265_v7 = vmov %v4778_v25  ;;  %v6279_v24 = vmov %v6259_v0  ;;  %1262 = vst [vmem:[#allocation7] sm:$0xff] (%p4792_p2), %v6306_v2  ;;  %1263 = vst [vmem:[#allocation7 + $0x8] sm:$0xff] (%p4792_p2), %v6307_v23 }
 0x1ba   : > { %v6267_v8 = vmov %v4781_v63  ;;  %v6269_v20 = vmov %v4784_v12  ;;  %v6271_v10 = vmov %v4787_v30  ;;  %v6276_v25 = vmov %v6265_v7  ;;  %1265 = vst [vmem:[#allocation7 + $0x18] sm:$0xff] (%p4792_p2), %v6309_v26  ;;  %1277 = vst [vmem:[#allocation7 + $0x78] sm:$0xff] (%p4792_p2), %v6239_v44 }
 0x1bb   : > { %v6273_v30 = vmov %v6271_v10  ;;  %v6274_v12 = vmov %v6269_v20  ;;  %v6275_v63 = vmov %v6267_v8  ;;  %v6277_v40 = vmov %v6263_v9  ;;  %428 = sbr.rel (!%p4792_p2) target bundleno = 140 (0x8c), region = 43  ;;  %1278 = vst [vmem:[#allocation7 + $0x80] sm:$0xff] (%p4792_p2), %v6241_v19  ;;  %1279 = vst [vmem:[#allocation7 + $0x88] sm:$0xff] (%p4792_p2), %v6243_v61 }
 0x1bc   : > { %v6278_v28 = vmov %v6261_v14  ;;  %v6280_v54 = vmov %v6257_v33  ;;  %v6281_v29 = vmov %v6255_v3  ;;  %v6282_v43 = vmov %v6253_v58  ;;  %1280 = vst [vmem:[#allocation7 + $0x90] sm:$0xff] (%p4792_p2), %v6245_v11  ;;  %1281 = vst [vmem:[#allocation7 + $0x98] sm:$0xff] (%p4792_p2), %v6247_v42 }
 0x1bd   : > { %v6283_v56 = vmov %v6251_v60  ;;  %v6284_v52 = vmov %v6249_v41  ;;  %v6285_v32 = vmov %v6247_v42  ;;  %v6286_v57 = vmov %v6245_v11  ;;  %1282 = vst [vmem:[#allocation7 + $0xa0] sm:$0xff] (%p4792_p2), %v6249_v41  ;;  %1283 = vst [vmem:[#allocation7 + $0xa8] sm:$0xff] (%p4792_p2), %v6251_v60 }
 0x1be   : > { %v6287_v18 = vmov %v6243_v61  ;;  %v6288_v36 = vmov %v6241_v19  ;;  %v6289_v48 = vmov %v6239_v44  ;;  %v6290_v50 = vmov %v6237_v46  ;;  %1284 = vst [vmem:[#allocation7 + $0xb0] sm:$0xff] (%p4792_p2), %v6253_v58  ;;  %1285 = vst [vmem:[#allocation7 + $0xb8] sm:$0xff] (%p4792_p2), %v6255_v3 }
 0x1bf   : > { %v6291_v49 = vmov %v6235_v1  ;;  %v6292_v35 = vmov %v6233_v21  ;;  %v6293_v17 = vmov %v6231_v45  ;;  %v6294_v51 = vmov %v4719_v6  ;;  %1286 = vst [vmem:[#allocation7 + $0xc0] sm:$0xff] (%p4792_p2), %v6257_v33  ;;  %1287 = vst [vmem:[#allocation7 + $0xc8] sm:$0xff] (%p4792_p2), %v6259_v0 }
 0x1c0   : > { %v6296_v53 = vmov %v4711_v15  ;;  %v6297_v55 = vmov %v6225_v47  ;;  %v6298_v13 = vmov %v4703_v4  ;;  %v6299_v22 = vmov %v6222_v31  ;;  %1288 = vst [vmem:[#allocation7 + $0xd0] sm:$0xff] (%p4792_p2), %v6261_v14  ;;  %1289 = vst [vmem:[#allocation7 + $0xd8] sm:$0xff] (%p4792_p2), %v6263_v9 }
 0x1c1   : > { %v6300_v34 = vmov %v6220_v37  ;;  %1290 = vst [vmem:[#allocation7 + $0xe0] sm:$0xff] (%p4792_p2), %v6265_v7  ;;  %1291 = vst [vmem:[#allocation7 + $0xe8] sm:$0xff] (%p4792_p2), %v6267_v8 }
 0x1c2   :  { %1292 = vst [vmem:[#allocation7 + $0xf0] sm:$0xff] %v6269_v20  ;;  %1293 = vst [vmem:[#allocation7 + $0xf8] sm:$0xff] %v6271_v10 }
 0x1c3   :  { %1795 = shalt.err (!%p1792_p7)
}
 0x1c4   :  { %s1796_s13 = scalar_lea.hbm %s4947_s2, 4096 }
 0x1c5   :  { %p1797_p8 = scmp.ne.s32.totalorder %s4947_s2, %s1796_s13  ;;  %p1800_p9 = scmp.lt.u32.totalorder %s1796_s13, %s4947_s2 }
 0x1c7   :  { %p1802_p10 = pnand %p1800_p9, %p1797_p8 }
 0x1c9   :  { %1805 = shalt.err (!%p1802_p10)
}
 0x1ca   :  { %1305 = dma.vmem_to_hbm [thread:$0]  %s1300_s9, 4096, %s4947_s2, [#allocation4], %s2077_s19, %s2077_s19, %s2078_s20  }
 0x1cb   :  { %1942 = dma.done.wait [#allocation4], 4096  }
 0x1cc   :  { %1943 = vsyncadd [#allocation4], 4294963200 }
 0x1cd   :  { %1309 = vsyncpa [#allocation3], 1 }
 0x1ce   :  { %1310 = vsyncpa [#allocation6], 1 }
 0x1cf   :  { %1311 = vsyncpa [#allocation4], 1 }

</bundles_post_ra>
